<compile_context>
chip_gen: v5e
topology: v5e:2x2
jax: 0.10.0
libtpu: 0.0.40
codegen_flags: <defaults>
</compile_context>

<pallas_src>
import numpy as np
import jax
import jax.numpy as jnp
from jax import lax
from jax.experimental import pallas as pl
from jax.experimental.pallas import tpu as pltpu

EPS = 1e-5
NEG_SLOPE = 0.01
INV_SQRT2 = 0.7071067811865476


def _erf(x):
    # Abramowitz & Stegun 7.1.26 (|err| < 1.5e-7): only exp/mul/add/select.
    a1, a2, a3, a4, a5 = 0.254829592, -0.284496736, 1.421413741, -1.453152027, 1.061405429
    p = 0.3275911
    s = jnp.where(x >= 0.0, 1.0, -1.0)
    ax = jnp.abs(x)
    t = 1.0 / (1.0 + p * ax)
    poly = ((((a5 * t + a4) * t + a3) * t + a2) * t + a1) * t
    return s * (1.0 - poly * jnp.exp(-ax * ax))


def _lrelu(x):
    return jnp.where(x >= 0.0, x, NEG_SLOPE * x)


def _fused_block_kernel(x_ref, w1_ref, w2_ref, s_ref, kd_ref, bd_ref, ku_ref, bu_ref, o_ref):
    """One batch element, fully fused.

    x_ref : (1, Cin, HW)     input, flat spatial on lanes
    w1_ref: (KK, Cout, Cin)  per-tap conv1 weights
    w2_ref: (KK, Cout, Cout) per-tap conv2 weights
    s_ref : (KK, HW, HW)     per-tap shift + zero-pad operators (0/1)
    kd_ref: (HW, H*hid)      kron(I_H, Wd^T)  (adapter downsample over trailing W axis)
    bd_ref: (1, H*hid)       tiled downsample bias
    ku_ref: (H*hid, HW)      kron(I_H, Wu^T)  (adapter upsample)
    bu_ref: (1, HW)          tiled upsample bias
    o_ref : (1, Cout, HW)
    """
    x = x_ref[0].astype(jnp.float32)
    kk = w1_ref.shape[0]

    def conv3x3_inorm(z, w_ref, apply_act):
        cout = w_ref.shape[1]
        hw = z.shape[1]
        acc = jnp.zeros((cout, hw), jnp.float32)
        for t in range(kk):  # static unroll: 9 taps
            # "shifted slice" of the zero-padded image, expressed as an MXU matmul
            zt = jnp.dot(z, s_ref[t], preferred_element_type=jnp.float32)        # (Cin, HW)
            acc = acc + jnp.dot(w_ref[t], zt, preferred_element_type=jnp.float32)  # (Cout, HW)
        # InstanceNorm2d (affine=False): per-channel stats over the lane (H*W) axis,
        # two-pass (centered) variance -> matches the reference formulation.
        mean = jnp.mean(acc, axis=1, keepdims=True)
        cen = acc - mean
        var = jnp.mean(cen * cen, axis=1, keepdims=True)
        y = cen * lax.rsqrt(var + EPS)
        return _lrelu(y) if apply_act else y

    z1 = conv3x3_inorm(x, w1_ref, True)      # conv1 + norm1 + lrelu
    z2 = conv3x3_inorm(z1, w2_ref, False)    # conv2 + norm2

    # adapter: nn.Linear over the trailing W axis == block-diagonal matmul in (C, H*W)
    a = jnp.dot(z2, kd_ref[...], preferred_element_type=jnp.float32) + bd_ref[...]
    a = 0.5 * a * (1.0 + _erf(a * INV_SQRT2))                      # exact (erf) GELU
    a = jnp.dot(a, ku_ref[...], preferred_element_type=jnp.float32) + bu_ref[...]
    o_ref[0] = _lrelu(a + z2).astype(o_ref.dtype)                  # residual + lrelu


def _shift_operators(H, W, K):
    """S[t, j, i] = 1 iff flat input position j feeds flat output position i for tap t
    (out-of-image taps are all-zero columns, i.e. zero padding is baked in)."""
    pad = (K - 1) // 2
    HW = H * W
    S = np.zeros((K * K, HW, HW), np.float32)
    for kh in range(K):
        for kw in range(K):
            t = kh * K + kw
            dh, dw = kh - pad, kw - pad
            for h in range(H):
                hh = h + dh
                if not (0 <= hh < H):
                    continue
                for w in range(W):
                    ww = w + dw
                    if not (0 <= ww < W):
                        continue
                    S[t, hh * W + ww, h * W + w] = 1.0
    return jnp.asarray(S)


def de_adapted_block_forward(x, params, K=3):
    """x: (N, Cin, H, W) NCHW -> (N, Cout, H, W)."""
    N, Cin, H, W = x.shape
    w1, w2 = params["w1"], params["w2"]
    wd, bd, wu, bu = params["wd"], params["bd"], params["wu"], params["bu"]
    Cout = w1.shape[0]
    hid = wd.shape[0]
    if W != Cout:
        raise ValueError("module applies nn.Linear to the trailing NCHW axis: needs W == out_channels")
    HW = H * W

    # flat-spatial layout (free reshape: trailing-dim merge of contiguous NCHW)
    x_flat = x.reshape(N, Cin, HW)

    # per-tap conv weights, tap index t = kh*K + kw
    w1_t = jnp.transpose(w1, (2, 3, 0, 1)).reshape(K * K, Cout, Cin).astype(jnp.float32)
    w2_t = jnp.transpose(w2, (2, 3, 0, 1)).reshape(K * K, Cout, Cout).astype(jnp.float32)

    # 3x3 shift+pad operators (trace-time constants)
    S = _shift_operators(H, W, K)

    # adapter Linear over the trailing axis as block-diagonal operators + tiled biases
    eye_h = jnp.eye(H, dtype=jnp.float32)
    kd = jnp.kron(eye_h, wd.T.astype(jnp.float32))          # (H*W, H*hid)
    ku = jnp.kron(eye_h, wu.T.astype(jnp.float32))          # (H*hid, H*W)
    bd_t = jnp.tile(bd.astype(jnp.float32), H).reshape(1, H * hid)
    bu_t = jnp.tile(bu.astype(jnp.float32), H).reshape(1, HW)

    out = pl.pallas_call(
        _fused_block_kernel,
        out_shape=jax.ShapeDtypeStruct((N, Cout, HW), jnp.float32),
        grid=(N,),
        in_specs=[
            pl.BlockSpec((1, Cin, HW), lambda n: (n, 0, 0)),
            pl.BlockSpec((K * K, Cout, Cin), lambda n: (0, 0, 0)),
            pl.BlockSpec((K * K, Cout, Cout), lambda n: (0, 0, 0)),
            pl.BlockSpec((K * K, HW, HW), lambda n: (0, 0, 0)),
            pl.BlockSpec((HW, H * hid), lambda n: (0, 0)),
            pl.BlockSpec((1, H * hid), lambda n: (0, 0)),
            pl.BlockSpec((H * hid, HW), lambda n: (0, 0)),
            pl.BlockSpec((1, HW), lambda n: (0, 0)),
        ],
        out_specs=pl.BlockSpec((1, Cout, HW), lambda n: (n, 0, 0)),
        compiler_params=pltpu.CompilerParams(dimension_semantics=("parallel",)),
    )(x_flat, w1_t, w2_t, S, kd, bd_t, ku, bu_t)

    return out.reshape(N, Cout, H, W)


def reference_forward(x, params, K=3):
    # pure-JAX reference mirroring the PyTorch forward (f32-accurate matmuls/convs)
    w1, w2 = params["w1"], params["w2"]
    wd, bd, wu, bu = params["wd"], params["bd"], params["wu"], params["bu"]
    pad = (K - 1) // 2
    hp = lax.Precision.HIGHEST

    def conv(z, w):
        return lax.conv_general_dilated(z, w, (1, 1), [(pad, pad), (pad, pad)],
                                        dimension_numbers=("NCHW", "OIHW", "NCHW"),
                                        precision=hp)

    def inorm(y):
        m = y.mean(axis=(2, 3), keepdims=True)
        v = ((y - m) ** 2).mean(axis=(2, 3), keepdims=True)
        return (y - m) * lax.rsqrt(v + EPS)

    def lrelu(y):
        return jnp.where(y >= 0.0, y, NEG_SLOPE * y)

    out = lrelu(inorm(conv(x, w1)))
    out = inorm(conv(out, w2))
    adpt = jnp.einsum("nchw,dw->nchd", out, wd, precision=hp) + bd
    adpt = jax.nn.gelu(adpt, approximate=False)
    adpt = jnp.einsum("nchd,wd->nchw", adpt, wu, precision=hp) + bu
    return lrelu(adpt + out)


if __name__ == "__main__":
    N, Cin, Cout, H, W, K = 2, 4, 16, 16, 16, 3
    rf = 1
    hidden = Cout // rf   # adapter hidden size is out_channels / rf in the module

    key = jax.random.PRNGKey(0)
    k1, k2, k3, k4, kx = jax.random.split(key, 5)
    params = {
        "w1": jax.random.normal(k1, (Cout, Cin, K, K), jnp.float32) * 0.2,
        "w2": jax.random.normal(k2, (Cout, Cout, K, K), jnp.float32) * 0.1,
        # the module zero-initializes the adapter; small nonzero values are used here so
        # the adapter path is numerically exercised (zeros also pass).
        "wd": jax.random.normal(k3, (hidden, Cout), jnp.float32) * 0.1,
        "bd": jnp.full((hidden,), 0.01, jnp.float32),
        "wu": jax.random.normal(k4, (Cout, hidden), jnp.float32) * 0.1,
        "bu": jnp.full((Cout,), -0.01, jnp.float32),
    }
    x = jax.random.normal(kx, (N, Cin, H, W), jnp.float32)

    fwd = jax.jit(de_adapted_block_forward, static_argnames=("K",))
    out = jax.block_until_ready(fwd(x, params, K=K))
    ref = jax.block_until_ready(reference_forward(x, params, K=K))

    assert out.shape == (N, Cout, H, W) and out.dtype == jnp.float32
    np.testing.assert_allclose(np.asarray(out), np.asarray(ref), rtol=1e-2, atol=1e-2)
    print("KERNEL_OK")
</pallas_src>

<mosaic_0001>
module attributes {stable_mosaic.version = 11 : i64} {
  func.func @_fused_block_kernel(%arg0: i32, %arg1: memref<1x4x256xf32, #tpu.memory_space<vmem>>, %arg2: memref<9x16x4xf32, #tpu.memory_space<vmem>>, %arg3: memref<9x16x16xf32, #tpu.memory_space<vmem>>, %arg4: memref<9x256x256xf32, #tpu.memory_space<vmem>>, %arg5: memref<256x256xf32, #tpu.memory_space<vmem>>, %arg6: memref<1x256xf32, #tpu.memory_space<vmem>>, %arg7: memref<256x256xf32, #tpu.memory_space<vmem>>, %arg8: memref<1x256xf32, #tpu.memory_space<vmem>>, %arg9: memref<1x16x256xf32, #tpu.memory_space<vmem>>) attributes {dimension_semantics = [#tpu.dimension_semantics<parallel>], iteration_bounds = array<i64: 2>, scalar_prefetch = 0 : i64, scratch_operands = 0 : i64, tpu.core_type = #tpu.core_type<tc>, window_params = [{transform_indices = @transform_0, window_bounds = array<i64: 1, 4, 256>}, {pipeline_mode = #tpu.pipeline_mode<synchronous>, transform_indices = @transform_1, window_bounds = array<i64: 9, 16, 4>}, {pipeline_mode = #tpu.pipeline_mode<synchronous>, transform_indices = @transform_2, window_bounds = array<i64: 9, 16, 16>}, {pipeline_mode = #tpu.pipeline_mode<synchronous>, transform_indices = @transform_3, window_bounds = array<i64: 9, 256, 256>}, {pipeline_mode = #tpu.pipeline_mode<synchronous>, transform_indices = @transform_4, window_bounds = array<i64: 256, 256>}, {pipeline_mode = #tpu.pipeline_mode<synchronous>, transform_indices = @transform_5, window_bounds = array<i64: 1, 256>}, {pipeline_mode = #tpu.pipeline_mode<synchronous>, transform_indices = @transform_6, window_bounds = array<i64: 256, 256>}, {pipeline_mode = #tpu.pipeline_mode<synchronous>, transform_indices = @transform_7, window_bounds = array<i64: 1, 256>}, {transform_indices = @transform_8, window_bounds = array<i64: 1, 16, 256>}]} {
    %c0 = arith.constant 0 : index
    %c0_0 = arith.constant 0 : index
    %c0_1 = arith.constant 0 : index
    %0 = vector.load %arg1[%c0, %c0_0, %c0_1] : memref<1x4x256xf32, #tpu.memory_space<vmem>>, vector<1x4x256xf32>
    %1 = vector.shape_cast %0 : vector<1x4x256xf32> to vector<4x256xf32>
    %cst = arith.constant 0.000000e+00 : f32
    %2 = vector.broadcast %cst : f32 to vector<16x256xf32>
    %c0_2 = arith.constant 0 : index
    %c0_3 = arith.constant 0 : index
    %c0_4 = arith.constant 0 : index
    %3 = vector.load %arg4[%c0_2, %c0_3, %c0_4] : memref<9x256x256xf32, #tpu.memory_space<vmem>>, vector<1x256x256xf32>
    %4 = vector.shape_cast %3 : vector<1x256x256xf32> to vector<256x256xf32>
    %cst_5 = arith.constant dense<0.000000e+00> : vector<4x256xf32>
    %5 = tpu.matmul %1, %4, %cst_5 {dimension_numbers = #tpu.dot_dimension_numbers<[1], [0], [0], [1], [0, 0, 1, 1], [], []>} : vector<4x256xf32>, vector<256x256xf32>, vector<4x256xf32> -> vector<4x256xf32>
    %c0_6 = arith.constant 0 : index
    %c0_7 = arith.constant 0 : index
    %c0_8 = arith.constant 0 : index
    %6 = vector.load %arg2[%c0_6, %c0_7, %c0_8] : memref<9x16x4xf32, #tpu.memory_space<vmem>>, vector<1x16x4xf32>
    %7 = vector.shape_cast %6 : vector<1x16x4xf32> to vector<16x4xf32>
    %cst_9 = arith.constant dense<0.000000e+00> : vector<16x256xf32>
    %8 = tpu.matmul %7, %5, %cst_9 {dimension_numbers = #tpu.dot_dimension_numbers<[1], [0], [0], [1], [0, 0, 1, 1], [], []>} : vector<16x4xf32>, vector<4x256xf32>, vector<16x256xf32> -> vector<16x256xf32>
    %9 = arith.addf %2, %8 : vector<16x256xf32>
    %c1 = arith.constant 1 : index
    %c0_10 = arith.constant 0 : index
    %c0_11 = arith.constant 0 : index
    %10 = vector.load %arg4[%c1, %c0_10, %c0_11] : memref<9x256x256xf32, #tpu.memory_space<vmem>>, vector<1x256x256xf32>
    %11 = vector.shape_cast %10 : vector<1x256x256xf32> to vector<256x256xf32>
    %cst_12 = arith.constant dense<0.000000e+00> : vector<4x256xf32>
    %12 = tpu.matmul %1, %11, %cst_12 {dimension_numbers = #tpu.dot_dimension_numbers<[1], [0], [0], [1], [0, 0, 1, 1], [], []>} : vector<4x256xf32>, vector<256x256xf32>, vector<4x256xf32> -> vector<4x256xf32>
    %c1_13 = arith.constant 1 : index
    %c0_14 = arith.constant 0 : index
    %c0_15 = arith.constant 0 : index
    %13 = vector.load %arg2[%c1_13, %c0_14, %c0_15] : memref<9x16x4xf32, #tpu.memory_space<vmem>>, vector<1x16x4xf32>
    %14 = vector.shape_cast %13 : vector<1x16x4xf32> to vector<16x4xf32>
    %cst_16 = arith.constant dense<0.000000e+00> : vector<16x256xf32>
    %15 = tpu.matmul %14, %12, %cst_16 {dimension_numbers = #tpu.dot_dimension_numbers<[1], [0], [0], [1], [0, 0, 1, 1], [], []>} : vector<16x4xf32>, vector<4x256xf32>, vector<16x256xf32> -> vector<16x256xf32>
    %16 = arith.addf %9, %15 : vector<16x256xf32>
    %c2 = arith.constant 2 : index
    %c0_17 = arith.constant 0 : index
    %c0_18 = arith.constant 0 : index
    %17 = vector.load %arg4[%c2, %c0_17, %c0_18] : memref<9x256x256xf32, #tpu.memory_space<vmem>>, vector<1x256x256xf32>
    %18 = vector.shape_cast %17 : vector<1x256x256xf32> to vector<256x256xf32>
    %cst_19 = arith.constant dense<0.000000e+00> : vector<4x256xf32>
    %19 = tpu.matmul %1, %18, %cst_19 {dimension_numbers = #tpu.dot_dimension_numbers<[1], [0], [0], [1], [0, 0, 1, 1], [], []>} : vector<4x256xf32>, vector<256x256xf32>, vector<4x256xf32> -> vector<4x256xf32>
    %c2_20 = arith.constant 2 : index
    %c0_21 = arith.constant 0 : index
    %c0_22 = arith.constant 0 : index
    %20 = vector.load %arg2[%c2_20, %c0_21, %c0_22] : memref<9x16x4xf32, #tpu.memory_space<vmem>>, vector<1x16x4xf32>
    %21 = vector.shape_cast %20 : vector<1x16x4xf32> to vector<16x4xf32>
    %cst_23 = arith.constant dense<0.000000e+00> : vector<16x256xf32>
    %22 = tpu.matmul %21, %19, %cst_23 {dimension_numbers = #tpu.dot_dimension_numbers<[1], [0], [0], [1], [0, 0, 1, 1], [], []>} : vector<16x4xf32>, vector<4x256xf32>, vector<16x256xf32> -> vector<16x256xf32>
    %23 = arith.addf %16, %22 : vector<16x256xf32>
    %c3 = arith.constant 3 : index
    %c0_24 = arith.constant 0 : index
    %c0_25 = arith.constant 0 : index
    %24 = vector.load %arg4[%c3, %c0_24, %c0_25] : memref<9x256x256xf32, #tpu.memory_space<vmem>>, vector<1x256x256xf32>
    %25 = vector.shape_cast %24 : vector<1x256x256xf32> to vector<256x256xf32>
    %cst_26 = arith.constant dense<0.000000e+00> : vector<4x256xf32>
    %26 = tpu.matmul %1, %25, %cst_26 {dimension_numbers = #tpu.dot_dimension_numbers<[1], [0], [0], [1], [0, 0, 1, 1], [], []>} : vector<4x256xf32>, vector<256x256xf32>, vector<4x256xf32> -> vector<4x256xf32>
    %c3_27 = arith.constant 3 : index
    %c0_28 = arith.constant 0 : index
    %c0_29 = arith.constant 0 : index
    %27 = vector.load %arg2[%c3_27, %c0_28, %c0_29] : memref<9x16x4xf32, #tpu.memory_space<vmem>>, vector<1x16x4xf32>
    %28 = vector.shape_cast %27 : vector<1x16x4xf32> to vector<16x4xf32>
    %cst_30 = arith.constant dense<0.000000e+00> : vector<16x256xf32>
    %29 = tpu.matmul %28, %26, %cst_30 {dimension_numbers = #tpu.dot_dimension_numbers<[1], [0], [0], [1], [0, 0, 1, 1], [], []>} : vector<16x4xf32>, vector<4x256xf32>, vector<16x256xf32> -> vector<16x256xf32>
    %30 = arith.addf %23, %29 : vector<16x256xf32>
    %c4 = arith.constant 4 : index
    %c0_31 = arith.constant 0 : index
    %c0_32 = arith.constant 0 : index
    %31 = vector.load %arg4[%c4, %c0_31, %c0_32] : memref<9x256x256xf32, #tpu.memory_space<vmem>>, vector<1x256x256xf32>
    %32 = vector.shape_cast %31 : vector<1x256x256xf32> to vector<256x256xf32>
    %cst_33 = arith.constant dense<0.000000e+00> : vector<4x256xf32>
    %33 = tpu.matmul %1, %32, %cst_33 {dimension_numbers = #tpu.dot_dimension_numbers<[1], [0], [0], [1], [0, 0, 1, 1], [], []>} : vector<4x256xf32>, vector<256x256xf32>, vector<4x256xf32> -> vector<4x256xf32>
    %c4_34 = arith.constant 4 : index
    %c0_35 = arith.constant 0 : index
    %c0_36 = arith.constant 0 : index
    %34 = vector.load %arg2[%c4_34, %c0_35, %c0_36] : memref<9x16x4xf32, #tpu.memory_space<vmem>>, vector<1x16x4xf32>
    %35 = vector.shape_cast %34 : vector<1x16x4xf32> to vector<16x4xf32>
    %cst_37 = arith.constant dense<0.000000e+00> : vector<16x256xf32>
    %36 = tpu.matmul %35, %33, %cst_37 {dimension_numbers = #tpu.dot_dimension_numbers<[1], [0], [0], [1], [0, 0, 1, 1], [], []>} : vector<16x4xf32>, vector<4x256xf32>, vector<16x256xf32> -> vector<16x256xf32>
    %37 = arith.addf %30, %36 : vector<16x256xf32>
    %c5 = arith.constant 5 : index
    %c0_38 = arith.constant 0 : index
    %c0_39 = arith.constant 0 : index
    %38 = vector.load %arg4[%c5, %c0_38, %c0_39] : memref<9x256x256xf32, #tpu.memory_space<vmem>>, vector<1x256x256xf32>
    %39 = vector.shape_cast %38 : vector<1x256x256xf32> to vector<256x256xf32>
    %cst_40 = arith.constant dense<0.000000e+00> : vector<4x256xf32>
    %40 = tpu.matmul %1, %39, %cst_40 {dimension_numbers = #tpu.dot_dimension_numbers<[1], [0], [0], [1], [0, 0, 1, 1], [], []>} : vector<4x256xf32>, vector<256x256xf32>, vector<4x256xf32> -> vector<4x256xf32>
    %c5_41 = arith.constant 5 : index
    %c0_42 = arith.constant 0 : index
    %c0_43 = arith.constant 0 : index
    %41 = vector.load %arg2[%c5_41, %c0_42, %c0_43] : memref<9x16x4xf32, #tpu.memory_space<vmem>>, vector<1x16x4xf32>
    %42 = vector.shape_cast %41 : vector<1x16x4xf32> to vector<16x4xf32>
    %cst_44 = arith.constant dense<0.000000e+00> : vector<16x256xf32>
    %43 = tpu.matmul %42, %40, %cst_44 {dimension_numbers = #tpu.dot_dimension_numbers<[1], [0], [0], [1], [0, 0, 1, 1], [], []>} : vector<16x4xf32>, vector<4x256xf32>, vector<16x256xf32> -> vector<16x256xf32>
    %44 = arith.addf %37, %43 : vector<16x256xf32>
    %c6 = arith.constant 6 : index
    %c0_45 = arith.constant 0 : index
    %c0_46 = arith.constant 0 : index
    %45 = vector.load %arg4[%c6, %c0_45, %c0_46] : memref<9x256x256xf32, #tpu.memory_space<vmem>>, vector<1x256x256xf32>
    %46 = vector.shape_cast %45 : vector<1x256x256xf32> to vector<256x256xf32>
    %cst_47 = arith.constant dense<0.000000e+00> : vector<4x256xf32>
    %47 = tpu.matmul %1, %46, %cst_47 {dimension_numbers = #tpu.dot_dimension_numbers<[1], [0], [0], [1], [0, 0, 1, 1], [], []>} : vector<4x256xf32>, vector<256x256xf32>, vector<4x256xf32> -> vector<4x256xf32>
    %c6_48 = arith.constant 6 : index
    %c0_49 = arith.constant 0 : index
    %c0_50 = arith.constant 0 : index
    %48 = vector.load %arg2[%c6_48, %c0_49, %c0_50] : memref<9x16x4xf32, #tpu.memory_space<vmem>>, vector<1x16x4xf32>
    %49 = vector.shape_cast %48 : vector<1x16x4xf32> to vector<16x4xf32>
    %cst_51 = arith.constant dense<0.000000e+00> : vector<16x256xf32>
    %50 = tpu.matmul %49, %47, %cst_51 {dimension_numbers = #tpu.dot_dimension_numbers<[1], [0], [0], [1], [0, 0, 1, 1], [], []>} : vector<16x4xf32>, vector<4x256xf32>, vector<16x256xf32> -> vector<16x256xf32>
    %51 = arith.addf %44, %50 : vector<16x256xf32>
    %c7 = arith.constant 7 : index
    %c0_52 = arith.constant 0 : index
    %c0_53 = arith.constant 0 : index
    %52 = vector.load %arg4[%c7, %c0_52, %c0_53] : memref<9x256x256xf32, #tpu.memory_space<vmem>>, vector<1x256x256xf32>
    %53 = vector.shape_cast %52 : vector<1x256x256xf32> to vector<256x256xf32>
    %cst_54 = arith.constant dense<0.000000e+00> : vector<4x256xf32>
    %54 = tpu.matmul %1, %53, %cst_54 {dimension_numbers = #tpu.dot_dimension_numbers<[1], [0], [0], [1], [0, 0, 1, 1], [], []>} : vector<4x256xf32>, vector<256x256xf32>, vector<4x256xf32> -> vector<4x256xf32>
    %c7_55 = arith.constant 7 : index
    %c0_56 = arith.constant 0 : index
    %c0_57 = arith.constant 0 : index
    %55 = vector.load %arg2[%c7_55, %c0_56, %c0_57] : memref<9x16x4xf32, #tpu.memory_space<vmem>>, vector<1x16x4xf32>
    %56 = vector.shape_cast %55 : vector<1x16x4xf32> to vector<16x4xf32>
    %cst_58 = arith.constant dense<0.000000e+00> : vector<16x256xf32>
    %57 = tpu.matmul %56, %54, %cst_58 {dimension_numbers = #tpu.dot_dimension_numbers<[1], [0], [0], [1], [0, 0, 1, 1], [], []>} : vector<16x4xf32>, vector<4x256xf32>, vector<16x256xf32> -> vector<16x256xf32>
    %58 = arith.addf %51, %57 : vector<16x256xf32>
    %c8 = arith.constant 8 : index
    %c0_59 = arith.constant 0 : index
    %c0_60 = arith.constant 0 : index
    %59 = vector.load %arg4[%c8, %c0_59, %c0_60] : memref<9x256x256xf32, #tpu.memory_space<vmem>>, vector<1x256x256xf32>
    %60 = vector.shape_cast %59 : vector<1x256x256xf32> to vector<256x256xf32>
    %cst_61 = arith.constant dense<0.000000e+00> : vector<4x256xf32>
    %61 = tpu.matmul %1, %60, %cst_61 {dimension_numbers = #tpu.dot_dimension_numbers<[1], [0], [0], [1], [0, 0, 1, 1], [], []>} : vector<4x256xf32>, vector<256x256xf32>, vector<4x256xf32> -> vector<4x256xf32>
    %c8_62 = arith.constant 8 : index
    %c0_63 = arith.constant 0 : index
    %c0_64 = arith.constant 0 : index
    %62 = vector.load %arg2[%c8_62, %c0_63, %c0_64] : memref<9x16x4xf32, #tpu.memory_space<vmem>>, vector<1x16x4xf32>
    %63 = vector.shape_cast %62 : vector<1x16x4xf32> to vector<16x4xf32>
    %cst_65 = arith.constant dense<0.000000e+00> : vector<16x256xf32>
    %64 = tpu.matmul %63, %61, %cst_65 {dimension_numbers = #tpu.dot_dimension_numbers<[1], [0], [0], [1], [0, 0, 1, 1], [], []>} : vector<16x4xf32>, vector<4x256xf32>, vector<16x256xf32> -> vector<16x256xf32>
    %65 = arith.addf %58, %64 : vector<16x256xf32>
    %cst_66 = arith.constant dense<0.000000e+00> : vector<16xf32>
    %66 = vector.multi_reduction <add>, %65, %cst_66 [1] : vector<16x256xf32> to vector<16xf32>
    %67 = vector.shape_cast %66 : vector<16xf32> to vector<16x1xf32>
    %cst_67 = arith.constant 2.560000e+02 : f32
    %68 = vector.broadcast %cst_67 : f32 to vector<16x1xf32>
    %69 = arith.divf %67, %68 : vector<16x1xf32>
    %70 = vector.broadcast %69 : vector<16x1xf32> to vector<16x256xf32>
    %71 = arith.subf %65, %70 : vector<16x256xf32>
    %72 = arith.mulf %71, %71 : vector<16x256xf32>
    %cst_68 = arith.constant dense<0.000000e+00> : vector<16xf32>
    %73 = vector.multi_reduction <add>, %72, %cst_68 [1] : vector<16x256xf32> to vector<16xf32>
    %74 = vector.shape_cast %73 : vector<16xf32> to vector<16x1xf32>
    %cst_69 = arith.constant 2.560000e+02 : f32
    %75 = vector.broadcast %cst_69 : f32 to vector<16x1xf32>
    %76 = arith.divf %74, %75 : vector<16x1xf32>
    %cst_70 = arith.constant 9.99999974E-6 : f32
    %77 = vector.broadcast %cst_70 : f32 to vector<16x1xf32>
    %78 = arith.addf %76, %77 : vector<16x1xf32>
    %79 = math.rsqrt %78 : vector<16x1xf32>
    %80 = vector.broadcast %79 : vector<16x1xf32> to vector<16x256xf32>
    %81 = arith.mulf %71, %80 : vector<16x256xf32>
    %cst_71 = arith.constant 0.000000e+00 : f32
    %82 = vector.broadcast %cst_71 : f32 to vector<16x256xf32>
    %83 = arith.cmpf oge, %81, %82 : vector<16x256xf32>
    %cst_72 = arith.constant 0.00999999977 : f32
    %84 = vector.broadcast %cst_72 : f32 to vector<16x256xf32>
    %85 = arith.mulf %84, %81 : vector<16x256xf32>
    %86 = arith.select %83, %81, %85 : vector<16x256xi1>, vector<16x256xf32>
    %cst_73 = arith.constant 0.000000e+00 : f32
    %87 = vector.broadcast %cst_73 : f32 to vector<16x256xf32>
    %c0_74 = arith.constant 0 : index
    %c0_75 = arith.constant 0 : index
    %c0_76 = arith.constant 0 : index
    %88 = vector.load %arg4[%c0_74, %c0_75, %c0_76] : memref<9x256x256xf32, #tpu.memory_space<vmem>>, vector<1x256x256xf32>
    %89 = vector.shape_cast %88 : vector<1x256x256xf32> to vector<256x256xf32>
    %cst_77 = arith.constant dense<0.000000e+00> : vector<16x256xf32>
    %90 = tpu.matmul %86, %89, %cst_77 {dimension_numbers = #tpu.dot_dimension_numbers<[1], [0], [0], [1], [0, 0, 1, 1], [], []>} : vector<16x256xf32>, vector<256x256xf32>, vector<16x256xf32> -> vector<16x256xf32>
    %c0_78 = arith.constant 0 : index
    %c0_79 = arith.constant 0 : index
    %c0_80 = arith.constant 0 : index
    %91 = vector.load %arg3[%c0_78, %c0_79, %c0_80] : memref<9x16x16xf32, #tpu.memory_space<vmem>>, vector<1x16x16xf32>
    %92 = vector.shape_cast %91 : vector<1x16x16xf32> to vector<16x16xf32>
    %cst_81 = arith.constant dense<0.000000e+00> : vector<16x256xf32>
    %93 = tpu.matmul %92, %90, %cst_81 {dimension_numbers = #tpu.dot_dimension_numbers<[1], [0], [0], [1], [0, 0, 1, 1], [], []>} : vector<16x16xf32>, vector<16x256xf32>, vector<16x256xf32> -> vector<16x256xf32>
    %94 = arith.addf %87, %93 : vector<16x256xf32>
    %c1_82 = arith.constant 1 : index
    %c0_83 = arith.constant 0 : index
    %c0_84 = arith.constant 0 : index
    %95 = vector.load %arg4[%c1_82, %c0_83, %c0_84] : memref<9x256x256xf32, #tpu.memory_space<vmem>>, vector<1x256x256xf32>
    %96 = vector.shape_cast %95 : vector<1x256x256xf32> to vector<256x256xf32>
    %cst_85 = arith.constant dense<0.000000e+00> : vector<16x256xf32>
    %97 = tpu.matmul %86, %96, %cst_85 {dimension_numbers = #tpu.dot_dimension_numbers<[1], [0], [0], [1], [0, 0, 1, 1], [], []>} : vector<16x256xf32>, vector<256x256xf32>, vector<16x256xf32> -> vector<16x256xf32>
    %c1_86 = arith.constant 1 : index
    %c0_87 = arith.constant 0 : index
    %c0_88 = arith.constant 0 : index
    %98 = vector.load %arg3[%c1_86, %c0_87, %c0_88] : memref<9x16x16xf32, #tpu.memory_space<vmem>>, vector<1x16x16xf32>
    %99 = vector.shape_cast %98 : vector<1x16x16xf32> to vector<16x16xf32>
    %cst_89 = arith.constant dense<0.000000e+00> : vector<16x256xf32>
    %100 = tpu.matmul %99, %97, %cst_89 {dimension_numbers = #tpu.dot_dimension_numbers<[1], [0], [0], [1], [0, 0, 1, 1], [], []>} : vector<16x16xf32>, vector<16x256xf32>, vector<16x256xf32> -> vector<16x256xf32>
    %101 = arith.addf %94, %100 : vector<16x256xf32>
    %c2_90 = arith.constant 2 : index
    %c0_91 = arith.constant 0 : index
    %c0_92 = arith.constant 0 : index
    %102 = vector.load %arg4[%c2_90, %c0_91, %c0_92] : memref<9x256x256xf32, #tpu.memory_space<vmem>>, vector<1x256x256xf32>
    %103 = vector.shape_cast %102 : vector<1x256x256xf32> to vector<256x256xf32>
    %cst_93 = arith.constant dense<0.000000e+00> : vector<16x256xf32>
    %104 = tpu.matmul %86, %103, %cst_93 {dimension_numbers = #tpu.dot_dimension_numbers<[1], [0], [0], [1], [0, 0, 1, 1], [], []>} : vector<16x256xf32>, vector<256x256xf32>, vector<16x256xf32> -> vector<16x256xf32>
    %c2_94 = arith.constant 2 : index
    %c0_95 = arith.constant 0 : index
    %c0_96 = arith.constant 0 : index
    %105 = vector.load %arg3[%c2_94, %c0_95, %c0_96] : memref<9x16x16xf32, #tpu.memory_space<vmem>>, vector<1x16x16xf32>
    %106 = vector.shape_cast %105 : vector<1x16x16xf32> to vector<16x16xf32>
    %cst_97 = arith.constant dense<0.000000e+00> : vector<16x256xf32>
    %107 = tpu.matmul %106, %104, %cst_97 {dimension_numbers = #tpu.dot_dimension_numbers<[1], [0], [0], [1], [0, 0, 1, 1], [], []>} : vector<16x16xf32>, vector<16x256xf32>, vector<16x256xf32> -> vector<16x256xf32>
    %108 = arith.addf %101, %107 : vector<16x256xf32>
    %c3_98 = arith.constant 3 : index
    %c0_99 = arith.constant 0 : index
    %c0_100 = arith.constant 0 : index
    %109 = vector.load %arg4[%c3_98, %c0_99, %c0_100] : memref<9x256x256xf32, #tpu.memory_space<vmem>>, vector<1x256x256xf32>
    %110 = vector.shape_cast %109 : vector<1x256x256xf32> to vector<256x256xf32>
    %cst_101 = arith.constant dense<0.000000e+00> : vector<16x256xf32>
    %111 = tpu.matmul %86, %110, %cst_101 {dimension_numbers = #tpu.dot_dimension_numbers<[1], [0], [0], [1], [0, 0, 1, 1], [], []>} : vector<16x256xf32>, vector<256x256xf32>, vector<16x256xf32> -> vector<16x256xf32>
    %c3_102 = arith.constant 3 : index
    %c0_103 = arith.constant 0 : index
    %c0_104 = arith.constant 0 : index
    %112 = vector.load %arg3[%c3_102, %c0_103, %c0_104] : memref<9x16x16xf32, #tpu.memory_space<vmem>>, vector<1x16x16xf32>
    %113 = vector.shape_cast %112 : vector<1x16x16xf32> to vector<16x16xf32>
    %cst_105 = arith.constant dense<0.000000e+00> : vector<16x256xf32>
    %114 = tpu.matmul %113, %111, %cst_105 {dimension_numbers = #tpu.dot_dimension_numbers<[1], [0], [0], [1], [0, 0, 1, 1], [], []>} : vector<16x16xf32>, vector<16x256xf32>, vector<16x256xf32> -> vector<16x256xf32>
    %115 = arith.addf %108, %114 : vector<16x256xf32>
    %c4_106 = arith.constant 4 : index
    %c0_107 = arith.constant 0 : index
    %c0_108 = arith.constant 0 : index
    %116 = vector.load %arg4[%c4_106, %c0_107, %c0_108] : memref<9x256x256xf32, #tpu.memory_space<vmem>>, vector<1x256x256xf32>
    %117 = vector.shape_cast %116 : vector<1x256x256xf32> to vector<256x256xf32>
    %cst_109 = arith.constant dense<0.000000e+00> : vector<16x256xf32>
    %118 = tpu.matmul %86, %117, %cst_109 {dimension_numbers = #tpu.dot_dimension_numbers<[1], [0], [0], [1], [0, 0, 1, 1], [], []>} : vector<16x256xf32>, vector<256x256xf32>, vector<16x256xf32> -> vector<16x256xf32>
    %c4_110 = arith.constant 4 : index
    %c0_111 = arith.constant 0 : index
    %c0_112 = arith.constant 0 : index
    %119 = vector.load %arg3[%c4_110, %c0_111, %c0_112] : memref<9x16x16xf32, #tpu.memory_space<vmem>>, vector<1x16x16xf32>
    %120 = vector.shape_cast %119 : vector<1x16x16xf32> to vector<16x16xf32>
    %cst_113 = arith.constant dense<0.000000e+00> : vector<16x256xf32>
    %121 = tpu.matmul %120, %118, %cst_113 {dimension_numbers = #tpu.dot_dimension_numbers<[1], [0], [0], [1], [0, 0, 1, 1], [], []>} : vector<16x16xf32>, vector<16x256xf32>, vector<16x256xf32> -> vector<16x256xf32>
    %122 = arith.addf %115, %121 : vector<16x256xf32>
    %c5_114 = arith.constant 5 : index
    %c0_115 = arith.constant 0 : index
    %c0_116 = arith.constant 0 : index
    %123 = vector.load %arg4[%c5_114, %c0_115, %c0_116] : memref<9x256x256xf32, #tpu.memory_space<vmem>>, vector<1x256x256xf32>
    %124 = vector.shape_cast %123 : vector<1x256x256xf32> to vector<256x256xf32>
    %cst_117 = arith.constant dense<0.000000e+00> : vector<16x256xf32>
    %125 = tpu.matmul %86, %124, %cst_117 {dimension_numbers = #tpu.dot_dimension_numbers<[1], [0], [0], [1], [0, 0, 1, 1], [], []>} : vector<16x256xf32>, vector<256x256xf32>, vector<16x256xf32> -> vector<16x256xf32>
    %c5_118 = arith.constant 5 : index
    %c0_119 = arith.constant 0 : index
    %c0_120 = arith.constant 0 : index
    %126 = vector.load %arg3[%c5_118, %c0_119, %c0_120] : memref<9x16x16xf32, #tpu.memory_space<vmem>>, vector<1x16x16xf32>
    %127 = vector.shape_cast %126 : vector<1x16x16xf32> to vector<16x16xf32>
    %cst_121 = arith.constant dense<0.000000e+00> : vector<16x256xf32>
    %128 = tpu.matmul %127, %125, %cst_121 {dimension_numbers = #tpu.dot_dimension_numbers<[1], [0], [0], [1], [0, 0, 1, 1], [], []>} : vector<16x16xf32>, vector<16x256xf32>, vector<16x256xf32> -> vector<16x256xf32>
    %129 = arith.addf %122, %128 : vector<16x256xf32>
    %c6_122 = arith.constant 6 : index
    %c0_123 = arith.constant 0 : index
    %c0_124 = arith.constant 0 : index
    %130 = vector.load %arg4[%c6_122, %c0_123, %c0_124] : memref<9x256x256xf32, #tpu.memory_space<vmem>>, vector<1x256x256xf32>
    %131 = vector.shape_cast %130 : vector<1x256x256xf32> to vector<256x256xf32>
    %cst_125 = arith.constant dense<0.000000e+00> : vector<16x256xf32>
    %132 = tpu.matmul %86, %131, %cst_125 {dimension_numbers = #tpu.dot_dimension_numbers<[1], [0], [0], [1], [0, 0, 1, 1], [], []>} : vector<16x256xf32>, vector<256x256xf32>, vector<16x256xf32> -> vector<16x256xf32>
    %c6_126 = arith.constant 6 : index
    %c0_127 = arith.constant 0 : index
    %c0_128 = arith.constant 0 : index
    %133 = vector.load %arg3[%c6_126, %c0_127, %c0_128] : memref<9x16x16xf32, #tpu.memory_space<vmem>>, vector<1x16x16xf32>
    %134 = vector.shape_cast %133 : vector<1x16x16xf32> to vector<16x16xf32>
    %cst_129 = arith.constant dense<0.000000e+00> : vector<16x256xf32>
    %135 = tpu.matmul %134, %132, %cst_129 {dimension_numbers = #tpu.dot_dimension_numbers<[1], [0], [0], [1], [0, 0, 1, 1], [], []>} : vector<16x16xf32>, vector<16x256xf32>, vector<16x256xf32> -> vector<16x256xf32>
    %136 = arith.addf %129, %135 : vector<16x256xf32>
    %c7_130 = arith.constant 7 : index
    %c0_131 = arith.constant 0 : index
    %c0_132 = arith.constant 0 : index
    %137 = vector.load %arg4[%c7_130, %c0_131, %c0_132] : memref<9x256x256xf32, #tpu.memory_space<vmem>>, vector<1x256x256xf32>
    %138 = vector.shape_cast %137 : vector<1x256x256xf32> to vector<256x256xf32>
    %cst_133 = arith.constant dense<0.000000e+00> : vector<16x256xf32>
    %139 = tpu.matmul %86, %138, %cst_133 {dimension_numbers = #tpu.dot_dimension_numbers<[1], [0], [0], [1], [0, 0, 1, 1], [], []>} : vector<16x256xf32>, vector<256x256xf32>, vector<16x256xf32> -> vector<16x256xf32>
    %c7_134 = arith.constant 7 : index
    %c0_135 = arith.constant 0 : index
    %c0_136 = arith.constant 0 : index
    %140 = vector.load %arg3[%c7_134, %c0_135, %c0_136] : memref<9x16x16xf32, #tpu.memory_space<vmem>>, vector<1x16x16xf32>
    %141 = vector.shape_cast %140 : vector<1x16x16xf32> to vector<16x16xf32>
    %cst_137 = arith.constant dense<0.000000e+00> : vector<16x256xf32>
    %142 = tpu.matmul %141, %139, %cst_137 {dimension_numbers = #tpu.dot_dimension_numbers<[1], [0], [0], [1], [0, 0, 1, 1], [], []>} : vector<16x16xf32>, vector<16x256xf32>, vector<16x256xf32> -> vector<16x256xf32>
    %143 = arith.addf %136, %142 : vector<16x256xf32>
    %c8_138 = arith.constant 8 : index
    %c0_139 = arith.constant 0 : index
    %c0_140 = arith.constant 0 : index
    %144 = vector.load %arg4[%c8_138, %c0_139, %c0_140] : memref<9x256x256xf32, #tpu.memory_space<vmem>>, vector<1x256x256xf32>
    %145 = vector.shape_cast %144 : vector<1x256x256xf32> to vector<256x256xf32>
    %cst_141 = arith.constant dense<0.000000e+00> : vector<16x256xf32>
    %146 = tpu.matmul %86, %145, %cst_141 {dimension_numbers = #tpu.dot_dimension_numbers<[1], [0], [0], [1], [0, 0, 1, 1], [], []>} : vector<16x256xf32>, vector<256x256xf32>, vector<16x256xf32> -> vector<16x256xf32>
    %c8_142 = arith.constant 8 : index
    %c0_143 = arith.constant 0 : index
    %c0_144 = arith.constant 0 : index
    %147 = vector.load %arg3[%c8_142, %c0_143, %c0_144] : memref<9x16x16xf32, #tpu.memory_space<vmem>>, vector<1x16x16xf32>
    %148 = vector.shape_cast %147 : vector<1x16x16xf32> to vector<16x16xf32>
    %cst_145 = arith.constant dense<0.000000e+00> : vector<16x256xf32>
    %149 = tpu.matmul %148, %146, %cst_145 {dimension_numbers = #tpu.dot_dimension_numbers<[1], [0], [0], [1], [0, 0, 1, 1], [], []>} : vector<16x16xf32>, vector<16x256xf32>, vector<16x256xf32> -> vector<16x256xf32>
    %150 = arith.addf %143, %149 : vector<16x256xf32>
    %cst_146 = arith.constant dense<0.000000e+00> : vector<16xf32>
    %151 = vector.multi_reduction <add>, %150, %cst_146 [1] : vector<16x256xf32> to vector<16xf32>
    %152 = vector.shape_cast %151 : vector<16xf32> to vector<16x1xf32>
    %cst_147 = arith.constant 2.560000e+02 : f32
    %153 = vector.broadcast %cst_147 : f32 to vector<16x1xf32>
    %154 = arith.divf %152, %153 : vector<16x1xf32>
    %155 = vector.broadcast %154 : vector<16x1xf32> to vector<16x256xf32>
    %156 = arith.subf %150, %155 : vector<16x256xf32>
    %157 = arith.mulf %156, %156 : vector<16x256xf32>
    %cst_148 = arith.constant dense<0.000000e+00> : vector<16xf32>
    %158 = vector.multi_reduction <add>, %157, %cst_148 [1] : vector<16x256xf32> to vector<16xf32>
    %159 = vector.shape_cast %158 : vector<16xf32> to vector<16x1xf32>
    %cst_149 = arith.constant 2.560000e+02 : f32
    %160 = vector.broadcast %cst_149 : f32 to vector<16x1xf32>
    %161 = arith.divf %159, %160 : vector<16x1xf32>
    %cst_150 = arith.constant 9.99999974E-6 : f32
    %162 = vector.broadcast %cst_150 : f32 to vector<16x1xf32>
    %163 = arith.addf %161, %162 : vector<16x1xf32>
    %164 = math.rsqrt %163 : vector<16x1xf32>
    %165 = vector.broadcast %164 : vector<16x1xf32> to vector<16x256xf32>
    %166 = arith.mulf %156, %165 : vector<16x256xf32>
    %c0_151 = arith.constant 0 : index
    %c0_152 = arith.constant 0 : index
    %167 = vector.load %arg5[%c0_151, %c0_152] : memref<256x256xf32, #tpu.memory_space<vmem>>, vector<256x256xf32>
    %cst_153 = arith.constant dense<0.000000e+00> : vector<16x256xf32>
    %168 = tpu.matmul %166, %167, %cst_153 {dimension_numbers = #tpu.dot_dimension_numbers<[1], [0], [0], [1], [0, 0, 1, 1], [], []>} : vector<16x256xf32>, vector<256x256xf32>, vector<16x256xf32> -> vector<16x256xf32>
    %c0_154 = arith.constant 0 : index
    %c0_155 = arith.constant 0 : index
    %169 = vector.load %arg6[%c0_154, %c0_155] : memref<1x256xf32, #tpu.memory_space<vmem>>, vector<1x256xf32>
    %170 = vector.broadcast %169 : vector<1x256xf32> to vector<16x256xf32>
    %171 = arith.addf %168, %170 : vector<16x256xf32>
    %cst_156 = arith.constant 5.000000e-01 : f32
    %172 = vector.broadcast %cst_156 : f32 to vector<16x256xf32>
    %173 = arith.mulf %172, %171 : vector<16x256xf32>
    %cst_157 = arith.constant 0.707106769 : f32
    %174 = vector.broadcast %cst_157 : f32 to vector<16x256xf32>
    %175 = arith.mulf %171, %174 : vector<16x256xf32>
    %cst_158 = arith.constant 0.000000e+00 : f32
    %176 = vector.broadcast %cst_158 : f32 to vector<16x256xf32>
    %177 = arith.cmpf oge, %175, %176 : vector<16x256xf32>
    %cst_159 = arith.constant 1.000000e+00 : f32
    %cst_160 = arith.constant -1.000000e+00 : f32
    %178 = vector.broadcast %cst_159 : f32 to vector<16x256xf32>
    %179 = vector.broadcast %cst_160 : f32 to vector<16x256xf32>
    %180 = arith.select %177, %178, %179 : vector<16x256xi1>, vector<16x256xf32>
    %181 = math.absf %175 : vector<16x256xf32>
    %cst_161 = arith.constant 0.327591091 : f32
    %182 = vector.broadcast %cst_161 : f32 to vector<16x256xf32>
    %183 = arith.mulf %182, %181 : vector<16x256xf32>
    %cst_162 = arith.constant 1.000000e+00 : f32
    %184 = vector.broadcast %cst_162 : f32 to vector<16x256xf32>
    %185 = arith.addf %184, %183 : vector<16x256xf32>
    %cst_163 = arith.constant 1.000000e+00 : f32
    %186 = vector.broadcast %cst_163 : f32 to vector<16x256xf32>
    %187 = arith.divf %186, %185 : vector<16x256xf32>
    %cst_164 = arith.constant 1.06140542 : f32
    %188 = vector.broadcast %cst_164 : f32 to vector<16x256xf32>
    %189 = arith.mulf %188, %187 : vector<16x256xf32>
    %cst_165 = arith.constant -1.45315206 : f32
    %190 = vector.broadcast %cst_165 : f32 to vector<16x256xf32>
    %191 = arith.addf %189, %190 : vector<16x256xf32>
    %192 = arith.mulf %191, %187 : vector<16x256xf32>
    %cst_166 = arith.constant 1.42141378 : f32
    %193 = vector.broadcast %cst_166 : f32 to vector<16x256xf32>
    %194 = arith.addf %192, %193 : vector<16x256xf32>
    %195 = arith.mulf %194, %187 : vector<16x256xf32>
    %cst_167 = arith.constant -0.284496725 : f32
    %196 = vector.broadcast %cst_167 : f32 to vector<16x256xf32>
    %197 = arith.addf %195, %196 : vector<16x256xf32>
    %198 = arith.mulf %197, %187 : vector<16x256xf32>
    %cst_168 = arith.constant 0.254829586 : f32
    %199 = vector.broadcast %cst_168 : f32 to vector<16x256xf32>
    %200 = arith.addf %198, %199 : vector<16x256xf32>
    %201 = arith.mulf %200, %187 : vector<16x256xf32>
    %cst_169 = arith.constant 0.000000e+00 : f32
    %202 = vector.broadcast %cst_169 : f32 to vector<16x256xf32>
    %203 = arith.subf %202, %181 : vector<16x256xf32>
    %204 = arith.mulf %203, %181 : vector<16x256xf32>
    %205 = math.exp %204 : vector<16x256xf32>
    %206 = arith.mulf %201, %205 : vector<16x256xf32>
    %cst_170 = arith.constant 1.000000e+00 : f32
    %207 = vector.broadcast %cst_170 : f32 to vector<16x256xf32>
    %208 = arith.subf %207, %206 : vector<16x256xf32>
    %209 = arith.mulf %180, %208 : vector<16x256xf32>
    %cst_171 = arith.constant 1.000000e+00 : f32
    %210 = vector.broadcast %cst_171 : f32 to vector<16x256xf32>
    %211 = arith.addf %210, %209 : vector<16x256xf32>
    %212 = arith.mulf %173, %211 : vector<16x256xf32>
    %c0_172 = arith.constant 0 : index
    %c0_173 = arith.constant 0 : index
    %213 = vector.load %arg7[%c0_172, %c0_173] : memref<256x256xf32, #tpu.memory_space<vmem>>, vector<256x256xf32>
    %cst_174 = arith.constant dense<0.000000e+00> : vector<16x256xf32>
    %214 = tpu.matmul %212, %213, %cst_174 {dimension_numbers = #tpu.dot_dimension_numbers<[1], [0], [0], [1], [0, 0, 1, 1], [], []>} : vector<16x256xf32>, vector<256x256xf32>, vector<16x256xf32> -> vector<16x256xf32>
    %c0_175 = arith.constant 0 : index
    %c0_176 = arith.constant 0 : index
    %215 = vector.load %arg8[%c0_175, %c0_176] : memref<1x256xf32, #tpu.memory_space<vmem>>, vector<1x256xf32>
    %216 = vector.broadcast %215 : vector<1x256xf32> to vector<16x256xf32>
    %217 = arith.addf %214, %216 : vector<16x256xf32>
    %218 = arith.addf %217, %166 : vector<16x256xf32>
    %cst_177 = arith.constant 0.000000e+00 : f32
    %219 = vector.broadcast %cst_177 : f32 to vector<16x256xf32>
    %220 = arith.cmpf oge, %218, %219 : vector<16x256xf32>
    %cst_178 = arith.constant 0.00999999977 : f32
    %221 = vector.broadcast %cst_178 : f32 to vector<16x256xf32>
    %222 = arith.mulf %221, %218 : vector<16x256xf32>
    %223 = arith.select %220, %218, %222 : vector<16x256xi1>, vector<16x256xf32>
    %c0_179 = arith.constant 0 : index
    %c0_180 = arith.constant 0 : index
    %c0_181 = arith.constant 0 : index
    %224 = vector.load %arg9[%c0_179, %c0_180, %c0_181] : memref<1x16x256xf32, #tpu.memory_space<vmem>>, vector<1x16x256xf32>
    %225 = vector.shape_cast %224 : vector<1x16x256xf32> to vector<16x256xf32>
    %226 = vector.shape_cast %223 : vector<16x256xf32> to vector<1x16x256xf32>
    tpu.vector_store %arg9[%c0_179, %c0_180, %c0_181], %226 {strides = array<i32>} : memref<1x16x256xf32, #tpu.memory_space<vmem>>, vector<1x16x256xf32>,
    return
  }
  func.func @transform_0(%arg0: i32) -> (i32, i32, i32) {
    %c0_i32 = arith.constant 0 : i32
    %c0_i32_0 = arith.constant 0 : i32
    %c0_i32_1 = arith.constant 0 : i32
    return %arg0, %c0_i32, %c0_i32_0 : i32, i32, i32
  }
  func.func @transform_1(%arg0: i32) -> (i32, i32, i32) {
    %c0_i32 = arith.constant 0 : i32
    %c0_i32_0 = arith.constant 0 : i32
    %c0_i32_1 = arith.constant 0 : i32
    %c0_i32_2 = arith.constant 0 : i32
    return %c0_i32, %c0_i32_0, %c0_i32_1 : i32, i32, i32
  }
  func.func @transform_2(%arg0: i32) -> (i32, i32, i32) {
    %c0_i32 = arith.constant 0 : i32
    %c0_i32_0 = arith.constant 0 : i32
    %c0_i32_1 = arith.constant 0 : i32
    %c0_i32_2 = arith.constant 0 : i32
    return %c0_i32, %c0_i32_0, %c0_i32_1 : i32, i32, i32
  }
  func.func @transform_3(%arg0: i32) -> (i32, i32, i32) {
    %c0_i32 = arith.constant 0 : i32
    %c0_i32_0 = arith.constant 0 : i32
    %c0_i32_1 = arith.constant 0 : i32
    %c0_i32_2 = arith.constant 0 : i32
    return %c0_i32, %c0_i32_0, %c0_i32_1 : i32, i32, i32
  }
  func.func @transform_4(%arg0: i32) -> (i32, i32) {
    %c0_i32 = arith.constant 0 : i32
    %c0_i32_0 = arith.constant 0 : i32
    %c0_i32_1 = arith.constant 0 : i32
    return %c0_i32, %c0_i32_0 : i32, i32
  }
  func.func @transform_5(%arg0: i32) -> (i32, i32) {
    %c0_i32 = arith.constant 0 : i32
    %c0_i32_0 = arith.constant 0 : i32
    %c0_i32_1 = arith.constant 0 : i32
    return %c0_i32, %c0_i32_0 : i32, i32
  }
  func.func @transform_6(%arg0: i32) -> (i32, i32) {
    %c0_i32 = arith.constant 0 : i32
    %c0_i32_0 = arith.constant 0 : i32
    %c0_i32_1 = arith.constant 0 : i32
    return %c0_i32, %c0_i32_0 : i32, i32
  }
  func.func @transform_7(%arg0: i32) -> (i32, i32) {
    %c0_i32 = arith.constant 0 : i32
    %c0_i32_0 = arith.constant 0 : i32
    %c0_i32_1 = arith.constant 0 : i32
    return %c0_i32, %c0_i32_0 : i32, i32
  }
  func.func @transform_8(%arg0: i32) -> (i32, i32, i32) {
    %c0_i32 = arith.constant 0 : i32
    %c0_i32_0 = arith.constant 0 : i32
    %c0_i32_1 = arith.constant 0 : i32
    return %arg0, %c0_i32, %c0_i32_0 : i32, i32, i32
  }
}

</mosaic_0001>

<bundles_post_ra>
// kernel: tile.13
= control target key start
LH: loop header
LB: loop body
LE: loop exit
PB: predicated region body
PF: predicated region fallthrough
CT: control target
= control target key end

     0   :  { %s28_s0 = inlined_call_operand.vmem [shape: f32[16], index: 0, kind: input, shape index: {}]   ;;  %s29_s1 = inlined_call_operand.vmem [shape: f32[16,16], index: 1, kind: output, shape index: {}]  }
   0x1   :  { %v4_v0 = vld [vmem:[%s28_s0] ss:$0 sm:$0xff] }
   0x2   :  { %5 = vst [vmem:[%s29_s1] sm:$0xff] %v4_v0 }
   0x3   :  { %8 = vst [vmem:[%s29_s1 + $0x8] sm:$0xff] %v4_v0 }

// kernel: tile.14
= control target key start
LH: loop header
LB: loop body
LE: loop exit
PB: predicated region body
PF: predicated region fallthrough
CT: control target
= control target key end

     0   :  { %s7_s6 = smov 3  ;;  %s21_s9 = smov 3  ;;  %vm4_vm0 = vcmask 130048   ;;  %vm11_vm1 = vcmask 1048448   ;;  %vm18_vm2 = vcmask 917248   ;;  %vm25_vm3 = vcmask 786048   ;;  %s129_s0 = inlined_call_operand.vmem [shape: f32[16,16], index: 0, kind: input, shape index: {}]   ;;  %s130_s1 = inlined_call_operand.vmem [shape: f32[1,256], index: 1, kind: output, shape index: {}]  }
   0x1   :  { %v67_v0 = vld [vmem:[%s129_s0 + $0x7] ss:$8 sm:%s7_s6]   ;;  %s82_s10 = smov 112   ;;  %v69_v1 = vld [vmem:[%s129_s0 + $0x5] ss:$8 sm:%s21_s9]   ;;  %s83_s13 = smov 80  }
   0x2   :  { %9 = vrot.lane.b32.xlu0 %v67_v0, %s82_s10  ;;  %23 = vrot.lane.b32.xlu1 %v69_v1, %s83_s13  ;;  %s14_s14 = smov 3  ;;  %s28_s15 = smov 3  ;;  %vm32_vm4 = vcmask 654848   ;;  %vm39_vm5 = vcmask 523648   ;;  %vm46_vm6 = vcmask 392448   ;;  %vm53_vm7 = vcmask 261248  }
   0x3   :  { %s35_s16 = smov 3  ;;  %v68_v3 = vld [vmem:[%s129_s0 + $0x6] ss:$8 sm:%s14_s14]   ;;  %s84_s21 = smov 48   ;;  %v70_v4 = vld [vmem:[%s129_s0 + $0x4] ss:$8 sm:%s28_s15]  }
   0x4   :  { %v71_v2 = vld [vmem:[%s129_s0 + $0x3] ss:$8 sm:%s35_s16]   ;;  %s42_s24 = smov 3  ;;  %s85_s25 = smov 96  }
   0x5   :  { %37 = vrot.lane.b32.xlu2 %v71_v2, %s84_s21  ;;  %s86_s26 = smov 64   ;;  %s49_s27 = smov 3  ;;  %v72_v5 = vld [vmem:[%s129_s0 + $0x2] ss:$8 sm:%s42_s24]  }
   0x6   :  { %v73_v6 = vld [vmem:[%s129_s0 + $0x1] ss:$8 sm:%s49_s27]   ;;  %s87_s3 = smov 32   ;;  %s88_s4 = smov 16  }
   0x7   :  { %s2_s5 = smov 3 }
   0x8   :  { %v3_v7 = vld [vmem:[%s129_s0] ss:$8 sm:%s2_s5]  }
   0x9   :  { %5 = vst.msk [vmem:[#allocation0] ss:$8 sm:$0x3] %vm4_vm0, %v3_v7  }
   0xa   :  { %16 = vrot.lane.b32.xlu0 %v68_v3, %s85_s25  ;;  %30 = vrot.lane.b32.xlu1 %v70_v4, %s86_s26 }
   0xd   :  { %44 = vrot.lane.b32.xlu2 %v72_v5, %s87_s3 }
  0x12   :  { %51 = vrot.lane.b32.xlu0 %v73_v6, %s88_s4 }
  0x5f   :  { %v38_v8 = vpop.permute.xlu2 %37  }
  0x67   :  { %v45_v9 = vpop.permute.xlu2 %44  }
  0x74   :  { %v10_v10 = vpop.permute.xlu0 %9   ;;  %v24_v11 = vpop.permute.xlu1 %23  }
  0x75   :  { %12 = vst.msk [vmem:[#allocation0] ss:$8 sm:$0x3] %vm11_vm1, %v10_v10  }
  0x7c   :  { %v17_v12 = vpop.permute.xlu0 %16   ;;  %v31_v13 = vpop.permute.xlu1 %30  }
  0x7d   :  { %19 = vst.msk [vmem:[#allocation0] ss:$8 sm:$0x3] %vm18_vm2, %v17_v12  }
  0x7e   :  { %26 = vst.msk [vmem:[#allocation0] ss:$8 sm:$0x3] %vm25_vm3, %v24_v11  }
  0x7f   :  { %33 = vst.msk [vmem:[#allocation0] ss:$8 sm:$0x3] %vm32_vm4, %v31_v13  }
  0x80   :  { %40 = vst.msk [vmem:[#allocation0] ss:$8 sm:$0x3] %vm39_vm5, %v38_v8  }
  0x81   :  { %47 = vst.msk [vmem:[#allocation0] ss:$8 sm:$0x3] %vm46_vm6, %v45_v9  }
  0x84   :  { %v52_v14 = vpop.permute.xlu0 %51  }
  0x85   :  { %54 = vst.msk [vmem:[#allocation0] ss:$8 sm:$0x3] %vm53_vm7, %v52_v14  }
  0x8c   :  { %v57_v15 = vld [vmem:[#allocation0] sm:$0x1]  ;;  %v62_v16 = vld [vmem:[#allocation0 + $0x8] sm:$0x1] }
  0x8d   :  { %60 = vst [vmem:[%s130_s1] sm:$0x1] %v57_v15 }
  0x8e   :  { %74 = vst [vmem:[%s130_s1 + $0x1] sm:$0x1] %v62_v16 }

// kernel: de_adapted_block_forward.1
= control target key start
LH: loop header
LB: loop body
LE: loop exit
PB: predicated region body
PF: predicated region fallthrough
CT: control target
= control target key end

     0   :  { %s5578_s27 = smov 0   ;;  %s10254_s0 = inlined_call_operand.vmem [shape: f32[2,4,256], index: 0, kind: input, shape index: {}]   ;;  %s10255_s1 = inlined_call_operand.vmem [shape: f32[9,16,4], index: 1, kind: input, shape index: {}]   ;;  %s10256_s2 = inlined_call_operand.vmem [shape: f32[9,16,16], index: 2, kind: input, shape index: {}]   ;;  %s10257_s3 = inlined_call_operand.vmem [shape: f32[9,256,256], index: 3, kind: input, shape index: {}]   ;;  %s10258_s4 = inlined_call_operand.vmem [shape: f32[256,256], index: 4, kind: input, shape index: {}]   ;;  %s10259_s5 = inlined_call_operand.vmem [shape: f32[1,256], index: 5, kind: input, shape index: {}]   ;;  %s10260_s6 = inlined_call_operand.vmem [shape: f32[256,256], index: 6, kind: input, shape index: {}]   ;;  %s10261_s7 = inlined_call_operand.vmem [shape: f32[1,256], index: 7, kind: input, shape index: {}]   ;;  %s10262_s8 = inlined_call_operand.vmem [shape: f32[2,16,256], index: 8, kind: output, shape index: {}]  }
   0x1 LB: > { %s4264_s28 = sadd.s32 4294967295, %s5529_s27   ;;  %p4268_p0 = scmp.ge.s32.totalorder %s5529_s27, 1  ;;  %s5529_s27 = sphi %s5578_s27, %s18_s27  }
   0x2   : > { %p262_p1 = scmp.lt.s32.totalorder %s5529_s27, 3 }
   0x4   : > { %p263_p2 = pnand %p4268_p0, %p262_p1 }
   0x5   : > { %p5630_p3 = scmp.lt.s32.totalorder (!%p263_p2), %s4264_s28, 1 }
   0x6   : > { %266 = sbr.rel (%p263_p2) target bundleno = 3881 (0xf29), region = 52 }
   0xb   : > { %v338_v0 = vld [vmem:[%s10257_s3 + $0xf8] sm:$0xff]  ;;  %v336_v2 = vld [vmem:[%s10257_s3 + $0xe8] sm:$0xff]  ;;  %v337_v6 = vld [vmem:[%s10257_s3 + $0xf0] sm:$0xff]  ;;  %s10267_s28 = smov (!%p5630_p3, %s4264_s28), 1  ;;  %vm619_vm0 = vcmask 1043456   ;;  %vm612_vm1 = vcmask 31744  }
   0xc   : > { %v370_v1 = vld [vmem:[%s10257_s3 + $0x1f8] sm:$0xff]  ;;  %417 = vmatpush.msra.mxu2 %v338_v0  ;;  %v368_v3 = vld [vmem:[%s10257_s3 + $0x1e8] sm:$0xff]  ;;  %v369_v7 = vld [vmem:[%s10257_s3 + $0x1f0] sm:$0xff]  ;;  %377 = vmatpush.msra.mxu0 %v337_v6  ;;  %s4909_s30 = sshll.u32 %s10267_s28, 3  ;;  %vm2493_vm13 = vcmask 130048   ;;  %s4910_s9 = sshll.u32 %s10267_s28, 5 }
   0xd   : > { %437 = vmatpush.msra.mxu3 %v370_v1  ;;  %v334_v4 = vld [vmem:[%s10257_s3 + $0xd8] sm:$0xff]  ;;  %v335_v8 = vld [vmem:[%s10257_s3 + $0xe0] sm:$0xff]  ;;  %397 = vmatpush.msra.mxu1 %v369_v7  ;;  %v332_v10 = vld [vmem:[%s10257_s3 + $0xc8] sm:$0xff]  ;;  %s300_s23 = scalar_lea.vmem %s10254_s0, %s4909_s30  ;;  %s305_s12 = scalar_lea.vmem %s10262_s8, %s4910_s9 }
   0xe   : > { %v366_v5 = vld [vmem:[%s10257_s3 + $0x1d8] sm:$0xff]  ;;  %418 = vmatpush.msra.mxu2 %v336_v2  ;;  %v367_v9 = vld [vmem:[%s10257_s3 + $0x1e0] sm:$0xff]  ;;  %v364_v11 = vld [vmem:[%s10257_s3 + $0x1c8] sm:$0xff]  ;;  %378 = vmatpush.msra.mxu0 %v335_v8 }
   0xf   : > { %438 = vmatpush.msra.mxu3 %v368_v3  ;;  %v333_v12 = vld [vmem:[%s10257_s3 + $0xd0] sm:$0xff]  ;;  %398 = vmatpush.msra.mxu1 %v367_v9  ;;  %v330_v14 = vld [vmem:[%s10257_s3 + $0xb8] sm:$0xff]  ;;  %v331_v16 = vld [vmem:[%s10257_s3 + $0xc0] sm:$0xff] }
  0x10   : > { %419 = vmatpush.msra.mxu2 %v334_v4  ;;  %v365_v13 = vld [vmem:[%s10257_s3 + $0x1d0] sm:$0xff]  ;;  %v362_v15 = vld [vmem:[%s10257_s3 + $0x1b8] sm:$0xff]  ;;  %v363_v17 = vld [vmem:[%s10257_s3 + $0x1c0] sm:$0xff]  ;;  %379 = vmatpush.msra.mxu0 %v333_v12 }
  0x11   : > { %439 = vmatpush.msra.mxu3 %v366_v5  ;;  %399 = vmatpush.msra.mxu1 %v365_v13  ;;  %v328_v18 = vld [vmem:[%s10257_s3 + $0xa8] sm:$0xff]  ;;  %v329_v20 = vld [vmem:[%s10257_s3 + $0xb0] sm:$0xff]  ;;  %v326_v22 = vld [vmem:[%s10257_s3 + $0x98] sm:$0xff] }
  0x12   : > { %420 = vmatpush.msra.mxu2 %v332_v10  ;;  %v360_v19 = vld [vmem:[%s10257_s3 + $0x1a8] sm:$0xff]  ;;  %v361_v21 = vld [vmem:[%s10257_s3 + $0x1b0] sm:$0xff]  ;;  %380 = vmatpush.msra.mxu0 %v331_v16  ;;  %v358_v23 = vld [vmem:[%s10257_s3 + $0x198] sm:$0xff] }
  0x13   : > { %440 = vmatpush.msra.mxu3 %v364_v11  ;;  %400 = vmatpush.msra.mxu1 %v363_v17  ;;  %v327_v24 = vld [vmem:[%s10257_s3 + $0xa0] sm:$0xff]  ;;  %v324_v26 = vld [vmem:[%s10257_s3 + $0x88] sm:$0xff]  ;;  %v325_v28 = vld [vmem:[%s10257_s3 + $0x90] sm:$0xff] }
  0x14   : > { %421 = vmatpush.msra.mxu2 %v330_v14  ;;  %v359_v25 = vld [vmem:[%s10257_s3 + $0x1a0] sm:$0xff]  ;;  %381 = vmatpush.msra.mxu0 %v329_v20  ;;  %v356_v27 = vld [vmem:[%s10257_s3 + $0x188] sm:$0xff]  ;;  %v357_v29 = vld [vmem:[%s10257_s3 + $0x190] sm:$0xff] }
  0x15   : > { %441 = vmatpush.msra.mxu3 %v362_v15  ;;  %401 = vmatpush.msra.mxu1 %v361_v21  ;;  %v322_v30 = vld [vmem:[%s10257_s3 + $0x78] sm:$0xff]  ;;  %v323_v32 = vld [vmem:[%s10257_s3 + $0x80] sm:$0xff]  ;;  %v320_v34 = vld [vmem:[%s10257_s3 + $0x68] sm:$0xff] }
  0x16   : > { %422 = vmatpush.msra.mxu2 %v328_v18  ;;  %382 = vmatpush.msra.mxu0 %v327_v24  ;;  %v354_v31 = vld [vmem:[%s10257_s3 + $0x178] sm:$0xff]  ;;  %v355_v33 = vld [vmem:[%s10257_s3 + $0x180] sm:$0xff]  ;;  %v352_v35 = vld [vmem:[%s10257_s3 + $0x168] sm:$0xff] }
  0x17   : > { %442 = vmatpush.msra.mxu3 %v360_v19  ;;  %402 = vmatpush.msra.mxu1 %v359_v25  ;;  %v321_v36 = vld [vmem:[%s10257_s3 + $0x70] sm:$0xff]  ;;  %v318_v38 = vld [vmem:[%s10257_s3 + $0x58] sm:$0xff]  ;;  %v319_v40 = vld [vmem:[%s10257_s3 + $0x60] sm:$0xff] }
  0x18   : > { %423 = vmatpush.msra.mxu2 %v326_v22  ;;  %383 = vmatpush.msra.mxu0 %v325_v28  ;;  %v353_v37 = vld [vmem:[%s10257_s3 + $0x170] sm:$0xff]  ;;  %v350_v39 = vld [vmem:[%s10257_s3 + $0x158] sm:$0xff]  ;;  %v351_v41 = vld [vmem:[%s10257_s3 + $0x160] sm:$0xff] }
  0x19   : > { %443 = vmatpush.msra.mxu3 %v358_v23  ;;  %403 = vmatpush.msra.mxu1 %v357_v29  ;;  %v5728_v42 = vld [vmem:[%s300_s23] sm:$0xff]  ;;  %v316_v43 = vld [vmem:[%s10257_s3 + $0x48] sm:$0xff]  ;;  %v317_v45 = vld [vmem:[%s10257_s3 + $0x50] sm:$0xff] }
  0x1a   : > { %424 = vmatpush.msra.mxu2 %v324_v26  ;;  %384 = vmatpush.msra.mxu0 %v323_v32  ;;  %v348_v44 = vld [vmem:[%s10257_s3 + $0x148] sm:$0xff]  ;;  %372 = vst [vmem:[#allocation1] ss:$2 sm:$0xff] %v5728_v42  ;;  %v349_v46 = vld [vmem:[%s10257_s3 + $0x150] sm:$0xff]  ;;  %v314_v47 = vld [vmem:[%s10257_s3 + $0x38] sm:$0xff] }
  0x1b   : > { %444 = vmatpush.msra.mxu3 %v356_v27  ;;  %404 = vmatpush.msra.mxu1 %v355_v33  ;;  %v346_v48 = vld [vmem:[%s10257_s3 + $0x138] sm:$0xff]  ;;  %v315_v49 = vld [vmem:[%s10257_s3 + $0x40] sm:$0xff]  ;;  %v312_v51 = vld [vmem:[%s10257_s3 + $0x28] sm:$0xff] }
  0x1c   : > { %425 = vmatpush.msra.mxu2 %v322_v30  ;;  %385 = vmatpush.msra.mxu0 %v321_v36  ;;  %v347_v50 = vld [vmem:[%s10257_s3 + $0x140] sm:$0xff]  ;;  %v344_v52 = vld [vmem:[%s10257_s3 + $0x128] sm:$0xff]  ;;  %v310_v53 = vld [vmem:[%s10257_s3 + $0x18] sm:$0xff] }
  0x1d   : > { %445 = vmatpush.msra.mxu3 %v354_v31  ;;  %405 = vmatpush.msra.mxu1 %v353_v37  ;;  %v313_v54 = vld [vmem:[%s10257_s3 + $0x30] sm:$0xff]  ;;  %v342_v56 = vld [vmem:[%s10257_s3 + $0x118] sm:$0xff]  ;;  %v311_v57 = vld [vmem:[%s10257_s3 + $0x20] sm:$0xff] }
  0x1e   : > { %426 = vmatpush.msra.mxu2 %v320_v34  ;;  %386 = vmatpush.msra.mxu0 %v319_v40  ;;  %v345_v55 = vld [vmem:[%s10257_s3 + $0x130] sm:$0xff]  ;;  %v343_v58 = vld [vmem:[%s10257_s3 + $0x120] sm:$0xff]  ;;  %v308_v61 = vld [vmem:[%s10257_s3 + $0x8] sm:$0xff] }
  0x1f   : > { %446 = vmatpush.msra.mxu3 %v352_v35  ;;  %406 = vmatpush.msra.mxu1 %v351_v41  ;;  %v340_v62 = vld [vmem:[%s10257_s3 + $0x108] sm:$0xff]  ;;  %v4304_v63 = vld [vmem:[%s10257_s3 + $0x2f8] sm:$0xff]  ;;  %v309_v1 = vld [vmem:[%s10257_s3 + $0x10] sm:$0xff] }
  0x20   : > { %427 = vmatpush.msra.mxu2 %v318_v38  ;;  %387 = vmatpush.msra.mxu0 %v317_v45  ;;  %v4336_v0 = vld [vmem:[%s10257_s3 + $0x3f8] sm:$0xff]  ;;  %v341_v2 = vld [vmem:[%s10257_s3 + $0x110] sm:$0xff]  ;;  %v4302_v3 = vld [vmem:[%s10257_s3 + $0x2e8] sm:$0xff] }
  0x21   : > { %447 = vmatpush.msra.mxu3 %v350_v39  ;;  %407 = vmatpush.msra.mxu1 %v349_v46  ;;  %v373_v59 = vld.sshfl [vmem:[#allocation1] sm:$0xff pattern:$0x75316420]  ;;  %v374_v60 = vld.sshfl [vmem:[#allocation1 + $0x8] sm:$0xff pattern:$0x75316420] }
  0x22   : > { %428 = vmatpush.msra.mxu2 %v316_v43  ;;  %388 = vmatpush.msra.mxu0 %v315_v49  ;;  %524 = vst [vmem:[#allocation1] ss:$2 sm:$0xff] %v5728_v42  ;;  %v4334_v4 = vld [vmem:[%s10257_s3 + $0x3e8] sm:$0xff]  ;;  %v307_v5 = vld [vmem:[%s10257_s3] sm:$0xff]  ;;  %v4300_v7 = vld [vmem:[%s10257_s3 + $0x2d8] sm:$0xff] }
  0x23   : > { %448 = vmatpush.msra.mxu3 %v348_v44  ;;  %408 = vmatpush.msra.mxu1 %v347_v50  ;;  %v339_v6 = vld [vmem:[%s10257_s3 + $0x100] sm:$0xff]  ;;  %v4332_v8 = vld [vmem:[%s10257_s3 + $0x3d8] sm:$0xff]  ;;  %v4303_v9 = vld [vmem:[%s10257_s3 + $0x2f0] sm:$0xff] }
  0x24   : > { %429 = vmatpush.msra.mxu2 %v314_v47  ;;  %389 = vmatpush.msra.mxu0 %v313_v54  ;;  %v4335_v10 = vld [vmem:[%s10257_s3 + $0x3f0] sm:$0xff]  ;;  %v4298_v11 = vld [vmem:[%s10257_s3 + $0x2c8] sm:$0xff]  ;;  %v4301_v13 = vld [vmem:[%s10257_s3 + $0x2e0] sm:$0xff] }
  0x25   : > { %449 = vmatpush.msra.mxu3 %v346_v48  ;;  %409 = vmatpush.msra.mxu1 %v345_v55  ;;  %v4330_v12 = vld [vmem:[%s10257_s3 + $0x3c8] sm:$0xff]  ;;  %v4333_v14 = vld [vmem:[%s10257_s3 + $0x3e0] sm:$0xff]  ;;  %v4296_v15 = vld [vmem:[%s10257_s3 + $0x2b8] sm:$0xff] }
  0x26   : > { %430 = vmatpush.msra.mxu2 %v312_v51  ;;  %390 = vmatpush.msra.mxu0 %v311_v57  ;;  %v4328_v16 = vld [vmem:[%s10257_s3 + $0x3b8] sm:$0xff]  ;;  %v4299_v17 = vld [vmem:[%s10257_s3 + $0x2d0] sm:$0xff]  ;;  %v4294_v19 = vld [vmem:[%s10257_s3 + $0x2a8] sm:$0xff] }
  0x27   : > { %450 = vmatpush.msra.mxu3 %v344_v52  ;;  %410 = vmatpush.msra.mxu1 %v343_v58  ;;  %v4331_v18 = vld [vmem:[%s10257_s3 + $0x3d0] sm:$0xff]  ;;  %v4326_v20 = vld [vmem:[%s10257_s3 + $0x3a8] sm:$0xff]  ;;  %v4297_v21 = vld [vmem:[%s10257_s3 + $0x2c0] sm:$0xff] }
  0x28   : > { %431 = vmatpush.msra.mxu2 %v310_v53  ;;  %391 = vmatpush.msra.mxu0 %v309_v1  ;;  %v4329_v22 = vld [vmem:[%s10257_s3 + $0x3c0] sm:$0xff]  ;;  %v4292_v25 = vld [vmem:[%s10257_s3 + $0x298] sm:$0xff]  ;;  %v4295_v27 = vld [vmem:[%s10257_s3 + $0x2b0] sm:$0xff] }
  0x29   : > { %451 = vmatpush.msra.mxu3 %v342_v56  ;;  %411 = vmatpush.msra.mxu1 %v341_v2  ;;  %v5858_v23 = vld.sshfl [vmem:[#allocation1] sm:$0xff pattern:$0x75316420]  ;;  %v5860_v24 = vld.sshfl [vmem:[#allocation1 + $0x8] sm:$0xff pattern:$0x75316420] }
  0x2a   : > { %432 = vmatpush.msra.mxu2 %v308_v61  ;;  %392 = vmatpush.msra.mxu0 %v307_v5  ;;  %v4324_v26 = vld [vmem:[%s10257_s3 + $0x398] sm:$0xff]  ;;  %795 = vst [vmem:[#allocation1] ss:$2 sm:$0xff] %v5728_v42  ;;  %v4327_v28 = vld [vmem:[%s10257_s3 + $0x3b0] sm:$0xff]  ;;  %v4290_v29 = vld [vmem:[%s10257_s3 + $0x288] sm:$0xff] }
  0x2b   : > { %452 = vmatpush.msra.mxu3 %v340_v62  ;;  %433 = vmatmul.f32.vlgmr.msra.gmra.mxu2 %v373_v59  ;;  %v4322_v30 = vld [vmem:[%s10257_s3 + $0x388] sm:$0xff]  ;;  %v4293_v31 = vld [vmem:[%s10257_s3 + $0x2a0] sm:$0xff]  ;;  %v4288_v33 = vld [vmem:[%s10257_s3 + $0x278] sm:$0xff] }
  0x2c   : > { %453 = vmatmul.f32.vlgmr.msra.gmra.mxu3 %v374_v60  ;;  %569 = vmatpush.msrb.mxu2 %v4304_v63  ;;  %v4325_v32 = vld [vmem:[%s10257_s3 + $0x3a0] sm:$0xff]  ;;  %v4320_v34 = vld [vmem:[%s10257_s3 + $0x378] sm:$0xff]  ;;  %v4291_v35 = vld [vmem:[%s10257_s3 + $0x290] sm:$0xff] }
  0x2d   : > { %589 = vmatpush.msrb.mxu3 %v4336_v0  ;;  %412 = vmatpush.msra.mxu1 %v339_v6  ;;  %v4323_v36 = vld [vmem:[%s10257_s3 + $0x390] sm:$0xff]  ;;  %v4286_v37 = vld [vmem:[%s10257_s3 + $0x268] sm:$0xff]  ;;  %v4289_v39 = vld [vmem:[%s10257_s3 + $0x280] sm:$0xff] }
  0x2e   : > { %570 = vmatpush.msrb.mxu2 %v4302_v3  ;;  %393 = vmatmul.f32.vlgmr.msra.gmra.mxu0 %v373_v59  ;;  %v4318_v38 = vld [vmem:[%s10257_s3 + $0x368] sm:$0xff]  ;;  %v4321_v40 = vld [vmem:[%s10257_s3 + $0x380] sm:$0xff]  ;;  %v4284_v41 = vld [vmem:[%s10257_s3 + $0x258] sm:$0xff] }
  0x2f   : > { %590 = vmatpush.msrb.mxu3 %v4334_v4  ;;  %413 = vmatmul.f32.vlgmr.msra.gmra.mxu1 %v374_v60  ;;  %v4316_v43 = vld [vmem:[%s10257_s3 + $0x358] sm:$0xff]  ;;  %v4287_v44 = vld [vmem:[%s10257_s3 + $0x270] sm:$0xff]  ;;  %v4282_v46 = vld [vmem:[%s10257_s3 + $0x248] sm:$0xff] }
  0x30   : > { %571 = vmatpush.msrb.mxu2 %v4300_v7  ;;  %529 = vmatpush.msrb.mxu0 %v4303_v9  ;;  %v4319_v45 = vld [vmem:[%s10257_s3 + $0x370] sm:$0xff]  ;;  %v4314_v47 = vld [vmem:[%s10257_s3 + $0x348] sm:$0xff]  ;;  %v4285_v48 = vld [vmem:[%s10257_s3 + $0x260] sm:$0xff] }
  0x31   : > { %591 = vmatpush.msrb.mxu3 %v4332_v8  ;;  %549 = vmatpush.msrb.mxu1 %v4335_v10  ;;  %v4317_v49 = vld [vmem:[%s10257_s3 + $0x360] sm:$0xff]  ;;  %v4280_v50 = vld [vmem:[%s10257_s3 + $0x238] sm:$0xff]  ;;  %v4283_v52 = vld [vmem:[%s10257_s3 + $0x250] sm:$0xff] }
  0x32   : > { %572 = vmatpush.msrb.mxu2 %v4298_v11  ;;  %530 = vmatpush.msrb.mxu0 %v4301_v13  ;;  %v4312_v51 = vld [vmem:[%s10257_s3 + $0x338] sm:$0xff]  ;;  %v4315_v53 = vld [vmem:[%s10257_s3 + $0x350] sm:$0xff]  ;;  %v4278_v54 = vld [vmem:[%s10257_s3 + $0x228] sm:$0xff] }
  0x33   : > { %592 = vmatpush.msrb.mxu3 %v4330_v12  ;;  %550 = vmatpush.msrb.mxu1 %v4333_v14  ;;  %v4310_v55 = vld [vmem:[%s10257_s3 + $0x328] sm:$0xff]  ;;  %v4281_v56 = vld [vmem:[%s10257_s3 + $0x240] sm:$0xff]  ;;  %v4276_v58 = vld [vmem:[%s10257_s3 + $0x218] sm:$0xff] }
  0x34   : > { %573 = vmatpush.msrb.mxu2 %v4296_v15  ;;  %531 = vmatpush.msrb.mxu0 %v4299_v17  ;;  %v4313_v57 = vld [vmem:[%s10257_s3 + $0x340] sm:$0xff]  ;;  %v4308_v59 = vld [vmem:[%s10257_s3 + $0x318] sm:$0xff]  ;;  %v4279_v60 = vld [vmem:[%s10257_s3 + $0x230] sm:$0xff] }
  0x35   : > { %593 = vmatpush.msrb.mxu3 %v4328_v16  ;;  %551 = vmatpush.msrb.mxu1 %v4331_v18  ;;  %v4311_v61 = vld [vmem:[%s10257_s3 + $0x330] sm:$0xff]  ;;  %v4274_v62 = vld [vmem:[%s10257_s3 + $0x208] sm:$0xff]  ;;  %v4277_v0 = vld [vmem:[%s10257_s3 + $0x220] sm:$0xff] }
  0x36   : > { %574 = vmatpush.msrb.mxu2 %v4294_v19  ;;  %532 = vmatpush.msrb.mxu0 %v4297_v21  ;;  %v4306_v63 = vld [vmem:[%s10257_s3 + $0x308] sm:$0xff]  ;;  %v4309_v1 = vld [vmem:[%s10257_s3 + $0x320] sm:$0xff]  ;;  %v4275_v2 = vld [vmem:[%s10257_s3 + $0x210] sm:$0xff] }
  0x37   : > { %594 = vmatpush.msrb.mxu3 %v4326_v20  ;;  %552 = vmatpush.msrb.mxu1 %v4329_v22  ;;  %v4307_v3 = vld [vmem:[%s10257_s3 + $0x310] sm:$0xff]  ;;  %v4273_v4 = vld [vmem:[%s10257_s3 + $0x200] sm:$0xff]  ;;  %v4382_v11 = vld [vmem:[%s10257_s3 + $0x4f8] sm:$0xff] }
  0x38   : > { %575 = vmatpush.msrb.mxu2 %v4292_v25  ;;  %533 = vmatpush.msrb.mxu0 %v4295_v27  ;;  %v4305_v5 = vld [vmem:[%s10257_s3 + $0x300] sm:$0xff]  ;;  %v4414_v13 = vld [vmem:[%s10257_s3 + $0x5f8] sm:$0xff]  ;;  %v4380_v15 = vld [vmem:[%s10257_s3 + $0x4e8] sm:$0xff] }
  0x39   : > { %595 = vmatpush.msrb.mxu3 %v4324_v26  ;;  %553 = vmatpush.msrb.mxu1 %v4327_v28  ;;  %v457_v14 = vld [vmem:[%s10255_s1] sm:$0xff]  ;;  %v4412_v16 = vld [vmem:[%s10257_s3 + $0x5e8] sm:$0xff]  ;;  %v4378_v17 = vld [vmem:[%s10257_s3 + $0x4d8] sm:$0xff] }
  0x3a   : > { %576 = vmatpush.msrb.mxu2 %v4290_v29  ;;  %534 = vmatpush.msrb.mxu0 %v4293_v31  ;;  %v4410_v18 = vld [vmem:[%s10257_s3 + $0x5d8] sm:$0xff]  ;;  %v6024_v19 = vld.sshfl [vmem:[#allocation1] sm:$0xff pattern:$0x75316420]  ;;  %v4376_v21 = vld [vmem:[%s10257_s3 + $0x4c8] sm:$0xff] }
  0x3b   : > { %596 = vmatpush.msrb.mxu3 %v4322_v30  ;;  %554 = vmatpush.msrb.mxu1 %v4325_v32  ;;  %v6026_v20 = vld.sshfl [vmem:[#allocation1 + $0x8] sm:$0xff pattern:$0x75316420]  ;;  %v4370_v28 = vld [vmem:[%s10257_s3 + $0x498] sm:$0xff] }
  0x3c   : > { %577 = vmatpush.msrb.mxu2 %v4288_v33  ;;  %535 = vmatpush.msrb.mxu0 %v4291_v35  ;;  %1010 = vst [vmem:[#allocation1] ss:$2 sm:$0xff] %v5728_v42  ;;  %v4408_v22 = vld [vmem:[%s10257_s3 + $0x5c8] sm:$0xff]  ;;  %v4402_v29 = vld [vmem:[%s10257_s3 + $0x598] sm:$0xff] }
  0x3d   : > { %597 = vmatpush.msrb.mxu3 %v4320_v34  ;;  %555 = vmatpush.msrb.mxu1 %v4323_v36  ;;  %v458_v25 = vld [vmem:[%s10255_s1 + $0x8] sm:$0xff]  ;;  %v4366_v32 = vld [vmem:[%s10257_s3 + $0x478] sm:$0xff] }
  0x3e   : > { %578 = vmatpush.msrb.mxu2 %v4286_v37  ;;  %536 = vmatpush.msrb.mxu0 %v4289_v39  ;;  %v4372_v26 = vld [vmem:[%s10257_s3 + $0x4a8] sm:$0xff]  ;;  %v4398_v33 = vld [vmem:[%s10257_s3 + $0x578] sm:$0xff] }
  0x3f   : > { %598 = vmatpush.msrb.mxu3 %v4318_v38  ;;  %556 = vmatpush.msrb.mxu1 %v4321_v40  ;;  %v4404_v27 = vld [vmem:[%s10257_s3 + $0x5a8] sm:$0xff]  ;;  %v4362_v36 = vld [vmem:[%s10257_s3 + $0x458] sm:$0xff] }
  0x40   : > { %579 = vmatpush.msrb.mxu2 %v4284_v41  ;;  %537 = vmatpush.msrb.mxu0 %v4287_v44  ;;  %v4368_v30 = vld [vmem:[%s10257_s3 + $0x488] sm:$0xff]  ;;  %v4394_v37 = vld [vmem:[%s10257_s3 + $0x558] sm:$0xff] }
  0x41   : > { %599 = vmatpush.msrb.mxu3 %v4316_v43  ;;  %557 = vmatpush.msrb.mxu1 %v4319_v45  ;;  %v4400_v31 = vld [vmem:[%s10257_s3 + $0x588] sm:$0xff]  ;;  %v4358_v40 = vld [vmem:[%s10257_s3 + $0x438] sm:$0xff] }
  0x42   : > { %580 = vmatpush.msrb.mxu2 %v4282_v46  ;;  %538 = vmatpush.msrb.mxu0 %v4285_v48  ;;  %v4364_v34 = vld [vmem:[%s10257_s3 + $0x468] sm:$0xff]  ;;  %v4390_v41 = vld [vmem:[%s10257_s3 + $0x538] sm:$0xff] }
  0x43   : > { %600 = vmatpush.msrb.mxu3 %v4314_v47  ;;  %558 = vmatpush.msrb.mxu1 %v4317_v49  ;;  %v4396_v35 = vld [vmem:[%s10257_s3 + $0x568] sm:$0xff]  ;;  %v4354_v45 = vld [vmem:[%s10257_s3 + $0x418] sm:$0xff] }
  0x44   : > { %581 = vmatpush.msrb.mxu2 %v4280_v50  ;;  %539 = vmatpush.msrb.mxu0 %v4283_v52  ;;  %v4360_v38 = vld [vmem:[%s10257_s3 + $0x448] sm:$0xff]  ;;  %v4386_v46 = vld [vmem:[%s10257_s3 + $0x518] sm:$0xff] }
  0x45   : > { %601 = vmatpush.msrb.mxu3 %v4312_v51  ;;  %559 = vmatpush.msrb.mxu1 %v4315_v53  ;;  %v4392_v39 = vld [vmem:[%s10257_s3 + $0x548] sm:$0xff] }
  0x46   : > { %582 = vmatpush.msrb.mxu2 %v4278_v54  ;;  %540 = vmatpush.msrb.mxu0 %v4281_v56  ;;  %v4356_v43 = vld [vmem:[%s10257_s3 + $0x428] sm:$0xff]  ;;  %v4381_v54 = vld [vmem:[%s10257_s3 + $0x4f0] sm:$0xff] }
  0x47   : > { %602 = vmatpush.msrb.mxu3 %v4310_v55  ;;  %560 = vmatpush.msrb.mxu1 %v4313_v57  ;;  %v4388_v44 = vld [vmem:[%s10257_s3 + $0x528] sm:$0xff]  ;;  %v4413_v56 = vld [vmem:[%s10257_s3 + $0x5f0] sm:$0xff] }
  0x48   : > { %583 = vmatpush.msrb.mxu2 %v4276_v58  ;;  %541 = vmatpush.msrb.mxu0 %v4279_v60  ;;  %v4352_v47 = vld [vmem:[%s10257_s3 + $0x408] sm:$0xff]  ;;  %v4453_v57 = vld [vmem:[%s10257_s3 + $0x6f0] sm:$0xff]  ;;  %v4411_v60 = vld [vmem:[%s10257_s3 + $0x5e0] sm:$0xff] }
  0x49   : > { %603 = vmatpush.msrb.mxu3 %v4308_v59  ;;  %561 = vmatpush.msrb.mxu1 %v4311_v61  ;;  %v4384_v48 = vld [vmem:[%s10257_s3 + $0x508] sm:$0xff]  ;;  %v4485_v58 = vld [vmem:[%s10257_s3 + $0x7f0] sm:$0xff]  ;;  %v4379_v59 = vld [vmem:[%s10257_s3 + $0x4e0] sm:$0xff] }
  0x4a   : > { %584 = vmatpush.msrb.mxu2 %v4274_v62  ;;  %542 = vmatpush.msrb.mxu0 %v4277_v0  ;;  %v4451_v61 = vld [vmem:[%s10257_s3 + $0x6e0] sm:$0xff]  ;;  %v4409_v0 = vld [vmem:[%s10257_s3 + $0x5d0] sm:$0xff] }
  0x4b   : > { %604 = vmatpush.msrb.mxu3 %v4306_v63  ;;  %585 = vmatmul.f32.vlgmr.msrb.gmra.mxu2 %v5858_v23  ;;  %v4483_v62 = vld [vmem:[%s10257_s3 + $0x7e0] sm:$0xff]  ;;  %v4377_v63 = vld [vmem:[%s10257_s3 + $0x4d0] sm:$0xff] }
  0x4c   : > { %605 = vmatmul.f32.vlgmr.msrb.gmra.mxu3 %v5860_v24  ;;  %562 = vmatpush.msrb.mxu1 %v4309_v1  ;;  %v4449_v1 = vld [vmem:[%s10257_s3 + $0x6d0] sm:$0xff] }
  0x4d   : > { %543 = vmatpush.msrb.mxu0 %v4275_v2  ;;  %v6149_v2 = vld.sshfl [vmem:[#allocation1] sm:$0xff pattern:$0x75316420] }
  0x4e   : > { %563 = vmatpush.msrb.mxu1 %v4307_v3  ;;  %v6151_v3 = vld.sshfl [vmem:[#allocation1 + $0x8] sm:$0xff pattern:$0x75316420] }
  0x4f   : > { %544 = vmatpush.msrb.mxu0 %v4273_v4  ;;  %v4481_v4 = vld [vmem:[%s10257_s3 + $0x7d0] sm:$0xff]  ;;  %1225 = vst [vmem:[#allocation1] ss:$2 sm:$0xff] %v5728_v42 }
  0x50   : > { %564 = vmatpush.msrb.mxu1 %v4305_v5  ;;  %545 = vmatmul.f32.vlgmr.msrb.gmra.mxu0 %v5858_v23  ;;  %v4374_v23 = vld [vmem:[%s10257_s3 + $0x4b8] sm:$0xff]  ;;  %v4375_v5 = vld [vmem:[%s10257_s3 + $0x4c0] sm:$0xff] }
  0x51   : > { %565 = vmatmul.f32.vlgmr.msrb.gmra.mxu1 %v5860_v24  ;;  %v4406_v24 = vld [vmem:[%s10257_s3 + $0x5b8] sm:$0xff] }
  0xab   : > { %v394_v6 = vpop.f32.mrf.mxu0 }
  0xac   : > { %v414_v7 = vpop.f32.mrf.mxu1 }
  0xad   : > { %v415_v8 = vadd.f32 %v414_v7, %v394_v6  ;;  %v4407_v6 = vld [vmem:[%s10257_s3 + $0x5c0] sm:$0xff] }
  0xae   : > { %v434_v9 = vpop.f32.mrf.mxu2  ;;  %v4447_v7 = vld [vmem:[%s10257_s3 + $0x6c0] sm:$0xff] }
  0xaf   : > { %v454_v10 = vpop.f32.mrf.mxu3  ;;  %4345 = vmatpush.msk.msra.mxu2 %vm619_vm0, %v415_v8  ;;  %v4479_v8 = vld [vmem:[%s10257_s3 + $0x7c0] sm:$0xff] }
  0xb0   : > { %v455_v12 = vadd.f32 %v454_v10, %v434_v9  ;;  %4346 = vmatmul.msk.f32.vlgmr.msra.gmra.mxu2 %vm612_vm1, %v457_v14  ;;  %v4373_v9 = vld [vmem:[%s10257_s3 + $0x4b0] sm:$0xff] }
  0xb1   : > { %840 = vmatpush.msrb.mxu2 %v4382_v11  ;;  %v4405_v10 = vld [vmem:[%s10257_s3 + $0x5b0] sm:$0xff] }
  0xb2   : > { %4348 = vmatpush.msk.msra.mxu3 %vm619_vm0, %v455_v12  ;;  %v4445_v11 = vld [vmem:[%s10257_s3 + $0x6b0] sm:$0xff] }
  0xb3   : > { %841 = vmatpush.msrb.mxu2 %v4380_v15  ;;  %4349 = vmatmul.msk.f32.vlgmr.msra.gmra.mxu3 %vm612_vm1, %v457_v14  ;;  %v4477_v12 = vld [vmem:[%s10257_s3 + $0x7b0] sm:$0xff]  ;;  %v4403_v14 = vld [vmem:[%s10257_s3 + $0x5a0] sm:$0xff] }
  0xb4   : > { %860 = vmatpush.msrb.mxu3 %v4414_v13  ;;  %v4371_v13 = vld [vmem:[%s10257_s3 + $0x4a0] sm:$0xff] }
  0xb5   : > { %842 = vmatpush.msrb.mxu2 %v4378_v17  ;;  %v4443_v15 = vld [vmem:[%s10257_s3 + $0x6a0] sm:$0xff]  ;;  %v4369_v17 = vld [vmem:[%s10257_s3 + $0x490] sm:$0xff] }
  0xb6   : > { %861 = vmatpush.msrb.mxu3 %v4412_v16  ;;  %v4475_v16 = vld [vmem:[%s10257_s3 + $0x7a0] sm:$0xff] }
  0xb7   : > { %843 = vmatpush.msrb.mxu2 %v4376_v21  ;;  %v4441_v21 = vld [vmem:[%s10257_s3 + $0x690] sm:$0xff] }
  0xb8   : > { %862 = vmatpush.msrb.mxu3 %v4410_v18  ;;  %4347 = vmatmul.msk.f32.gmra.mxu2 %vm612_vm1, %v458_v25  ;;  %v4401_v18 = vld [vmem:[%s10257_s3 + $0x590] sm:$0xff] }
  0xb9   : > { %844 = vmatpush.msrb.mxu2 %v4374_v23  ;;  %v4367_v23 = vld [vmem:[%s10257_s3 + $0x480] sm:$0xff] }
  0xba   : > { %863 = vmatpush.msrb.mxu3 %v4408_v22  ;;  %v4473_v22 = vld [vmem:[%s10257_s3 + $0x790] sm:$0xff] }
  0xbb   : > { %845 = vmatpush.msrb.mxu2 %v4372_v26  ;;  %4350 = vmatmul.msk.f32.gmra.mxu3 %vm612_vm1, %v458_v25  ;;  %v4439_v25 = vld [vmem:[%s10257_s3 + $0x680] sm:$0xff] }
  0xbc   : > { %864 = vmatpush.msrb.mxu3 %v4406_v24  ;;  %v4399_v24 = vld [vmem:[%s10257_s3 + $0x580] sm:$0xff] }
  0xbd   : > { %846 = vmatpush.msrb.mxu2 %v4370_v28  ;;  %v4471_v26 = vld [vmem:[%s10257_s3 + $0x780] sm:$0xff]  ;;  %v4365_v28 = vld [vmem:[%s10257_s3 + $0x470] sm:$0xff] }
  0xbe   : > { %865 = vmatpush.msrb.mxu3 %v4404_v27  ;;  %v4337_v27 = vld [vmem:[%s10255_s1 + $0x10] sm:$0xff] }
  0xbf   : > { %847 = vmatpush.msrb.mxu2 %v4368_v30  ;;  %v4437_v30 = vld [vmem:[%s10257_s3 + $0x670] sm:$0xff] }
  0xc0   : > { %866 = vmatpush.msrb.mxu3 %v4402_v29  ;;  %v4397_v29 = vld [vmem:[%s10257_s3 + $0x570] sm:$0xff] }
  0xc1   : > { %848 = vmatpush.msrb.mxu2 %v4366_v32  ;;  %v4363_v32 = vld [vmem:[%s10257_s3 + $0x460] sm:$0xff] }
  0xc2   : > { %867 = vmatpush.msrb.mxu3 %v4400_v31  ;;  %v4469_v31 = vld [vmem:[%s10257_s3 + $0x770] sm:$0xff] }
  0xc3   : > { %849 = vmatpush.msrb.mxu2 %v4364_v34  ;;  %v4435_v34 = vld [vmem:[%s10257_s3 + $0x660] sm:$0xff] }
  0xc4   : > { %868 = vmatpush.msrb.mxu3 %v4398_v33  ;;  %v4395_v33 = vld [vmem:[%s10257_s3 + $0x560] sm:$0xff] }
  0xc5   : > { %850 = vmatpush.msrb.mxu2 %v4362_v36  ;;  %v4361_v36 = vld [vmem:[%s10257_s3 + $0x450] sm:$0xff] }
  0xc6   : > { %869 = vmatpush.msrb.mxu3 %v4396_v35  ;;  %v4467_v35 = vld [vmem:[%s10257_s3 + $0x760] sm:$0xff] }
  0xc7   : > { %851 = vmatpush.msrb.mxu2 %v4360_v38  ;;  %v4433_v38 = vld [vmem:[%s10257_s3 + $0x650] sm:$0xff] }
  0xc8   : > { %870 = vmatpush.msrb.mxu3 %v4394_v37  ;;  %v4393_v37 = vld [vmem:[%s10257_s3 + $0x550] sm:$0xff] }
  0xc9   : > { %852 = vmatpush.msrb.mxu2 %v4358_v40  ;;  %v4359_v40 = vld [vmem:[%s10257_s3 + $0x440] sm:$0xff] }
  0xca   : > { %871 = vmatpush.msrb.mxu3 %v4392_v39  ;;  %v4465_v39 = vld [vmem:[%s10257_s3 + $0x750] sm:$0xff] }
  0xcb   : > { %853 = vmatpush.msrb.mxu2 %v4356_v43  ;;  %v4431_v43 = vld [vmem:[%s10257_s3 + $0x640] sm:$0xff] }
  0xcc   : > { %872 = vmatpush.msrb.mxu3 %v4390_v41  ;;  %v4391_v41 = vld [vmem:[%s10257_s3 + $0x540] sm:$0xff] }
  0xcd   : > { %854 = vmatpush.msrb.mxu2 %v4354_v45  ;;  %v546_v49 = vpop.f32.mrf.mxu0  ;;  %v4338_v45 = vld [vmem:[%s10255_s1 + $0x18] sm:$0xff] }
  0xce   : > { %873 = vmatpush.msrb.mxu3 %v4388_v44  ;;  %v566_v50 = vpop.f32.mrf.mxu1  ;;  %v586_v52 = vpop.f32.mrf.mxu2  ;;  %v4463_v44 = vld [vmem:[%s10257_s3 + $0x740] sm:$0xff] }
  0xcf   : > { %v567_v51 = vadd.f32 %v566_v50, %v546_v49  ;;  %v606_v53 = vpop.f32.mrf.mxu3  ;;  %855 = vmatpush.msrb.mxu2 %v4352_v47  ;;  %v4389_v47 = vld [vmem:[%s10257_s3 + $0x530] sm:$0xff]  ;;  %v4355_v50 = vld [vmem:[%s10257_s3 + $0x420] sm:$0xff] }
  0xd0   : > { %874 = vmatpush.msrb.mxu3 %v4386_v46  ;;  %v607_v55 = vadd.f32 %v606_v53, %v586_v52  ;;  %856 = vmatmul.f32.vlgmr.msrb.gmra.mxu2 %v6024_v19  ;;  %v4357_v46 = vld [vmem:[%s10257_s3 + $0x430] sm:$0xff]  ;;  %v4427_v52 = vld [vmem:[%s10257_s3 + $0x620] sm:$0xff] }
  0xd1   : > { %4339 = vmatpush.msk.msra.mxu0 %vm619_vm0, %v567_v51  ;;  %1015 = vmatpush.msra.mxu2 %v4453_v57  ;;  %v4461_v49 = vld [vmem:[%s10257_s3 + $0x730] sm:$0xff]  ;;  %v4387_v51 = vld [vmem:[%s10257_s3 + $0x520] sm:$0xff] }
  0xd2   : > { %875 = vmatpush.msrb.mxu3 %v4384_v48  ;;  %4342 = vmatpush.msk.msra.mxu1 %vm619_vm0, %v607_v55  ;;  %v4429_v48 = vld [vmem:[%s10257_s3 + $0x630] sm:$0xff]  ;;  %v4459_v53 = vld [vmem:[%s10257_s3 + $0x720] sm:$0xff] }
  0xd3   : > { %876 = vmatmul.f32.vlgmr.msrb.gmra.mxu3 %v6026_v20  ;;  %800 = vmatpush.msrb.mxu0 %v4381_v54  ;;  %v4353_v54 = vld [vmem:[%s10257_s3 + $0x410] sm:$0xff] }
  0xd4   : > { %820 = vmatpush.msrb.mxu1 %v4413_v56  ;;  %1035 = vmatpush.msra.mxu3 %v4485_v58  ;;  %v4385_v55 = vld [vmem:[%s10257_s3 + $0x510] sm:$0xff]  ;;  %v4351_v58 = vld [vmem:[%s10257_s3 + $0x400] sm:$0xff] }
  0xd5   : > { %801 = vmatpush.msrb.mxu0 %v4379_v59  ;;  %1016 = vmatpush.msra.mxu2 %v4451_v61  ;;  %v4425_v56 = vld [vmem:[%s10257_s3 + $0x610] sm:$0xff]  ;;  %v4383_v59 = vld [vmem:[%s10257_s3 + $0x500] sm:$0xff] }
  0xd6   : > { %821 = vmatpush.msrb.mxu1 %v4411_v60  ;;  %1036 = vmatpush.msra.mxu3 %v4483_v62  ;;  %v4457_v57 = vld [vmem:[%s10257_s3 + $0x710] sm:$0xff]  ;;  %v4423_v60 = vld [vmem:[%s10257_s3 + $0x600] sm:$0xff] }
  0xd7   : > { %802 = vmatpush.msrb.mxu0 %v4377_v63  ;;  %1017 = vmatpush.msra.mxu2 %v4449_v1  ;;  %v4455_v61 = vld [vmem:[%s10257_s3 + $0x700] sm:$0xff] }
  0xd8   : > { %822 = vmatpush.msrb.mxu1 %v4409_v0  ;;  %1037 = vmatpush.msra.mxu3 %v4481_v4 }
  0xd9   : > { %803 = vmatpush.msrb.mxu0 %v4375_v5  ;;  %1018 = vmatpush.msra.mxu2 %v4447_v7  ;;  %v4484_v7 = vld [vmem:[%s10257_s3 + $0x7e8] sm:$0xff] }
  0xda   : > { %823 = vmatpush.msrb.mxu1 %v4407_v6  ;;  %1038 = vmatpush.msra.mxu3 %v4479_v8  ;;  %v4482_v8 = vld [vmem:[%s10257_s3 + $0x7d8] sm:$0xff] }
  0xdb   : > { %804 = vmatpush.msrb.mxu0 %v4373_v9  ;;  %1019 = vmatpush.msra.mxu2 %v4445_v11  ;;  %v4480_v9 = vld [vmem:[%s10257_s3 + $0x7c8] sm:$0xff]  ;;  %v4478_v11 = vld [vmem:[%s10257_s3 + $0x7b8] sm:$0xff] }
  0xdc   : > { %824 = vmatpush.msrb.mxu1 %v4405_v10  ;;  %1039 = vmatpush.msra.mxu3 %v4477_v12  ;;  %v4416_v10 = vld [vmem:[%s10255_s1 + $0x28] sm:$0xff] }
  0xdd   : > { %805 = vmatpush.msrb.mxu0 %v4371_v13  ;;  %1020 = vmatpush.msra.mxu2 %v4443_v15  ;;  %v4474_v15 = vld [vmem:[%s10257_s3 + $0x798] sm:$0xff] }
  0xde   : > { %825 = vmatpush.msrb.mxu1 %v4403_v14  ;;  %1040 = vmatpush.msra.mxu3 %v4475_v16  ;;  %v4476_v14 = vld [vmem:[%s10257_s3 + $0x7a8] sm:$0xff] }
  0xdf   : > { %806 = vmatpush.msrb.mxu0 %v4369_v17  ;;  %1021 = vmatpush.msra.mxu2 %v4441_v21  ;;  %v4472_v16 = vld [vmem:[%s10257_s3 + $0x788] sm:$0xff]  ;;  %v4470_v17 = vld [vmem:[%s10257_s3 + $0x778] sm:$0xff] }
  0xe0   : > { %826 = vmatpush.msrb.mxu1 %v4401_v18  ;;  %1041 = vmatpush.msra.mxu3 %v4473_v22  ;;  %v4468_v21 = vld [vmem:[%s10257_s3 + $0x768] sm:$0xff] }
  0xe1   : > { %807 = vmatpush.msrb.mxu0 %v4367_v23  ;;  %1022 = vmatpush.msra.mxu2 %v4439_v25  ;;  %v4466_v23 = vld [vmem:[%s10257_s3 + $0x758] sm:$0xff] }
  0xe2   : > { %827 = vmatpush.msrb.mxu1 %v4399_v24  ;;  %1042 = vmatpush.msra.mxu3 %v4471_v26  ;;  %v4464_v24 = vld [vmem:[%s10257_s3 + $0x748] sm:$0xff]  ;;  %v4462_v25 = vld [vmem:[%s10257_s3 + $0x738] sm:$0xff] }
  0xe3   : > { %4340 = vmatmul.msk.f32.vlgmr.msra.gmra.mxu0 %vm612_vm1, %v4337_v27  ;;  %4343 = vmatmul.msk.f32.vlgmr.msra.gmra.mxu1 %vm612_vm1, %v4337_v27  ;;  %v4460_v26 = vld [vmem:[%s10257_s3 + $0x728] sm:$0xff] }
  0xe4   : > { %808 = vmatpush.msrb.mxu0 %v4365_v28  ;;  %828 = vmatpush.msrb.mxu1 %v4397_v29  ;;  %v4458_v29 = vld [vmem:[%s10257_s3 + $0x718] sm:$0xff] }
  0xe5   : > { %1023 = vmatpush.msra.mxu2 %v4437_v30  ;;  %1043 = vmatpush.msra.mxu3 %v4469_v31  ;;  %v4454_v31 = vld [vmem:[%s10257_s3 + $0x6f8] sm:$0xff] }
  0xe6   : > { %809 = vmatpush.msrb.mxu0 %v4363_v32  ;;  %829 = vmatpush.msrb.mxu1 %v4395_v33  ;;  %v4456_v32 = vld [vmem:[%s10257_s3 + $0x708] sm:$0xff] }
  0xe7   : > { %1024 = vmatpush.msra.mxu2 %v4435_v34  ;;  %1044 = vmatpush.msra.mxu3 %v4467_v35  ;;  %v4452_v33 = vld [vmem:[%s10257_s3 + $0x6e8] sm:$0xff]  ;;  %v4557_v34 = vld [vmem:[%s10257_s3 + $0x9f0] sm:$0xff] }
  0xe8   : > { %810 = vmatpush.msrb.mxu0 %v4361_v36  ;;  %830 = vmatpush.msrb.mxu1 %v4393_v37  ;;  %v4450_v36 = vld [vmem:[%s10257_s3 + $0x6d8] sm:$0xff]  ;;  %v4555_v37 = vld [vmem:[%s10257_s3 + $0x9e0] sm:$0xff] }
  0xe9   : > { %1025 = vmatpush.msra.mxu2 %v4433_v38  ;;  %1045 = vmatpush.msra.mxu3 %v4465_v39 }
  0xea   : > { %811 = vmatpush.msrb.mxu0 %v4359_v40  ;;  %831 = vmatpush.msrb.mxu1 %v4391_v41  ;;  %v4448_v40 = vld [vmem:[%s10257_s3 + $0x6c8] sm:$0xff]  ;;  %v6424_v41 = vld [vmem:[%s10255_s1 + $0x30] sm:$0xff] }
  0xeb   : > { %1026 = vmatpush.msra.mxu2 %v4431_v43  ;;  %1046 = vmatpush.msra.mxu3 %v4463_v44  ;;  %v4446_v43 = vld [vmem:[%s10257_s3 + $0x6b8] sm:$0xff]  ;;  %v4551_v44 = vld [vmem:[%s10257_s3 + $0x9c0] sm:$0xff] }
  0xec   : > { %4341 = vmatmul.msk.f32.gmra.mxu0 %vm612_vm1, %v4338_v45  ;;  %4344 = vmatmul.msk.f32.gmra.mxu1 %vm612_vm1, %v4338_v45  ;;  %v4444_v45 = vld [vmem:[%s10257_s3 + $0x6a8] sm:$0xff] }
  0xed   : > { %812 = vmatpush.msrb.mxu0 %v4357_v46  ;;  %832 = vmatpush.msrb.mxu1 %v4389_v47  ;;  %v4549_v46 = vld [vmem:[%s10257_s3 + $0x9b0] sm:$0xff]  ;;  %v4442_v47 = vld [vmem:[%s10257_s3 + $0x698] sm:$0xff] }
  0xee   : > { %1027 = vmatpush.msra.mxu2 %v4429_v48  ;;  %1047 = vmatpush.msra.mxu3 %v4461_v49  ;;  %v4547_v48 = vld [vmem:[%s10257_s3 + $0x9a0] sm:$0xff]  ;;  %v4440_v49 = vld [vmem:[%s10257_s3 + $0x688] sm:$0xff] }
  0xef   : > { %813 = vmatpush.msrb.mxu0 %v4355_v50  ;;  %833 = vmatpush.msrb.mxu1 %v4387_v51  ;;  %v6457_v50 = vld [vmem:[%s10255_s1 + $0x38] sm:$0xff]  ;;  %v4545_v51 = vld [vmem:[%s10257_s3 + $0x990] sm:$0xff] }
  0xf0   : > { %1028 = vmatpush.msra.mxu2 %v4427_v52  ;;  %1048 = vmatpush.msra.mxu3 %v4459_v53  ;;  %v4438_v52 = vld [vmem:[%s10257_s3 + $0x678] sm:$0xff]  ;;  %v4543_v53 = vld [vmem:[%s10257_s3 + $0x980] sm:$0xff] }
  0xf1   : > { %814 = vmatpush.msrb.mxu0 %v4353_v54  ;;  %834 = vmatpush.msrb.mxu1 %v4385_v55  ;;  %v4436_v54 = vld [vmem:[%s10257_s3 + $0x668] sm:$0xff]  ;;  %v4541_v55 = vld [vmem:[%s10257_s3 + $0x970] sm:$0xff] }
  0xf2   : > { %1029 = vmatpush.msra.mxu2 %v4425_v56  ;;  %1049 = vmatpush.msra.mxu3 %v4457_v57  ;;  %v4434_v56 = vld [vmem:[%s10257_s3 + $0x658] sm:$0xff]  ;;  %v4539_v57 = vld [vmem:[%s10257_s3 + $0x960] sm:$0xff] }
  0xf3   : > { %815 = vmatpush.msrb.mxu0 %v4351_v58  ;;  %835 = vmatpush.msrb.mxu1 %v4383_v59  ;;  %v4432_v58 = vld [vmem:[%s10257_s3 + $0x648] sm:$0xff]  ;;  %v4537_v59 = vld [vmem:[%s10257_s3 + $0x950] sm:$0xff] }
  0xf4   : > { %1030 = vmatpush.msra.mxu2 %v4423_v60  ;;  %1050 = vmatpush.msra.mxu3 %v4455_v61  ;;  %v4430_v60 = vld [vmem:[%s10257_s3 + $0x638] sm:$0xff]  ;;  %v4535_v61 = vld [vmem:[%s10257_s3 + $0x940] sm:$0xff] }
  0xf5   : > { %816 = vmatmul.f32.vlgmr.msrb.gmra.mxu0 %v6024_v19  ;;  %836 = vmatmul.f32.vlgmr.msrb.gmra.mxu1 %v6026_v20  ;;  %v4415_v19 = vld [vmem:[%s10255_s1 + $0x20] sm:$0xff]  ;;  %v4486_v20 = vld [vmem:[%s10257_s3 + $0x7f8] sm:$0xff] }
  0xf6   : > { %1031 = vmatmul.f32.vlgmr.msra.gmra.mxu2 %v6149_v2  ;;  %1051 = vmatmul.f32.vlgmr.msra.gmra.mxu3 %v6151_v3 }
 0x133   : > { %v6327_v62 = vpop.f32.mrf.mxu2 }
 0x136   : > { %v6329_v63 = vpop.f32.mrf.mxu3 }
 0x13b   : > { %v6331_v0 = vpop.f32.mrf.mxu2 }
 0x13e   : > { %v6333_v1 = vpop.f32.mrf.mxu3 }
 0x153   : > { %v857_v4 = vpop.f32.mrf.mxu2 }
 0x156   : > { %v877_v5 = vpop.f32.mrf.mxu3 }
 0x157   : > { %v878_v6 = vadd.f32 %v877_v5, %v857_v4  ;;  %v4428_v4 = vld [vmem:[%s10257_s3 + $0x628] sm:$0xff]  ;;  %v4533_v5 = vld [vmem:[%s10257_s3 + $0x930] sm:$0xff] }
 0x159   : > { %4420 = vmatpush.msk.msra.mxu1 %vm619_vm0, %v878_v6  ;;  %v4426_v6 = vld [vmem:[%s10257_s3 + $0x618] sm:$0xff] }
 0x15a   : > { %4421 = vmatmul.msk.f32.vlgmr.msra.gmra.mxu1 %vm612_vm1, %v4415_v19 }
 0x15b   : > { %1075 = vmatpush.msrb.mxu1 %v4486_v20  ;;  %v4424_v20 = vld [vmem:[%s10257_s3 + $0x608] sm:$0xff] }
 0x15d   : > { %1076 = vmatpush.msrb.mxu1 %v4484_v7  ;;  %v4529_v7 = vld [vmem:[%s10257_s3 + $0x910] sm:$0xff] }
 0x15f   : > { %1077 = vmatpush.msrb.mxu1 %v4482_v8  ;;  %v4525_v8 = vld [vmem:[%s10257_s3 + $0x8f0] sm:$0xff] }
 0x160   : > { %v6358_v12 = vpop.f32.mrf.mxu0  ;;  %v6360_v13 = vpop.f32.mrf.mxu1 }
 0x161   : > { %1078 = vmatpush.msrb.mxu1 %v4480_v9  ;;  %v4527_v9 = vld [vmem:[%s10257_s3 + $0x900] sm:$0xff] }
 0x162   : > { %4422 = vmatmul.msk.f32.gmra.mxu1 %vm612_vm1, %v4416_v10 }
 0x163   : > { %1079 = vmatpush.msrb.mxu1 %v4478_v11  ;;  %v6520_v11 = vld.sshfl [vmem:[#allocation1 + $0x8] sm:$0xff pattern:$0x75316420] }
 0x165   : > { %1080 = vmatpush.msrb.mxu1 %v4476_v14  ;;  %v4523_v14 = vld [vmem:[%s10257_s3 + $0x8e0] sm:$0xff] }
 0x167   : > { %1081 = vmatpush.msrb.mxu1 %v4474_v15  ;;  %v4521_v15 = vld [vmem:[%s10257_s3 + $0x8d0] sm:$0xff] }
 0x169   : > { %1082 = vmatpush.msrb.mxu1 %v4472_v16  ;;  %v6375_v18 = vpop.f32.mrf.mxu0  ;;  %v6380_v22 = vpop.f32.mrf.mxu1  ;;  %v4517_v16 = vld [vmem:[%s10257_s3 + $0x8b0] sm:$0xff] }
 0x16b   : > { %1083 = vmatpush.msrb.mxu1 %v4470_v17  ;;  %v4515_v17 = vld [vmem:[%s10257_s3 + $0x8a0] sm:$0xff] }
 0x16d   : > { %1084 = vmatpush.msrb.mxu1 %v4468_v21  ;;  %v4513_v21 = vld [vmem:[%s10257_s3 + $0x890] sm:$0xff] }
 0x16f   : > { %1085 = vmatpush.msrb.mxu1 %v4466_v23  ;;  %v4511_v23 = vld [vmem:[%s10257_s3 + $0x880] sm:$0xff] }
 0x171   : > { %1086 = vmatpush.msrb.mxu1 %v4464_v24  ;;  %v4509_v24 = vld [vmem:[%s10257_s3 + $0x870] sm:$0xff] }
 0x172   : > { %v817_v27 = vpop.f32.mrf.mxu0  ;;  %v837_v28 = vpop.f32.mrf.mxu1 }
 0x173   : > { %1087 = vmatpush.msrb.mxu1 %v4462_v25  ;;  %v838_v30 = vadd.f32 %v837_v28, %v817_v27  ;;  %v4507_v25 = vld [vmem:[%s10257_s3 + $0x860] sm:$0xff]  ;;  %v4501_v28 = vld [vmem:[%s10257_s3 + $0x830] sm:$0xff] }
 0x174   : > { %v4503_v27 = vld [vmem:[%s10257_s3 + $0x840] sm:$0xff] }
 0x175   : > { %1088 = vmatpush.msrb.mxu1 %v4460_v26  ;;  %4417 = vmatpush.msk.msra.mxu0 %vm619_vm0, %v838_v30  ;;  %v4505_v26 = vld [vmem:[%s10257_s3 + $0x850] sm:$0xff] }
 0x176   : > { %4418 = vmatmul.msk.f32.vlgmr.msra.gmra.mxu0 %vm612_vm1, %v4415_v19  ;;  %v4531_v19 = vld [vmem:[%s10257_s3 + $0x920] sm:$0xff]  ;;  %v4497_v30 = vld [vmem:[%s10257_s3 + $0x810] sm:$0xff] }
 0x177   : > { %1089 = vmatpush.msrb.mxu1 %v4458_v29  ;;  %1055 = vmatpush.msrb.mxu0 %v4454_v31  ;;  %v4499_v29 = vld [vmem:[%s10257_s3 + $0x820] sm:$0xff] }
 0x178   : > { %v4495_v31 = vld [vmem:[%s10257_s3 + $0x800] sm:$0xff] }
 0x179   : > { %1090 = vmatpush.msrb.mxu1 %v4456_v32  ;;  %v1032_v35 = vpop.f32.mrf.mxu2  ;;  %v1052_v38 = vpop.f32.mrf.mxu3  ;;  %1056 = vmatpush.msrb.mxu0 %v4452_v33  ;;  %v4526_v32 = vld [vmem:[%s10257_s3 + $0x8f8] sm:$0xff]  ;;  %v4524_v33 = vld [vmem:[%s10257_s3 + $0x8e8] sm:$0xff] }
 0x17a   : > { %1091 = vmatmul.f32.vlgmr.msrb.gmra.mxu1 %v6151_v3  ;;  %v1053_v39 = vadd.f32 %v1052_v38, %v1032_v35  ;;  %v4553_v3 = vld [vmem:[%s10257_s3 + $0x9d0] sm:$0xff]  ;;  %v4520_v35 = vld [vmem:[%s10257_s3 + $0x8c8] sm:$0xff] }
 0x17b   : > { %1250 = vmatpush.msra.mxu1 %v4557_v34  ;;  %1057 = vmatpush.msrb.mxu0 %v4450_v36  ;;  %v4522_v34 = vld [vmem:[%s10257_s3 + $0x8d8] sm:$0xff]  ;;  %v4516_v38 = vld [vmem:[%s10257_s3 + $0x8a8] sm:$0xff] }
 0x17c   : > { %4489 = vmatpush.msk.msrb.mxu2 %vm619_vm0, %v1053_v39 }
 0x17d   : > { %1251 = vmatpush.msra.mxu1 %v4555_v37  ;;  %1058 = vmatpush.msrb.mxu0 %v4448_v40  ;;  %v4518_v37 = vld [vmem:[%s10257_s3 + $0x8b8] sm:$0xff] }
 0x17e   : > { %4490 = vmatmul.msk.f32.vlgmr.msrb.gmra.mxu2 %vm612_vm1, %v6424_v41  ;;  %4419 = vmatmul.msk.f32.gmra.mxu0 %vm612_vm1, %v4416_v10  ;;  %v6518_v10 = vld.sshfl [vmem:[#allocation1] sm:$0xff pattern:$0x75316420]  ;;  %v4514_v40 = vld [vmem:[%s10257_s3 + $0x898] sm:$0xff] }
 0x17f   : > { %1252 = vmatpush.msra.mxu1 %v4553_v3  ;;  %1059 = vmatpush.msrb.mxu0 %v4446_v43  ;;  %1440 = vst [vmem:[#allocation1] ss:$2 sm:$0xff] %v5728_v42  ;;  %v4512_v3 = vld [vmem:[%s10257_s3 + $0x888] sm:$0xff]  ;;  %v4510_v43 = vld [vmem:[%s10257_s3 + $0x878] sm:$0xff] }
 0x180   : > { %1270 = vmatpush.msra.mxu2 %v4526_v32 }
 0x181   : > { %1253 = vmatpush.msra.mxu1 %v4551_v44  ;;  %1060 = vmatpush.msrb.mxu0 %v4444_v45  ;;  %v4508_v44 = vld [vmem:[%s10257_s3 + $0x868] sm:$0xff] }
 0x182   : > { %1271 = vmatpush.msra.mxu2 %v4524_v33  ;;  %v4528_v33 = vld [vmem:[%s10257_s3 + $0x908] sm:$0xff] }
 0x183   : > { %1254 = vmatpush.msra.mxu1 %v4549_v46  ;;  %1061 = vmatpush.msrb.mxu0 %v4442_v47  ;;  %v4506_v46 = vld [vmem:[%s10257_s3 + $0x858] sm:$0xff] }
 0x184   : > { %1272 = vmatpush.msra.mxu2 %v4522_v34 }
 0x185   : > { %1255 = vmatpush.msra.mxu1 %v4547_v48  ;;  %1062 = vmatpush.msrb.mxu0 %v4440_v49  ;;  %v4504_v48 = vld [vmem:[%s10257_s3 + $0x848] sm:$0xff]  ;;  %v4502_v49 = vld [vmem:[%s10257_s3 + $0x838] sm:$0xff] }
 0x186   : > { %4491 = vmatmul.msk.f32.gmra.mxu2 %vm612_vm1, %v6457_v50 }
 0x187   : > { %1256 = vmatpush.msra.mxu1 %v4545_v51  ;;  %1063 = vmatpush.msrb.mxu0 %v4438_v52  ;;  %v4500_v51 = vld [vmem:[%s10257_s3 + $0x828] sm:$0xff] }
 0x188   : > { %1273 = vmatpush.msra.mxu2 %v4520_v35  ;;  %v6729_v35 = vld [vmem:[%s10255_s1 + $0x40] sm:$0xff] }
 0x189   : > { %1257 = vmatpush.msra.mxu1 %v4543_v53  ;;  %1064 = vmatpush.msrb.mxu0 %v4436_v54  ;;  %v4498_v54 = vld [vmem:[%s10257_s3 + $0x818] sm:$0xff] }
 0x18a   : > { %1274 = vmatpush.msra.mxu2 %v4518_v37  ;;  %v4629_v37 = vld [vmem:[%s10257_s3 + $0xbf0] sm:$0xff] }
 0x18b   : > { %1258 = vmatpush.msra.mxu1 %v4541_v55  ;;  %1065 = vmatpush.msrb.mxu0 %v4434_v56  ;;  %v4496_v56 = vld [vmem:[%s10257_s3 + $0x808] sm:$0xff] }
 0x18c   : > { %1275 = vmatpush.msra.mxu2 %v4516_v38  ;;  %v4567_v38 = vld [vmem:[%s10257_s3 + $0xa00] sm:$0xff] }
 0x18d   : > { %1259 = vmatpush.msra.mxu1 %v4539_v57  ;;  %1066 = vmatpush.msrb.mxu0 %v4432_v58  ;;  %v4558_v57 = vld [vmem:[%s10257_s3 + $0x9f8] sm:$0xff]  ;;  %v4597_v58 = vld [vmem:[%s10257_s3 + $0xaf0] sm:$0xff] }
 0x18e   : > { %1276 = vmatpush.msra.mxu2 %v4514_v40  ;;  %v6738_v40 = vld.sshfl [vmem:[#allocation1] sm:$0xff pattern:$0x75316420] }
 0x18f   : > { %1260 = vmatpush.msra.mxu1 %v4537_v59  ;;  %1067 = vmatpush.msrb.mxu0 %v4430_v60  ;;  %v4556_v59 = vld [vmem:[%s10257_s3 + $0x9e8] sm:$0xff]  ;;  %v4595_v60 = vld [vmem:[%s10257_s3 + $0xae0] sm:$0xff] }
 0x190   : > { %1277 = vmatpush.msra.mxu2 %v4512_v3  ;;  %v6740_v3 = vld.sshfl [vmem:[#allocation1 + $0x8] sm:$0xff pattern:$0x75316420] }
 0x191   : > { %1261 = vmatpush.msra.mxu1 %v4535_v61  ;;  %1068 = vmatpush.msrb.mxu0 %v4428_v4  ;;  %v4554_v61 = vld [vmem:[%s10257_s3 + $0x9d8] sm:$0xff]  ;;  %v4552_v4 = vld [vmem:[%s10257_s3 + $0x9c8] sm:$0xff]  ;;  %1655 = vst [vmem:[#allocation1] ss:$2 sm:$0xff] %v5728_v42 }
 0x192   : > { %1278 = vmatpush.msra.mxu2 %v4510_v43  ;;  %v4627_v43 = vld [vmem:[%s10257_s3 + $0xbe0] sm:$0xff] }
 0x193   : > { %1262 = vmatpush.msra.mxu1 %v4533_v5  ;;  %1069 = vmatpush.msrb.mxu0 %v4426_v6  ;;  %v4591_v5 = vld [vmem:[%s10257_s3 + $0xac0] sm:$0xff]  ;;  %v4550_v6 = vld [vmem:[%s10257_s3 + $0x9b8] sm:$0xff] }
 0x194   : > { %1279 = vmatpush.msra.mxu2 %v4508_v44  ;;  %v4625_v44 = vld [vmem:[%s10257_s3 + $0xbd0] sm:$0xff] }
 0x195   : > { %1263 = vmatpush.msra.mxu1 %v4531_v19  ;;  %1070 = vmatpush.msrb.mxu0 %v4424_v20  ;;  %v4548_v19 = vld [vmem:[%s10257_s3 + $0x9a8] sm:$0xff]  ;;  %v4589_v20 = vld [vmem:[%s10257_s3 + $0xab0] sm:$0xff] }
 0x196   : > { %1071 = vmatmul.f32.vlgmr.msrb.gmra.mxu0 %v6149_v2  ;;  %v4519_v2 = vld [vmem:[%s10257_s3 + $0x8c0] sm:$0xff]  ;;  %1280 = vmatpush.msra.mxu2 %v4506_v46  ;;  %v6759_v46 = vld [vmem:[%s10255_s1 + $0x48] sm:$0xff] }
 0x197   : > { %1264 = vmatpush.msra.mxu1 %v4529_v7  ;;  %1230 = vmatpush.msra.mxu0 %v4525_v8  ;;  %v4587_v7 = vld [vmem:[%s10257_s3 + $0xaa0] sm:$0xff]  ;;  %v4546_v8 = vld [vmem:[%s10257_s3 + $0x998] sm:$0xff] }
 0x198   : > { %1281 = vmatpush.msra.mxu2 %v4504_v48  ;;  %v4621_v48 = vld [vmem:[%s10257_s3 + $0xbb0] sm:$0xff] }
 0x199   : > { %1265 = vmatpush.msra.mxu1 %v4527_v9  ;;  %1231 = vmatpush.msra.mxu0 %v4523_v14  ;;  %v4544_v9 = vld [vmem:[%s10257_s3 + $0x988] sm:$0xff]  ;;  %v4542_v14 = vld [vmem:[%s10257_s3 + $0x978] sm:$0xff] }
 0x19a   : > { %1266 = vmatmul.f32.vlgmr.msra.gmra.mxu1 %v6520_v11  ;;  %1282 = vmatpush.msra.mxu2 %v4502_v49  ;;  %v4619_v49 = vld [vmem:[%s10257_s3 + $0xba0] sm:$0xff] }
 0x19b   : > { %1232 = vmatpush.msra.mxu0 %v4521_v15  ;;  %v4581_v15 = vld [vmem:[%s10257_s3 + $0xa70] sm:$0xff] }
 0x19c   : > { %1283 = vmatpush.msra.mxu2 %v4500_v51  ;;  %v4617_v51 = vld [vmem:[%s10257_s3 + $0xb90] sm:$0xff] }
 0x19d   : > { %1233 = vmatpush.msra.mxu0 %v4519_v2  ;;  %v4540_v2 = vld [vmem:[%s10257_s3 + $0x968] sm:$0xff] }
 0x19e   : > { %1284 = vmatpush.msra.mxu2 %v4498_v54  ;;  %v4611_v54 = vld [vmem:[%s10257_s3 + $0xb60] sm:$0xff] }
 0x19f   : > { %1234 = vmatpush.msra.mxu0 %v4517_v16  ;;  %v4579_v16 = vld [vmem:[%s10257_s3 + $0xa60] sm:$0xff] }
 0x1a0   : > { %1285 = vmatpush.msra.mxu2 %v4496_v56  ;;  %v4607_v56 = vld [vmem:[%s10257_s3 + $0xb40] sm:$0xff] }
 0x1a1   : > { %1235 = vmatpush.msra.mxu0 %v4515_v17  ;;  %1286 = vmatmul.f32.vlgmr.msra.gmra.mxu2 %v6518_v10  ;;  %v4538_v17 = vld [vmem:[%s10257_s3 + $0x958] sm:$0xff] }
 0x1a2   : > { %1445 = vmatpush.msrb.mxu2 %v4597_v58  ;;  %v4603_v58 = vld [vmem:[%s10257_s3 + $0xb20] sm:$0xff] }
 0x1a3   : > { %1236 = vmatpush.msra.mxu0 %v4513_v21  ;;  %v4577_v21 = vld [vmem:[%s10257_s3 + $0xa50] sm:$0xff] }
 0x1a4   : > { %1446 = vmatpush.msrb.mxu2 %v4595_v60  ;;  %v4599_v60 = vld [vmem:[%s10257_s3 + $0xb00] sm:$0xff] }
 0x1a5   : > { %1237 = vmatpush.msra.mxu0 %v4511_v23  ;;  %v4536_v23 = vld [vmem:[%s10257_s3 + $0x948] sm:$0xff] }
 0x1a7   : > { %1238 = vmatpush.msra.mxu0 %v4509_v24  ;;  %v4575_v24 = vld [vmem:[%s10257_s3 + $0xa40] sm:$0xff] }
 0x1a9   : > { %1239 = vmatpush.msra.mxu0 %v4507_v25  ;;  %v4534_v25 = vld [vmem:[%s10257_s3 + $0x938] sm:$0xff] }
 0x1ab   : > { %1240 = vmatpush.msra.mxu0 %v4505_v26  ;;  %v4573_v26 = vld [vmem:[%s10257_s3 + $0xa30] sm:$0xff] }
 0x1ad   : > { %1241 = vmatpush.msra.mxu0 %v4503_v27  ;;  %v4532_v27 = vld [vmem:[%s10257_s3 + $0x928] sm:$0xff] }
 0x1af   : > { %1242 = vmatpush.msra.mxu0 %v4501_v28  ;;  %v4571_v28 = vld [vmem:[%s10257_s3 + $0xa20] sm:$0xff] }
 0x1b1   : > { %1243 = vmatpush.msra.mxu0 %v4499_v29 }
 0x1b3   : > { %1244 = vmatpush.msra.mxu0 %v4497_v30  ;;  %v4530_v30 = vld [vmem:[%s10257_s3 + $0x918] sm:$0xff] }
 0x1b5   : > { %1245 = vmatpush.msra.mxu0 %v4495_v31  ;;  %v4569_v31 = vld [vmem:[%s10257_s3 + $0xa10] sm:$0xff] }
 0x1b6   : > { %1246 = vmatmul.f32.vlgmr.msra.gmra.mxu0 %v6518_v10  ;;  %v4583_v10 = vld [vmem:[%s10257_s3 + $0xa80] sm:$0xff] }
 0x1d7   : > { %v6583_v36 = vpop.f32.mrf.mxu1 }
 0x1df   : > { %v6605_v45 = vpop.f32.mrf.mxu1 }
 0x1f3   : > { %v6591_v39 = vpop.f32.mrf.mxu0 }
 0x1f7   : > { %v1092_v52 = vpop.f32.mrf.mxu1 }
 0x1fb   : > { %v6610_v47 = vpop.f32.mrf.mxu0 }
 0x213   : > { %v1072_v53 = vpop.f32.mrf.mxu0 }
 0x214   : > { %v1093_v55 = vadd.f32 %v1092_v52, %v1072_v53  ;;  %v4615_v52 = vld [vmem:[%s10257_s3 + $0xb80] sm:$0xff]  ;;  %v4613_v53 = vld [vmem:[%s10257_s3 + $0xb70] sm:$0xff] }
 0x216   : > { %4492 = vmatpush.msk.msrb.mxu3 %vm619_vm0, %v1093_v55  ;;  %v4609_v55 = vld [vmem:[%s10257_s3 + $0xb50] sm:$0xff] }
 0x217   : > { %4493 = vmatmul.msk.f32.vlgmr.msrb.gmra.mxu3 %vm612_vm1, %v6424_v41  ;;  %v4593_v41 = vld [vmem:[%s10257_s3 + $0xad0] sm:$0xff]  ;;  %v1267_v29 = vpop.f32.mrf.mxu1 }
 0x218   : > { %1290 = vmatpush.msra.mxu3 %v4558_v57  ;;  %1447 = vmatpush.msrb.mxu2 %v4593_v41  ;;  %v4605_v57 = vld [vmem:[%s10257_s3 + $0xb30] sm:$0xff]  ;;  %v4596_v41 = vld [vmem:[%s10257_s3 + $0xae8] sm:$0xff] }
 0x21a   : > { %1291 = vmatpush.msra.mxu3 %v4556_v59  ;;  %1448 = vmatpush.msrb.mxu2 %v4591_v5  ;;  %v4601_v59 = vld [vmem:[%s10257_s3 + $0xb10] sm:$0xff]  ;;  %v4592_v5 = vld [vmem:[%s10257_s3 + $0xac8] sm:$0xff] }
 0x21c   : > { %1292 = vmatpush.msra.mxu3 %v4554_v61  ;;  %1449 = vmatpush.msrb.mxu2 %v4589_v20  ;;  %v4598_v61 = vld [vmem:[%s10257_s3 + $0xaf8] sm:$0xff]  ;;  %v4588_v20 = vld [vmem:[%s10257_s3 + $0xaa8] sm:$0xff] }
 0x21e   : > { %1293 = vmatpush.msra.mxu3 %v4552_v4  ;;  %1450 = vmatpush.msrb.mxu2 %v4587_v7  ;;  %v4594_v4 = vld [vmem:[%s10257_s3 + $0xad8] sm:$0xff] }
 0x21f   : > { %4494 = vmatmul.msk.f32.gmra.mxu3 %vm612_vm1, %v6457_v50  ;;  %v4585_v50 = vld [vmem:[%s10257_s3 + $0xa90] sm:$0xff] }
 0x220   : > { %1294 = vmatpush.msra.mxu3 %v4550_v6  ;;  %1451 = vmatpush.msrb.mxu2 %v4585_v50  ;;  %v6812_v6 = vpop.f32.mrf.mxu2  ;;  %v4584_v50 = vld [vmem:[%s10257_s3 + $0xa88] sm:$0xff] }
 0x222   : > { %1295 = vmatpush.msra.mxu3 %v4548_v19  ;;  %1452 = vmatpush.msrb.mxu2 %v4583_v10  ;;  %v4590_v19 = vld [vmem:[%s10257_s3 + $0xab8] sm:$0xff]  ;;  %v4580_v10 = vld [vmem:[%s10257_s3 + $0xa68] sm:$0xff] }
 0x224   : > { %1296 = vmatpush.msra.mxu3 %v4546_v8  ;;  %1453 = vmatpush.msrb.mxu2 %v4581_v15  ;;  %v4586_v8 = vld [vmem:[%s10257_s3 + $0xa98] sm:$0xff] }
 0x225   : > { %v4578_v15 = vld [vmem:[%s10257_s3 + $0xa58] sm:$0xff] }
 0x226   : > { %1297 = vmatpush.msra.mxu3 %v4544_v9  ;;  %1454 = vmatpush.msrb.mxu2 %v4579_v16  ;;  %v4582_v9 = vld [vmem:[%s10257_s3 + $0xa78] sm:$0xff]  ;;  %v4576_v16 = vld [vmem:[%s10257_s3 + $0xa48] sm:$0xff] }
 0x228   : > { %1298 = vmatpush.msra.mxu3 %v4542_v14  ;;  %1455 = vmatpush.msrb.mxu2 %v4577_v21  ;;  %v6834_v14 = vpop.f32.mrf.mxu2  ;;  %v4572_v21 = vld [vmem:[%s10257_s3 + $0xa28] sm:$0xff] }
 0x22a   : > { %1299 = vmatpush.msra.mxu3 %v4540_v2  ;;  %1456 = vmatpush.msrb.mxu2 %v4575_v24 }
 0x22c   : > { %1300 = vmatpush.msra.mxu3 %v4538_v17  ;;  %1457 = vmatpush.msrb.mxu2 %v4573_v26  ;;  %v4574_v17 = vld [vmem:[%s10257_s3 + $0xa38] sm:$0xff] }
 0x22e   : > { %1301 = vmatpush.msra.mxu3 %v4536_v23  ;;  %1458 = vmatpush.msrb.mxu2 %v4571_v28  ;;  %v4630_v28 = vld [vmem:[%s10257_s3 + $0xbf8] sm:$0xff] }
 0x230   : > { %1302 = vmatpush.msra.mxu3 %v4534_v25  ;;  %1459 = vmatpush.msrb.mxu2 %v4569_v31  ;;  %v1287_v23 = vpop.f32.mrf.mxu2  ;;  %v4570_v25 = vld [vmem:[%s10257_s3 + $0xa18] sm:$0xff]  ;;  %v4667_v31 = vld [vmem:[%s10257_s3 + $0xce0] sm:$0xff] }
 0x232   : > { %1303 = vmatpush.msra.mxu3 %v4532_v27  ;;  %1460 = vmatpush.msrb.mxu2 %v4567_v38  ;;  %v4568_v27 = vld [vmem:[%s10257_s3 + $0xa08] sm:$0xff] }
 0x233   : > { %v1247_v32 = vpop.f32.mrf.mxu0  ;;  %1461 = vmatmul.f32.vlgmr.msrb.gmra.mxu2 %v6738_v40  ;;  %v4620_v38 = vld [vmem:[%s10257_s3 + $0xba8] sm:$0xff] }
 0x234   : > { %v1268_v34 = vadd.f32 %v1267_v29, %v1247_v32  ;;  %1304 = vmatpush.msra.mxu3 %v4530_v30  ;;  %v4669_v29 = vld [vmem:[%s10257_s3 + $0xcf0] sm:$0xff]  ;;  %v4628_v30 = vld [vmem:[%s10257_s3 + $0xbe8] sm:$0xff]  ;;  %v4626_v32 = vld [vmem:[%s10257_s3 + $0xbd8] sm:$0xff] }
 0x236   : > { %1305 = vmatpush.msra.mxu3 %v4528_v33  ;;  %4561 = vmatpush.msk.msrb.mxu0 %vm619_vm0, %v1268_v34  ;;  %v4665_v33 = vld [vmem:[%s10257_s3 + $0xcd0] sm:$0xff]  ;;  %v4624_v34 = vld [vmem:[%s10257_s3 + $0xbc8] sm:$0xff] }
 0x237   : > { %1306 = vmatmul.f32.vlgmr.msra.gmra.mxu3 %v6520_v11  ;;  %4562 = vmatmul.msk.f32.vlgmr.msrb.gmra.mxu0 %vm612_vm1, %v6729_v35  ;;  %v4623_v11 = vld [vmem:[%s10257_s3 + $0xbc0] sm:$0xff] }
 0x238   : > { %1465 = vmatpush.msrb.mxu3 %v4629_v37  ;;  %1485 = vmatpush.msra.mxu0 %v4598_v61  ;;  %v4622_v37 = vld [vmem:[%s10257_s3 + $0xbb8] sm:$0xff]  ;;  %v4643_v61 = vld [vmem:[%s10257_s3 + $0xc20] sm:$0xff] }
 0x23a   : > { %1466 = vmatpush.msrb.mxu3 %v4627_v43  ;;  %1486 = vmatpush.msra.mxu0 %v4596_v41  ;;  %v4659_v43 = vld [vmem:[%s10257_s3 + $0xca0] sm:$0xff] }
 0x23c   : > { %1467 = vmatpush.msrb.mxu3 %v4625_v44  ;;  %1487 = vmatpush.msra.mxu0 %v4594_v4  ;;  %v4618_v44 = vld [vmem:[%s10257_s3 + $0xb98] sm:$0xff] }
 0x23d   : > { %v4602_v4 = vld [vmem:[%s10257_s3 + $0xb18] sm:$0xff] }
 0x23e   : > { %1468 = vmatpush.msrb.mxu3 %v4623_v11  ;;  %1488 = vmatpush.msra.mxu0 %v4592_v5  ;;  %v4657_v11 = vld [vmem:[%s10257_s3 + $0xc90] sm:$0xff] }
 0x23f   : > { %4563 = vmatmul.msk.f32.gmra.mxu0 %vm612_vm1, %v6759_v46  ;;  %v4641_v5 = vld [vmem:[%s10257_s3 + $0xc10] sm:$0xff] }
 0x240   : > { %1469 = vmatpush.msrb.mxu3 %v4621_v48  ;;  %1489 = vmatpush.msra.mxu0 %v4590_v19  ;;  %v4655_v48 = vld [vmem:[%s10257_s3 + $0xc80] sm:$0xff] }
 0x242   : > { %1470 = vmatpush.msrb.mxu3 %v4619_v49  ;;  %1490 = vmatpush.msra.mxu0 %v4588_v20  ;;  %v4614_v49 = vld [vmem:[%s10257_s3 + $0xb78] sm:$0xff]  ;;  %v4600_v20 = vld [vmem:[%s10257_s3 + $0xb08] sm:$0xff] }
 0x244   : > { %1471 = vmatpush.msrb.mxu3 %v4617_v51  ;;  %1491 = vmatpush.msra.mxu0 %v4586_v8  ;;  %v4653_v51 = vld [vmem:[%s10257_s3 + $0xc70] sm:$0xff] }
 0x246   : > { %1472 = vmatpush.msrb.mxu3 %v4615_v52  ;;  %1492 = vmatpush.msra.mxu0 %v4584_v50  ;;  %v4612_v52 = vld [vmem:[%s10257_s3 + $0xb68] sm:$0xff]  ;;  %v6958_v50 = vld [vmem:[%s10255_s1 + $0x50] sm:$0xff] }
 0x248   : > { %1473 = vmatpush.msrb.mxu3 %v4613_v53  ;;  %1493 = vmatpush.msra.mxu0 %v4582_v9  ;;  %v4651_v53 = vld [vmem:[%s10257_s3 + $0xc60] sm:$0xff]  ;;  %v4701_v9 = vld [vmem:[%s10257_s3 + $0xdf0] sm:$0xff] }
 0x24a   : > { %1474 = vmatpush.msrb.mxu3 %v4611_v54  ;;  %1494 = vmatpush.msra.mxu0 %v4580_v10  ;;  %v4610_v54 = vld [vmem:[%s10257_s3 + $0xb58] sm:$0xff]  ;;  %v4639_v10 = vld [vmem:[%s10257_s3 + $0xc00] sm:$0xff] }
 0x24c   : > { %1475 = vmatpush.msrb.mxu3 %v4609_v55  ;;  %1495 = vmatpush.msra.mxu0 %v4578_v15  ;;  %v4649_v55 = vld [vmem:[%s10257_s3 + $0xc50] sm:$0xff]  ;;  %v6967_v15 = vld.sshfl [vmem:[#allocation1] sm:$0xff pattern:$0x75316420] }
 0x24e   : > { %1476 = vmatpush.msrb.mxu3 %v4607_v56  ;;  %1496 = vmatpush.msra.mxu0 %v4576_v16  ;;  %v4608_v56 = vld [vmem:[%s10257_s3 + $0xb48] sm:$0xff] }
 0x24f   : > { %v6969_v16 = vld.sshfl [vmem:[#allocation1 + $0x8] sm:$0xff pattern:$0x75316420] }
 0x250   : > { %1477 = vmatpush.msrb.mxu3 %v4605_v57  ;;  %1497 = vmatpush.msra.mxu0 %v4574_v17  ;;  %v4647_v57 = vld [vmem:[%s10257_s3 + $0xc40] sm:$0xff]  ;;  %1870 = vst [vmem:[#allocation1] ss:$2 sm:$0xff] %v5728_v42 }
 0x251   : > { %v4699_v17 = vld [vmem:[%s10257_s3 + $0xde0] sm:$0xff] }
 0x252   : > { %1478 = vmatpush.msrb.mxu3 %v4603_v58  ;;  %1498 = vmatpush.msra.mxu0 %v4572_v21  ;;  %v4606_v58 = vld [vmem:[%s10257_s3 + $0xb38] sm:$0xff]  ;;  %v4697_v21 = vld [vmem:[%s10257_s3 + $0xdd0] sm:$0xff] }
 0x254   : > { %1479 = vmatpush.msrb.mxu3 %v4601_v59  ;;  %1499 = vmatpush.msra.mxu0 %v4570_v25  ;;  %v4645_v59 = vld [vmem:[%s10257_s3 + $0xc30] sm:$0xff]  ;;  %v4691_v25 = vld [vmem:[%s10257_s3 + $0xda0] sm:$0xff] }
 0x256   : > { %1480 = vmatpush.msrb.mxu3 %v4599_v60  ;;  %1500 = vmatpush.msra.mxu0 %v4568_v27  ;;  %v4604_v60 = vld [vmem:[%s10257_s3 + $0xb28] sm:$0xff]  ;;  %v4687_v27 = vld [vmem:[%s10257_s3 + $0xd80] sm:$0xff] }
 0x257   : > { %1481 = vmatmul.f32.vlgmr.msrb.gmra.mxu3 %v6740_v3  ;;  %1501 = vmatmul.f32.vlgmr.msra.gmra.mxu0 %v6738_v40  ;;  %v4661_v40 = vld [vmem:[%s10257_s3 + $0xcb0] sm:$0xff] }
 0x258   : > { %1660 = vmatpush.msrb.mxu0 %v4669_v29  ;;  %v4683_v29 = vld [vmem:[%s10257_s3 + $0xd60] sm:$0xff] }
 0x25a   : > { %1661 = vmatpush.msrb.mxu0 %v4667_v31  ;;  %v4679_v31 = vld [vmem:[%s10257_s3 + $0xd40] sm:$0xff] }
 0x25c   : > { %1662 = vmatpush.msrb.mxu0 %v4665_v33  ;;  %v4675_v33 = vld [vmem:[%s10257_s3 + $0xd20] sm:$0xff] }
 0x29a   : > { %v6820_v7 = vpop.f32.mrf.mxu3 }
 0x2a2   : > { %v6839_v2 = vpop.f32.mrf.mxu3 }
 0x2b6   : > { %v1462_v41 = vpop.f32.mrf.mxu2 }
 0x2ba   : > { %v1307_v24 = vpop.f32.mrf.mxu3 }
 0x2bb   : > { %v1308_v26 = vadd.f32 %v1307_v24, %v1287_v23  ;;  %v6988_v23 = vld [vmem:[%s10255_s1 + $0x58] sm:$0xff]  ;;  %v4693_v24 = vld [vmem:[%s10257_s3 + $0xdb0] sm:$0xff] }
 0x2bd   : > { %4564 = vmatpush.msk.msrb.mxu1 %vm619_vm0, %v1308_v26  ;;  %v4689_v26 = vld [vmem:[%s10257_s3 + $0xd90] sm:$0xff] }
 0x2be   : > { %4565 = vmatmul.msk.f32.vlgmr.msrb.gmra.mxu1 %vm612_vm1, %v6729_v35  ;;  %v4663_v35 = vld [vmem:[%s10257_s3 + $0xcc0] sm:$0xff] }
 0x2bf   : > { %1505 = vmatpush.msra.mxu1 %v4630_v28  ;;  %1663 = vmatpush.msrb.mxu0 %v4663_v35  ;;  %v4685_v28 = vld [vmem:[%s10257_s3 + $0xd70] sm:$0xff]  ;;  %v4671_v35 = vld [vmem:[%s10257_s3 + $0xd00] sm:$0xff] }
 0x2c1   : > { %1506 = vmatpush.msra.mxu1 %v4628_v30  ;;  %1664 = vmatpush.msrb.mxu0 %v4661_v40  ;;  %v4681_v30 = vld [vmem:[%s10257_s3 + $0xd50] sm:$0xff]  ;;  %v4666_v40 = vld [vmem:[%s10257_s3 + $0xcd8] sm:$0xff] }
 0x2c3   : > { %1507 = vmatpush.msra.mxu1 %v4626_v32  ;;  %1665 = vmatpush.msrb.mxu0 %v4659_v43  ;;  %v4677_v32 = vld [vmem:[%s10257_s3 + $0xd30] sm:$0xff]  ;;  %v4664_v43 = vld [vmem:[%s10257_s3 + $0xcc8] sm:$0xff] }
 0x2c5   : > { %1508 = vmatpush.msra.mxu1 %v4624_v34  ;;  %1666 = vmatpush.msrb.mxu0 %v4657_v11  ;;  %v4673_v34 = vld [vmem:[%s10257_s3 + $0xd10] sm:$0xff]  ;;  %v4662_v11 = vld [vmem:[%s10257_s3 + $0xcb8] sm:$0xff] }
 0x2c6   : > { %4566 = vmatmul.msk.f32.gmra.mxu1 %vm612_vm1, %v6759_v46  ;;  %v4616_v46 = vld [vmem:[%s10257_s3 + $0xb88] sm:$0xff] }
 0x2c7   : > { %1509 = vmatpush.msra.mxu1 %v4622_v37  ;;  %1667 = vmatpush.msrb.mxu0 %v4655_v48  ;;  %v4670_v37 = vld [vmem:[%s10257_s3 + $0xcf8] sm:$0xff]  ;;  %v4660_v48 = vld [vmem:[%s10257_s3 + $0xca8] sm:$0xff] }
 0x2c9   : > { %1510 = vmatpush.msra.mxu1 %v4620_v38  ;;  %1668 = vmatpush.msrb.mxu0 %v4653_v51  ;;  %v4668_v38 = vld [vmem:[%s10257_s3 + $0xce8] sm:$0xff] }
 0x2ca   : > { %v4656_v51 = vld [vmem:[%s10257_s3 + $0xc88] sm:$0xff] }
 0x2cb   : > { %1511 = vmatpush.msra.mxu1 %v4618_v44  ;;  %1669 = vmatpush.msrb.mxu0 %v4651_v53  ;;  %v7041_v44 = vpop.f32.mrf.mxu0  ;;  %v4652_v53 = vld [vmem:[%s10257_s3 + $0xc68] sm:$0xff] }
 0x2cd   : > { %1512 = vmatpush.msra.mxu1 %v4616_v46  ;;  %1670 = vmatpush.msrb.mxu0 %v4649_v55  ;;  %v4650_v55 = vld [vmem:[%s10257_s3 + $0xc58] sm:$0xff] }
 0x2cf   : > { %1513 = vmatpush.msra.mxu1 %v4614_v49  ;;  %1671 = vmatpush.msrb.mxu0 %v4647_v57  ;;  %v4658_v49 = vld [vmem:[%s10257_s3 + $0xc98] sm:$0xff]  ;;  %v4648_v57 = vld [vmem:[%s10257_s3 + $0xc48] sm:$0xff] }
 0x2d1   : > { %1514 = vmatpush.msra.mxu1 %v4612_v52  ;;  %1672 = vmatpush.msrb.mxu0 %v4645_v59  ;;  %v4654_v52 = vld [vmem:[%s10257_s3 + $0xc78] sm:$0xff]  ;;  %v4644_v59 = vld [vmem:[%s10257_s3 + $0xc28] sm:$0xff] }
 0x2d3   : > { %1515 = vmatpush.msra.mxu1 %v4610_v54  ;;  %1673 = vmatpush.msrb.mxu0 %v4643_v61  ;;  %v7063_v54 = vpop.f32.mrf.mxu0 }
 0x2d5   : > { %1516 = vmatpush.msra.mxu1 %v4608_v56  ;;  %1674 = vmatpush.msrb.mxu0 %v4641_v5  ;;  %v4640_v5 = vld [vmem:[%s10257_s3 + $0xc08] sm:$0xff] }
 0x2d7   : > { %1517 = vmatpush.msra.mxu1 %v4606_v58  ;;  %1675 = vmatpush.msrb.mxu0 %v4639_v10  ;;  %v4646_v58 = vld [vmem:[%s10257_s3 + $0xc38] sm:$0xff] }
 0x2d8   : > { %1676 = vmatmul.f32.vlgmr.msrb.gmra.mxu0 %v6967_v15  ;;  %v4698_v10 = vld [vmem:[%s10257_s3 + $0xdd8] sm:$0xff] }
 0x2d9   : > { %1518 = vmatpush.msra.mxu1 %v4604_v60 }
 0x2da   : > { %v1482_v19 = vpop.f32.mrf.mxu3 }
 0x2db   : > { %v1483_v8 = vadd.f32 %v1482_v19, %v1462_v41  ;;  %1519 = vmatpush.msra.mxu1 %v4602_v4  ;;  %v1502_v60 = vpop.f32.mrf.mxu0  ;;  %v4642_v41 = vld [vmem:[%s10257_s3 + $0xc18] sm:$0xff] }
 0x2dc   : > { %v4702_v19 = vld [vmem:[%s10257_s3 + $0xdf8] sm:$0xff] }
 0x2dd   : > { %1520 = vmatpush.msra.mxu1 %v4600_v20  ;;  %4633 = vmatpush.msk.msra.mxu2 %vm619_vm0, %v1483_v8  ;;  %v4741_v20 = vld [vmem:[%s10257_s3 + $0xef0] sm:$0xff]  ;;  %v4700_v8 = vld [vmem:[%s10257_s3 + $0xde8] sm:$0xff] }
 0x2de   : > { %1521 = vmatmul.f32.vlgmr.msra.gmra.mxu1 %v6740_v3  ;;  %4634 = vmatmul.msk.f32.vlgmr.msra.gmra.mxu2 %vm612_vm1, %v6958_v50  ;;  %v4695_v3 = vld [vmem:[%s10257_s3 + $0xdc0] sm:$0xff] }
 0x2df   : > { %1680 = vmatpush.msrb.mxu1 %v4701_v9  ;;  %1700 = vmatpush.msrb.mxu2 %v4670_v37  ;;  %v4739_v9 = vld [vmem:[%s10257_s3 + $0xee0] sm:$0xff] }
 0x2e0   : > { %v4719_v37 = vld [vmem:[%s10257_s3 + $0xe40] sm:$0xff] }
 0x2e1   : > { %1681 = vmatpush.msrb.mxu1 %v4699_v17  ;;  %1701 = vmatpush.msrb.mxu2 %v4668_v38  ;;  %v4735_v17 = vld [vmem:[%s10257_s3 + $0xec0] sm:$0xff]  ;;  %v4678_v38 = vld [vmem:[%s10257_s3 + $0xd38] sm:$0xff] }
 0x2e3   : > { %1682 = vmatpush.msrb.mxu1 %v4697_v21  ;;  %1702 = vmatpush.msrb.mxu2 %v4666_v40  ;;  %v4694_v21 = vld [vmem:[%s10257_s3 + $0xdb8] sm:$0xff]  ;;  %v4717_v40 = vld [vmem:[%s10257_s3 + $0xe30] sm:$0xff] }
 0x2e5   : > { %1683 = vmatpush.msrb.mxu1 %v4695_v3  ;;  %1703 = vmatpush.msrb.mxu2 %v4664_v43  ;;  %v4692_v3 = vld [vmem:[%s10257_s3 + $0xda8] sm:$0xff] }
 0x2e6   : > { %4635 = vmatmul.msk.f32.gmra.mxu2 %vm612_vm1, %v6988_v23  ;;  %v4676_v43 = vld [vmem:[%s10257_s3 + $0xd28] sm:$0xff] }
 0x2e7   : > { %1684 = vmatpush.msrb.mxu1 %v4693_v24  ;;  %1704 = vmatpush.msrb.mxu2 %v4662_v11  ;;  %v4733_v24 = vld [vmem:[%s10257_s3 + $0xeb0] sm:$0xff]  ;;  %v4715_v11 = vld [vmem:[%s10257_s3 + $0xe20] sm:$0xff] }
 0x2e9   : > { %1685 = vmatpush.msrb.mxu1 %v4691_v25  ;;  %1705 = vmatpush.msrb.mxu2 %v4660_v48  ;;  %v4731_v25 = vld [vmem:[%s10257_s3 + $0xea0] sm:$0xff] }
 0x2eb   : > { %1686 = vmatpush.msrb.mxu1 %v4689_v26  ;;  %1706 = vmatpush.msrb.mxu2 %v4658_v49  ;;  %v4690_v26 = vld [vmem:[%s10257_s3 + $0xd98] sm:$0xff] }
 0x2ec   : > { %v4674_v49 = vld [vmem:[%s10257_s3 + $0xd18] sm:$0xff] }
 0x2ed   : > { %1687 = vmatpush.msrb.mxu1 %v4687_v27  ;;  %1707 = vmatpush.msrb.mxu2 %v4656_v51  ;;  %v4688_v27 = vld [vmem:[%s10257_s3 + $0xd88] sm:$0xff]  ;;  %v4713_v51 = vld [vmem:[%s10257_s3 + $0xe10] sm:$0xff] }
 0x2ef   : > { %1688 = vmatpush.msrb.mxu1 %v4685_v28  ;;  %1708 = vmatpush.msrb.mxu2 %v4654_v52  ;;  %v4727_v28 = vld [vmem:[%s10257_s3 + $0xe80] sm:$0xff] }
 0x2f1   : > { %1689 = vmatpush.msrb.mxu1 %v4683_v29  ;;  %1709 = vmatpush.msrb.mxu2 %v4652_v53  ;;  %v4686_v29 = vld [vmem:[%s10257_s3 + $0xd78] sm:$0xff]  ;;  %v4672_v53 = vld [vmem:[%s10257_s3 + $0xd08] sm:$0xff] }
 0x2f3   : > { %1690 = vmatpush.msrb.mxu1 %v4681_v30  ;;  %1710 = vmatpush.msrb.mxu2 %v4650_v55  ;;  %v4725_v30 = vld [vmem:[%s10257_s3 + $0xe70] sm:$0xff] }
 0x2f5   : > { %1691 = vmatpush.msrb.mxu1 %v4679_v31  ;;  %1711 = vmatpush.msrb.mxu2 %v4648_v57  ;;  %v4684_v31 = vld [vmem:[%s10257_s3 + $0xd68] sm:$0xff]  ;;  %v7187_v57 = vld [vmem:[%s10255_s1 + $0x60] sm:$0xff] }
 0x2f7   : > { %1692 = vmatpush.msrb.mxu1 %v4677_v32  ;;  %1712 = vmatpush.msrb.mxu2 %v4646_v58  ;;  %v4723_v32 = vld [vmem:[%s10257_s3 + $0xe60] sm:$0xff]  ;;  %v4773_v58 = vld [vmem:[%s10257_s3 + $0xff0] sm:$0xff] }
 0x2f9   : > { %1693 = vmatpush.msrb.mxu1 %v4675_v33  ;;  %1713 = vmatpush.msrb.mxu2 %v4644_v59  ;;  %v4682_v33 = vld [vmem:[%s10257_s3 + $0xd58] sm:$0xff]  ;;  %v4711_v59 = vld [vmem:[%s10257_s3 + $0xe00] sm:$0xff] }
 0x2fb   : > { %1694 = vmatpush.msrb.mxu1 %v4673_v34  ;;  %1714 = vmatpush.msrb.mxu2 %v4642_v41  ;;  %v4721_v34 = vld [vmem:[%s10257_s3 + $0xe50] sm:$0xff]  ;;  %v4771_v41 = vld [vmem:[%s10257_s3 + $0xfe0] sm:$0xff] }
 0x2fd   : > { %1695 = vmatpush.msrb.mxu1 %v4671_v35  ;;  %1715 = vmatpush.msrb.mxu2 %v4640_v5  ;;  %v4680_v35 = vld [vmem:[%s10257_s3 + $0xd48] sm:$0xff] }
 0x2fe   : > { %1696 = vmatmul.f32.vlgmr.msrb.gmra.mxu1 %v6969_v16  ;;  %1716 = vmatmul.f32.vlgmr.msrb.gmra.mxu2 %v6967_v15  ;;  %v4696_v15 = vld [vmem:[%s10257_s3 + $0xdc8] sm:$0xff] }
 0x2ff   : > { %1875 = vmatpush.msra.mxu2 %v4741_v20  ;;  %v7217_v5 = vld [vmem:[%s10255_s1 + $0x68] sm:$0xff]  ;;  %v4761_v20 = vld [vmem:[%s10257_s3 + $0xf90] sm:$0xff] }
 0x301   : > { %1876 = vmatpush.msra.mxu2 %v4739_v9  ;;  %v4757_v9 = vld [vmem:[%s10257_s3 + $0xf70] sm:$0xff] }
 0x33b   : > { %v7046_v46 = vpop.f32.mrf.mxu1 }
 0x343   : > { %v7068_v56 = vpop.f32.mrf.mxu1 }
 0x355   : > { %v1677_v48 = vpop.f32.mrf.mxu0 }
 0x35b   : > { %v1522_v61 = vpop.f32.mrf.mxu1 }
 0x35c   : > { %v1523_v4 = vadd.f32 %v1522_v61, %v1502_v60  ;;  %v7196_v60 = vld.sshfl [vmem:[#allocation1] sm:$0xff pattern:$0x75316420]  ;;  %v7198_v61 = vld.sshfl [vmem:[#allocation1 + $0x8] sm:$0xff pattern:$0x75316420] }
 0x35d   : > { %2085 = vst [vmem:[#allocation1] ss:$2 sm:$0xff] %v5728_v42  ;;  %v4765_v42 = vld [vmem:[%s10257_s3 + $0xfb0] sm:$0xff] }
 0x35e   : > { %4636 = vmatpush.msk.msra.mxu3 %vm619_vm0, %v1523_v4  ;;  %v4769_v4 = vld [vmem:[%s10257_s3 + $0xfd0] sm:$0xff] }
 0x35f   : > { %4637 = vmatmul.msk.f32.vlgmr.msra.gmra.mxu3 %vm612_vm1, %v6958_v50  ;;  %v4737_v50 = vld [vmem:[%s10257_s3 + $0xed0] sm:$0xff] }
 0x360   : > { %1720 = vmatpush.msrb.mxu3 %v4702_v19  ;;  %1877 = vmatpush.msra.mxu2 %v4737_v50  ;;  %v4763_v19 = vld [vmem:[%s10257_s3 + $0xfa0] sm:$0xff]  ;;  %v4753_v50 = vld [vmem:[%s10257_s3 + $0xf50] sm:$0xff] }
 0x362   : > { %1721 = vmatpush.msrb.mxu3 %v4700_v8  ;;  %1878 = vmatpush.msra.mxu2 %v4735_v17  ;;  %v4759_v8 = vld [vmem:[%s10257_s3 + $0xf80] sm:$0xff]  ;;  %v4749_v17 = vld [vmem:[%s10257_s3 + $0xf30] sm:$0xff] }
 0x364   : > { %1722 = vmatpush.msrb.mxu3 %v4698_v10  ;;  %1879 = vmatpush.msra.mxu2 %v4733_v24  ;;  %v4755_v10 = vld [vmem:[%s10257_s3 + $0xf60] sm:$0xff] }
 0x365   : > { %v4743_v24 = vld [vmem:[%s10257_s3 + $0xf00] sm:$0xff] }
 0x366   : > { %1723 = vmatpush.msrb.mxu3 %v4696_v15  ;;  %1880 = vmatpush.msra.mxu2 %v4731_v25  ;;  %v4751_v15 = vld [vmem:[%s10257_s3 + $0xf40] sm:$0xff]  ;;  %v4742_v25 = vld [vmem:[%s10257_s3 + $0xef8] sm:$0xff] }
 0x367   : > { %4638 = vmatmul.msk.f32.gmra.mxu3 %vm612_vm1, %v6988_v23  ;;  %v4729_v23 = vld [vmem:[%s10257_s3 + $0xe90] sm:$0xff] }
 0x368   : > { %1724 = vmatpush.msrb.mxu3 %v4694_v21  ;;  %1881 = vmatpush.msra.mxu2 %v4729_v23  ;;  %v4747_v21 = vld [vmem:[%s10257_s3 + $0xf20] sm:$0xff]  ;;  %v4738_v23 = vld [vmem:[%s10257_s3 + $0xed8] sm:$0xff] }
 0x36a   : > { %1725 = vmatpush.msrb.mxu3 %v4692_v3  ;;  %1882 = vmatpush.msra.mxu2 %v4727_v28  ;;  %v4745_v3 = vld [vmem:[%s10257_s3 + $0xf10] sm:$0xff]  ;;  %v7270_v28 = vpop.f32.mrf.mxu2 }
 0x36c   : > { %1726 = vmatpush.msrb.mxu3 %v4690_v26  ;;  %1883 = vmatpush.msra.mxu2 %v4725_v30  ;;  %v4740_v26 = vld [vmem:[%s10257_s3 + $0xee8] sm:$0xff] }
 0x36d   : > { %v4732_v30 = vld [vmem:[%s10257_s3 + $0xea8] sm:$0xff] }
 0x36e   : > { %1727 = vmatpush.msrb.mxu3 %v4688_v27  ;;  %1884 = vmatpush.msra.mxu2 %v4723_v32  ;;  %v4736_v27 = vld [vmem:[%s10257_s3 + $0xec8] sm:$0xff]  ;;  %v4730_v32 = vld [vmem:[%s10257_s3 + $0xe98] sm:$0xff] }
 0x370   : > { %1728 = vmatpush.msrb.mxu3 %v4686_v29  ;;  %1885 = vmatpush.msra.mxu2 %v4721_v34  ;;  %v4734_v29 = vld [vmem:[%s10257_s3 + $0xeb8] sm:$0xff] }
 0x371   : > { %v4726_v34 = vld [vmem:[%s10257_s3 + $0xe78] sm:$0xff] }
 0x372   : > { %1729 = vmatpush.msrb.mxu3 %v4684_v31  ;;  %1886 = vmatpush.msra.mxu2 %v4719_v37  ;;  %v7292_v37 = vpop.f32.mrf.mxu2 }
 0x374   : > { %1730 = vmatpush.msrb.mxu3 %v4682_v33  ;;  %1887 = vmatpush.msra.mxu2 %v4717_v40  ;;  %v4728_v33 = vld [vmem:[%s10257_s3 + $0xe88] sm:$0xff] }
 0x376   : > { %1731 = vmatpush.msrb.mxu3 %v4680_v35  ;;  %1888 = vmatpush.msra.mxu2 %v4715_v11  ;;  %v4724_v35 = vld [vmem:[%s10257_s3 + $0xe68] sm:$0xff]  ;;  %v4718_v11 = vld [vmem:[%s10257_s3 + $0xe38] sm:$0xff] }
 0x378   : > { %1732 = vmatpush.msrb.mxu3 %v4678_v38  ;;  %1889 = vmatpush.msra.mxu2 %v4713_v51  ;;  %v4722_v38 = vld [vmem:[%s10257_s3 + $0xe58] sm:$0xff] }
 0x37a   : > { %1733 = vmatpush.msrb.mxu3 %v4676_v43  ;;  %1890 = vmatpush.msra.mxu2 %v4711_v59  ;;  %v4720_v43 = vld [vmem:[%s10257_s3 + $0xe48] sm:$0xff]  ;;  %v4813_v59 = vld [vmem:[%s10257_s3 + $0x10f0] sm:$0xff] }
 0x37b   : > { %v1697_v52 = vpop.f32.mrf.mxu1  ;;  %1891 = vmatmul.f32.vlgmr.msra.gmra.mxu2 %v7196_v60 }
 0x37c   : > { %v1698_v55 = vadd.f32 %v1697_v52, %v1677_v48  ;;  %1734 = vmatpush.msrb.mxu3 %v4674_v49  ;;  %v4716_v48 = vld [vmem:[%s10257_s3 + $0xe28] sm:$0xff]  ;;  %v4714_v52 = vld [vmem:[%s10257_s3 + $0xe18] sm:$0xff] }
 0x37e   : > { %1735 = vmatpush.msrb.mxu3 %v4672_v53  ;;  %4705 = vmatpush.msk.msra.mxu0 %vm619_vm0, %v1698_v55  ;;  %v4712_v55 = vld [vmem:[%s10257_s3 + $0xe08] sm:$0xff] }
 0x37f   : > { %1736 = vmatmul.f32.vlgmr.msrb.gmra.mxu3 %v6969_v16  ;;  %4706 = vmatmul.msk.f32.vlgmr.msra.gmra.mxu0 %vm612_vm1, %v7187_v57  ;;  %v4767_v16 = vld [vmem:[%s10257_s3 + $0xfc0] sm:$0xff] }
 0x380   : > { %1895 = vmatpush.msra.mxu3 %v4773_v58  ;;  %1915 = vmatpush.msrb.mxu0 %v4742_v25  ;;  %v4774_v58 = vld [vmem:[%s10257_s3 + $0xff8] sm:$0xff] }
 0x381   : > { %v1717_v49 = vpop.f32.mrf.mxu2  ;;  %v4754_v25 = vld [vmem:[%s10257_s3 + $0xf58] sm:$0xff] }
 0x382   : > { %1896 = vmatpush.msra.mxu3 %v4771_v41  ;;  %1916 = vmatpush.msrb.mxu0 %v4740_v26  ;;  %v4772_v41 = vld [vmem:[%s10257_s3 + $0xfe8] sm:$0xff]  ;;  %v4793_v26 = vld [vmem:[%s10257_s3 + $0x1050] sm:$0xff] }
 0x384   : > { %1897 = vmatpush.msra.mxu3 %v4769_v4  ;;  %1917 = vmatpush.msrb.mxu0 %v4738_v23  ;;  %v4811_v4 = vld [vmem:[%s10257_s3 + $0x10e0] sm:$0xff]  ;;  %v4752_v23 = vld [vmem:[%s10257_s3 + $0xf48] sm:$0xff] }
 0x386   : > { %1898 = vmatpush.msra.mxu3 %v4767_v16  ;;  %1918 = vmatpush.msrb.mxu0 %v4736_v27  ;;  %v4770_v16 = vld [vmem:[%s10257_s3 + $0xfd8] sm:$0xff]  ;;  %v4791_v27 = vld [vmem:[%s10257_s3 + $0x1040] sm:$0xff] }
 0x387   : > { %4707 = vmatmul.msk.f32.gmra.mxu0 %vm612_vm1, %v7217_v5 }
 0x388   : > { %1899 = vmatpush.msra.mxu3 %v4765_v42  ;;  %1919 = vmatpush.msrb.mxu0 %v4734_v29  ;;  %v4807_v42 = vld [vmem:[%s10257_s3 + $0x10c0] sm:$0xff]  ;;  %v4750_v29 = vld [vmem:[%s10257_s3 + $0xf38] sm:$0xff] }
 0x38a   : > { %1900 = vmatpush.msra.mxu3 %v4763_v19  ;;  %1920 = vmatpush.msrb.mxu0 %v4732_v30  ;;  %v4766_v19 = vld [vmem:[%s10257_s3 + $0xfb8] sm:$0xff]  ;;  %v4789_v30 = vld [vmem:[%s10257_s3 + $0x1030] sm:$0xff] }
 0x38c   : > { %1901 = vmatpush.msra.mxu3 %v4761_v20  ;;  %1921 = vmatpush.msrb.mxu0 %v4730_v32  ;;  %v4764_v20 = vld [vmem:[%s10257_s3 + $0xfa8] sm:$0xff] }
 0x38d   : > { %v4748_v32 = vld [vmem:[%s10257_s3 + $0xf28] sm:$0xff] }
 0x38e   : > { %1902 = vmatpush.msra.mxu3 %v4759_v8  ;;  %1922 = vmatpush.msrb.mxu0 %v4728_v33  ;;  %v4805_v8 = vld [vmem:[%s10257_s3 + $0x10b0] sm:$0xff]  ;;  %v4787_v33 = vld [vmem:[%s10257_s3 + $0x1020] sm:$0xff] }
 0x390   : > { %1903 = vmatpush.msra.mxu3 %v4757_v9  ;;  %1923 = vmatpush.msrb.mxu0 %v4726_v34  ;;  %v4803_v9 = vld [vmem:[%s10257_s3 + $0x10a0] sm:$0xff] }
 0x392   : > { %1904 = vmatpush.msra.mxu3 %v4755_v10  ;;  %1924 = vmatpush.msrb.mxu0 %v4724_v35  ;;  %v4762_v10 = vld [vmem:[%s10257_s3 + $0xf98] sm:$0xff] }
 0x393   : > { %v4746_v35 = vld [vmem:[%s10257_s3 + $0xf18] sm:$0xff] }
 0x394   : > { %1905 = vmatpush.msra.mxu3 %v4753_v50  ;;  %1925 = vmatpush.msrb.mxu0 %v4722_v38  ;;  %v4760_v50 = vld [vmem:[%s10257_s3 + $0xf88] sm:$0xff]  ;;  %v4785_v38 = vld [vmem:[%s10257_s3 + $0x1010] sm:$0xff] }
 0x396   : > { %1906 = vmatpush.msra.mxu3 %v4751_v15  ;;  %1926 = vmatpush.msrb.mxu0 %v4720_v43  ;;  %v4799_v15 = vld [vmem:[%s10257_s3 + $0x1080] sm:$0xff] }
 0x398   : > { %1907 = vmatpush.msra.mxu3 %v4749_v17  ;;  %1927 = vmatpush.msrb.mxu0 %v4718_v11  ;;  %v4758_v17 = vld [vmem:[%s10257_s3 + $0xf78] sm:$0xff]  ;;  %v4744_v11 = vld [vmem:[%s10257_s3 + $0xf08] sm:$0xff] }
 0x39a   : > { %1908 = vmatpush.msra.mxu3 %v4747_v21  ;;  %1928 = vmatpush.msrb.mxu0 %v4716_v48  ;;  %v4797_v21 = vld [vmem:[%s10257_s3 + $0x1070] sm:$0xff] }
 0x39c   : > { %1909 = vmatpush.msra.mxu3 %v4745_v3  ;;  %1929 = vmatpush.msrb.mxu0 %v4714_v52  ;;  %v4756_v3 = vld [vmem:[%s10257_s3 + $0xf68] sm:$0xff]  ;;  %v4783_v52 = vld [vmem:[%s10257_s3 + $0x1000] sm:$0xff] }
 0x39e   : > { %1910 = vmatpush.msra.mxu3 %v4743_v24  ;;  %1930 = vmatpush.msrb.mxu0 %v4712_v55  ;;  %v4795_v24 = vld [vmem:[%s10257_s3 + $0x1060] sm:$0xff] }
 0x39f   : > { %1911 = vmatmul.f32.vlgmr.msra.gmra.mxu3 %v7198_v61  ;;  %1931 = vmatmul.f32.vlgmr.msrb.gmra.mxu0 %v7196_v60  ;;  %v4768_v60 = vld [vmem:[%s10257_s3 + $0xfc8] sm:$0xff]  ;;  %v4843_v55 = vld [vmem:[%s10257_s3 + $0x11e0] sm:$0xff] }
 0x3a0   : > { %2090 = vmatpush.msra.mxu0 %v4813_v59  ;;  %v7443_v59 = vld [vmem:[%s10255_s1 + $0x78] sm:$0xff] }
 0x3a2   : > { %2091 = vmatpush.msra.mxu0 %v4811_v4  ;;  %v4835_v4 = vld [vmem:[%s10257_s3 + $0x11a0] sm:$0xff] }
 0x3e2   : > { %v7278_v31 = vpop.f32.mrf.mxu3 }
 0x3ea   : > { %v7297_v40 = vpop.f32.mrf.mxu3 }
 0x3fe   : > { %v1892_v34 = vpop.f32.mrf.mxu2 }
 0x402   : > { %v1737_v51 = vpop.f32.mrf.mxu3 }
 0x403   : > { %v1738_v53 = vadd.f32 %v1737_v51, %v1717_v49  ;;  %v7416_v49 = vld [vmem:[%s10255_s1 + $0x70] sm:$0xff] }
 0x404   : > { %v4845_v51 = vld [vmem:[%s10257_s3 + $0x11f0] sm:$0xff] }
 0x405   : > { %4708 = vmatpush.msk.msra.mxu1 %vm619_vm0, %v1738_v53  ;;  %v7425_v53 = vld.sshfl [vmem:[#allocation1] sm:$0xff pattern:$0x75316420] }
 0x406   : > { %4709 = vmatmul.msk.f32.vlgmr.msra.gmra.mxu1 %vm612_vm1, %v7187_v57  ;;  %v4809_v57 = vld [vmem:[%s10257_s3 + $0x10d0] sm:$0xff] }
 0x407   : > { %1935 = vmatpush.msrb.mxu1 %v4774_v58  ;;  %2092 = vmatpush.msra.mxu0 %v4809_v57  ;;  %v4841_v58 = vld [vmem:[%s10257_s3 + $0x11d0] sm:$0xff]  ;;  %v4831_v57 = vld [vmem:[%s10257_s3 + $0x1180] sm:$0xff] }
 0x409   : > { %1936 = vmatpush.msrb.mxu1 %v4772_v41  ;;  %2093 = vmatpush.msra.mxu0 %v4807_v42  ;;  %v4837_v41 = vld [vmem:[%s10257_s3 + $0x11b0] sm:$0xff]  ;;  %v4827_v42 = vld [vmem:[%s10257_s3 + $0x1160] sm:$0xff] }
 0x40b   : > { %1937 = vmatpush.msrb.mxu1 %v4770_v16  ;;  %2094 = vmatpush.msra.mxu0 %v4805_v8  ;;  %v4833_v16 = vld [vmem:[%s10257_s3 + $0x1190] sm:$0xff] }
 0x40c   : > { %v4821_v8 = vld [vmem:[%s10257_s3 + $0x1130] sm:$0xff] }
 0x40d   : > { %1938 = vmatpush.msrb.mxu1 %v4768_v60  ;;  %2095 = vmatpush.msra.mxu0 %v4803_v9  ;;  %v4829_v60 = vld [vmem:[%s10257_s3 + $0x1170] sm:$0xff]  ;;  %v4819_v9 = vld [vmem:[%s10257_s3 + $0x1120] sm:$0xff] }
 0x40e   : > { %4710 = vmatmul.msk.f32.gmra.mxu1 %vm612_vm1, %v7217_v5  ;;  %v4801_v5 = vld [vmem:[%s10257_s3 + $0x1090] sm:$0xff] }
 0x40f   : > { %1939 = vmatpush.msrb.mxu1 %v4766_v19  ;;  %2096 = vmatpush.msra.mxu0 %v4801_v5  ;;  %v4825_v19 = vld [vmem:[%s10257_s3 + $0x1150] sm:$0xff]  ;;  %v4815_v5 = vld [vmem:[%s10257_s3 + $0x1100] sm:$0xff] }
 0x411   : > { %1940 = vmatpush.msrb.mxu1 %v4764_v20  ;;  %2097 = vmatpush.msra.mxu0 %v4799_v15  ;;  %v4823_v20 = vld [vmem:[%s10257_s3 + $0x1140] sm:$0xff]  ;;  %v4814_v15 = vld [vmem:[%s10257_s3 + $0x10f8] sm:$0xff] }
 0x413   : > { %1941 = vmatpush.msrb.mxu1 %v4762_v10  ;;  %2098 = vmatpush.msra.mxu0 %v4797_v21  ;;  %v4817_v10 = vld [vmem:[%s10257_s3 + $0x1110] sm:$0xff]  ;;  %v4810_v21 = vld [vmem:[%s10257_s3 + $0x10d8] sm:$0xff] }
 0x415   : > { %1942 = vmatpush.msrb.mxu1 %v4760_v50  ;;  %2099 = vmatpush.msra.mxu0 %v4795_v24  ;;  %v7483_v50 = vld.sshfl [vmem:[#allocation1 + $0x8] sm:$0xff pattern:$0x75316420]  ;;  %v7498_v24 = vpop.f32.mrf.mxu0 }
 0x417   : > { %1943 = vmatpush.msrb.mxu1 %v4758_v17  ;;  %2100 = vmatpush.msra.mxu0 %v4793_v26  ;;  %v4812_v17 = vld [vmem:[%s10257_s3 + $0x10e8] sm:$0xff] }
 0x419   : > { %1944 = vmatpush.msrb.mxu1 %v4756_v3  ;;  %2101 = vmatpush.msra.mxu0 %v4791_v27  ;;  %v4808_v3 = vld [vmem:[%s10257_s3 + $0x10c8] sm:$0xff]  ;;  %v4802_v27 = vld [vmem:[%s10257_s3 + $0x1098] sm:$0xff] }
 0x41b   : > { %1945 = vmatpush.msrb.mxu1 %v4754_v25  ;;  %2102 = vmatpush.msra.mxu0 %v4789_v30  ;;  %v4806_v25 = vld [vmem:[%s10257_s3 + $0x10b8] sm:$0xff] }
 0x41c   : > { %v4798_v30 = vld [vmem:[%s10257_s3 + $0x1078] sm:$0xff] }
 0x41d   : > { %1946 = vmatpush.msrb.mxu1 %v4752_v23  ;;  %2103 = vmatpush.msra.mxu0 %v4787_v33  ;;  %v4804_v23 = vld [vmem:[%s10257_s3 + $0x10a8] sm:$0xff]  ;;  %v7520_v33 = vpop.f32.mrf.mxu0 }
 0x41f   : > { %1947 = vmatpush.msrb.mxu1 %v4750_v29  ;;  %2104 = vmatpush.msra.mxu0 %v4785_v38  ;;  %v4800_v29 = vld [vmem:[%s10257_s3 + $0x1088] sm:$0xff] }
 0x420   : > { %v4792_v38 = vld [vmem:[%s10257_s3 + $0x1048] sm:$0xff] }
 0x421   : > { %1948 = vmatpush.msrb.mxu1 %v4748_v32  ;;  %2105 = vmatpush.msra.mxu0 %v4783_v52  ;;  %v4796_v32 = vld [vmem:[%s10257_s3 + $0x1068] sm:$0xff]  ;;  %v4786_v52 = vld [vmem:[%s10257_s3 + $0x1018] sm:$0xff] }
 0x422   : > { %v1912_v43 = vpop.f32.mrf.mxu3  ;;  %2106 = vmatmul.f32.vlgmr.msra.gmra.mxu0 %v7425_v53 }
 0x423   : > { %v1913_v48 = vadd.f32 %v1912_v43, %v1892_v34  ;;  %1949 = vmatpush.msrb.mxu1 %v4746_v35  ;;  %v4794_v34 = vld [vmem:[%s10257_s3 + $0x1058] sm:$0xff] }
 0x424   : > { %v4790_v43 = vld [vmem:[%s10257_s3 + $0x1038] sm:$0xff] }
 0x425   : > { %1950 = vmatpush.msrb.mxu1 %v4744_v11  ;;  %4777 = vmatpush.msk.msrb.mxu2 %vm619_vm0, %v1913_v48  ;;  %v4788_v11 = vld [vmem:[%s10257_s3 + $0x1028] sm:$0xff]  ;;  %v1932_v48 = vpop.f32.mrf.mxu0 }
 0x426   : > { %1951 = vmatmul.f32.vlgmr.msrb.gmra.mxu1 %v7198_v61  ;;  %4778 = vmatmul.msk.f32.vlgmr.msrb.gmra.mxu2 %vm612_vm1, %v7416_v49  ;;  %v4839_v61 = vld [vmem:[%s10257_s3 + $0x11c0] sm:$0xff] }
 0x427   : > { %2110 = vmatpush.msra.mxu1 %v4845_v51  ;;  %2130 = vmatpush.msra.mxu2 %v4814_v15  ;;  %v4954_v15 = vld [vmem:[%s10257_s3 + $0x80] sm:$0xff] }
 0x429   : > { %2111 = vmatpush.msra.mxu1 %v4843_v55  ;;  %2131 = vmatpush.msra.mxu2 %v4812_v17  ;;  %v4828_v17 = vld [vmem:[%s10257_s3 + $0x1168] sm:$0xff] }
 0x42b   : > { %2112 = vmatpush.msra.mxu1 %v4841_v58  ;;  %2132 = vmatpush.msra.mxu2 %v4810_v21  ;;  %v4784_v58 = vld [vmem:[%s10257_s3 + $0x1008] sm:$0xff]  ;;  %v4955_v21 = vld [vmem:[%s10257_s3 + $0x70] sm:$0xff] }
 0x42d   : > { %2113 = vmatpush.msra.mxu1 %v4839_v61  ;;  %2133 = vmatpush.msra.mxu2 %v4808_v3  ;;  %v4846_v61 = vld [vmem:[%s10257_s3 + $0x11f8] sm:$0xff] }
 0x42e   : > { %4779 = vmatmul.msk.f32.gmra.mxu2 %vm612_vm1, %v7443_v59  ;;  %v4826_v3 = vld [vmem:[%s10257_s3 + $0x1158] sm:$0xff] }
 0x42f   : > { %2114 = vmatpush.msra.mxu1 %v4837_v41  ;;  %2134 = vmatpush.msra.mxu2 %v4806_v25  ;;  %v4844_v41 = vld [vmem:[%s10257_s3 + $0x11e8] sm:$0xff]  ;;  %v4956_v25 = vld [vmem:[%s10257_s3 + $0x60] sm:$0xff] }
 0x431   : > { %2115 = vmatpush.msra.mxu1 %v4835_v4  ;;  %2135 = vmatpush.msra.mxu2 %v4804_v23  ;;  %v4947_v4 = vld [vmem:[%s10257_s3 + $0xf0] sm:$0xff]  ;;  %v4824_v23 = vld [vmem:[%s10257_s3 + $0x1148] sm:$0xff] }
 0x433   : > { %2116 = vmatpush.msra.mxu1 %v4833_v16  ;;  %2136 = vmatpush.msra.mxu2 %v4802_v27  ;;  %v4842_v16 = vld [vmem:[%s10257_s3 + $0x11d8] sm:$0xff]  ;;  %v4957_v27 = vld [vmem:[%s10257_s3 + $0x50] sm:$0xff] }
 0x435   : > { %2117 = vmatpush.msra.mxu1 %v4831_v57  ;;  %2137 = vmatpush.msra.mxu2 %v4800_v29  ;;  %v4949_v57 = vld [vmem:[%s10257_s3 + $0xd0] sm:$0xff]  ;;  %v4822_v29 = vld [vmem:[%s10257_s3 + $0x1138] sm:$0xff] }
 0x437   : > { %2118 = vmatpush.msra.mxu1 %v4829_v60  ;;  %2138 = vmatpush.msra.mxu2 %v4798_v30  ;;  %v4838_v60 = vld [vmem:[%s10257_s3 + $0x11b8] sm:$0xff]  ;;  %v4958_v30 = vld [vmem:[%s10257_s3 + $0x40] sm:$0xff] }
 0x439   : > { %2119 = vmatpush.msra.mxu1 %v4827_v42  ;;  %2139 = vmatpush.msra.mxu2 %v4796_v32  ;;  %v4950_v42 = vld [vmem:[%s10257_s3 + $0xc0] sm:$0xff]  ;;  %v4820_v32 = vld [vmem:[%s10257_s3 + $0x1128] sm:$0xff] }
 0x43b   : > { %2120 = vmatpush.msra.mxu1 %v4825_v19  ;;  %2140 = vmatpush.msra.mxu2 %v4794_v34  ;;  %v4836_v19 = vld [vmem:[%s10257_s3 + $0x11a8] sm:$0xff]  ;;  %v4959_v34 = vld [vmem:[%s10257_s3 + $0x30] sm:$0xff] }
 0x43d   : > { %2121 = vmatpush.msra.mxu1 %v4823_v20  ;;  %2141 = vmatpush.msra.mxu2 %v4792_v38  ;;  %v4951_v20 = vld [vmem:[%s10257_s3 + $0xb0] sm:$0xff] }
 0x43f   : > { %2122 = vmatpush.msra.mxu1 %v4821_v8  ;;  %2142 = vmatpush.msra.mxu2 %v4790_v43  ;;  %v4834_v8 = vld [vmem:[%s10257_s3 + $0x1198] sm:$0xff] }
 0x440   : > { %v4818_v43 = vld [vmem:[%s10257_s3 + $0x1118] sm:$0xff] }
 0x441   : > { %2123 = vmatpush.msra.mxu1 %v4819_v9  ;;  %2143 = vmatpush.msra.mxu2 %v4788_v11  ;;  %v4952_v9 = vld [vmem:[%s10257_s3 + $0xa0] sm:$0xff] }
 0x442   : > { %v4960_v11 = vld [vmem:[%s10257_s3 + $0x20] sm:$0xff] }
 0x443   : > { %2124 = vmatpush.msra.mxu1 %v4817_v10  ;;  %2144 = vmatpush.msra.mxu2 %v4786_v52  ;;  %v4953_v10 = vld [vmem:[%s10257_s3 + $0x90] sm:$0xff] }
 0x445   : > { %2125 = vmatpush.msra.mxu1 %v4815_v5  ;;  %2145 = vmatpush.msra.mxu2 %v4784_v58  ;;  %v4830_v5 = vld [vmem:[%s10257_s3 + $0x1178] sm:$0xff]  ;;  %v4961_v58 = vld [vmem:[%s10257_s3 + $0x10] sm:$0xff] }
 0x446   : > { %2126 = vmatmul.f32.vlgmr.msra.gmra.mxu1 %v7483_v50  ;;  %2146 = vmatmul.f32.vlgmr.msra.gmra.mxu2 %v7425_v53  ;;  %v4840_v53 = vld [vmem:[%s10257_s3 + $0x11c8] sm:$0xff] }
 0x447   : > { %2304 = vmatpush.msrb.mxu2 %v4947_v4  ;;  %v4964_v4 = vld [vmem:[%s10257_s3] sm:$0xff] }
 0x483   : > { %v7503_v26 = vpop.f32.mrf.mxu1 }
 0x48b   : > { %v7525_v35 = vpop.f32.mrf.mxu1 }
 0x49f   : > { %v2107_v38 = vpop.f32.mrf.mxu0 }
 0x4a3   : > { %v1952_v51 = vpop.f32.mrf.mxu1 }
 0x4a4   : > { %v1953_v55 = vadd.f32 %v1952_v51, %v1932_v48  ;;  %v4816_v51 = vld [vmem:[%s10257_s3 + $0x1108] sm:$0xff] }
 0x4a6   : > { %4780 = vmatpush.msk.msrb.mxu3 %vm619_vm0, %v1953_v55  ;;  %v7641_v55 = vld [vmem:[%s10255_s1 + $0x80] sm:$0xff] }
 0x4a7   : > { %4781 = vmatmul.msk.f32.vlgmr.msrb.gmra.mxu3 %vm612_vm1, %v7416_v49  ;;  %v4948_v49 = vld [vmem:[%s10257_s3 + $0xe0] sm:$0xff] }
 0x4a8   : > { %2150 = vmatpush.msra.mxu3 %v4846_v61  ;;  %2305 = vmatpush.msrb.mxu2 %v4948_v49  ;;  %v4962_v61 = vld [vmem:[%s10257_s3 + $0x1f0] sm:$0xff] }
 0x4a9   : > { %v4967_v49 = vld [vmem:[%s10257_s3 + $0x2f0] sm:$0xff] }
 0x4aa   : > { %2151 = vmatpush.msra.mxu3 %v4844_v41  ;;  %2306 = vmatpush.msrb.mxu2 %v4949_v57  ;;  %v4963_v41 = vld [vmem:[%s10257_s3 + $0xf8] sm:$0xff]  ;;  %v4968_v57 = vld [vmem:[%s10257_s3 + $0x1d0] sm:$0xff] }
 0x4ac   : > { %2152 = vmatpush.msra.mxu3 %v4842_v16  ;;  %2307 = vmatpush.msrb.mxu2 %v4950_v42  ;;  %v4966_v16 = vld [vmem:[%s10257_s3 + $0xe8] sm:$0xff]  ;;  %v4970_v42 = vld [vmem:[%s10257_s3 + $0x2e0] sm:$0xff] }
 0x4ae   : > { %2153 = vmatpush.msra.mxu3 %v4840_v53  ;;  %2308 = vmatpush.msrb.mxu2 %v4951_v20  ;;  %v7671_v53 = vld [vmem:[%s10255_s1 + $0x88] sm:$0xff] }
 0x4af   : > { %4782 = vmatmul.msk.f32.gmra.mxu3 %vm612_vm1, %v7443_v59  ;;  %v4832_v59 = vld [vmem:[%s10257_s3 + $0x1188] sm:$0xff] }
 0x4b0   : > { %2154 = vmatpush.msra.mxu3 %v4838_v60  ;;  %2309 = vmatpush.msrb.mxu2 %v4952_v9  ;;  %v4969_v60 = vld [vmem:[%s10257_s3 + $0xd8] sm:$0xff]  ;;  %v4972_v20 = vld [vmem:[%s10257_s3 + $0xc8] sm:$0xff]  ;;  %v4974_v9 = vld [vmem:[%s10257_s3 + $0x1b0] sm:$0xff] }
 0x4b2   : > { %2155 = vmatpush.msra.mxu3 %v4836_v19  ;;  %2310 = vmatpush.msrb.mxu2 %v4953_v10  ;;  %v4971_v19 = vld [vmem:[%s10257_s3 + $0x1c0] sm:$0xff] }
 0x4b3   : > { %v4976_v10 = vld [vmem:[%s10257_s3 + $0x2c0] sm:$0xff] }
 0x4b4   : > { %2156 = vmatpush.msra.mxu3 %v4834_v8  ;;  %2311 = vmatpush.msrb.mxu2 %v4954_v15  ;;  %v4973_v8 = vld [vmem:[%s10257_s3 + $0x2d0] sm:$0xff]  ;;  %v4978_v15 = vld [vmem:[%s10257_s3 + $0xa8] sm:$0xff] }
 0x4b6   : > { %2157 = vmatpush.msra.mxu3 %v4832_v59  ;;  %2312 = vmatpush.msrb.mxu2 %v4955_v21  ;;  %v4975_v59 = vld [vmem:[%s10257_s3 + $0xb8] sm:$0xff]  ;;  %v4980_v21 = vld [vmem:[%s10257_s3 + $0x190] sm:$0xff] }
 0x4b8   : > { %2158 = vmatpush.msra.mxu3 %v4830_v5  ;;  %2313 = vmatpush.msrb.mxu2 %v4956_v25  ;;  %v4977_v5 = vld [vmem:[%s10257_s3 + $0x1a0] sm:$0xff] }
 0x4b9   : > { %v4982_v25 = vld [vmem:[%s10257_s3 + $0x2a0] sm:$0xff] }
 0x4ba   : > { %2159 = vmatpush.msra.mxu3 %v4828_v17  ;;  %2314 = vmatpush.msrb.mxu2 %v4957_v27  ;;  %v4979_v17 = vld [vmem:[%s10257_s3 + $0x2b0] sm:$0xff]  ;;  %v4984_v27 = vld [vmem:[%s10257_s3 + $0x88] sm:$0xff] }
 0x4bc   : > { %2160 = vmatpush.msra.mxu3 %v4826_v3  ;;  %2315 = vmatpush.msrb.mxu2 %v4958_v30  ;;  %v4981_v3 = vld [vmem:[%s10257_s3 + $0x98] sm:$0xff]  ;;  %v4986_v30 = vld [vmem:[%s10257_s3 + $0x170] sm:$0xff] }
 0x4be   : > { %2161 = vmatpush.msra.mxu3 %v4824_v23  ;;  %2316 = vmatpush.msrb.mxu2 %v4959_v34  ;;  %v4983_v23 = vld [vmem:[%s10257_s3 + $0x180] sm:$0xff] }
 0x4bf   : > { %v4988_v34 = vld [vmem:[%s10257_s3 + $0x280] sm:$0xff] }
 0x4c0   : > { %2162 = vmatpush.msra.mxu3 %v4822_v29  ;;  %2317 = vmatpush.msrb.mxu2 %v4960_v11  ;;  %v4985_v29 = vld [vmem:[%s10257_s3 + $0x290] sm:$0xff] }
 0x4c1   : > { %v4991_v11 = vld [vmem:[%s10257_s3 + $0x270] sm:$0xff] }
 0x4c2   : > { %2163 = vmatpush.msra.mxu3 %v4820_v32  ;;  %2318 = vmatpush.msrb.mxu2 %v4961_v58  ;;  %v4987_v32 = vld [vmem:[%s10257_s3 + $0x78] sm:$0xff]  ;;  %v4995_v58 = vld [vmem:[%s10257_s3 + $0x140] sm:$0xff] }
 0x4c3   : > { %v2127_v48 = vpop.f32.mrf.mxu1 }
 0x4c4   : > { %v2128_v52 = vadd.f32 %v2127_v48, %v2107_v38  ;;  %2164 = vmatpush.msra.mxu3 %v4818_v43  ;;  %2319 = vmatpush.msrb.mxu2 %v4964_v4  ;;  %v4989_v38 = vld [vmem:[%s10257_s3 + $0x160] sm:$0xff]  ;;  %v4990_v43 = vld [vmem:[%s10257_s3 + $0x68] sm:$0xff]  ;;  %v4992_v48 = vld [vmem:[%s10257_s3 + $0x150] sm:$0xff] }
 0x4c5   : > { %v4998_v4 = vld [vmem:[%s10257_s3 + $0x130] sm:$0xff] }
 0x4c6   : > { %2165 = vmatpush.msra.mxu3 %v4816_v51  ;;  %4849 = vmatpush.msk.msrb.mxu0 %vm619_vm0, %v2128_v52  ;;  %v4993_v51 = vld [vmem:[%s10257_s3 + $0x58] sm:$0xff]  ;;  %v4994_v52 = vld [vmem:[%s10257_s3 + $0x260] sm:$0xff] }
 0x4c7   : > { %2166 = vmatmul.f32.vlgmr.msra.gmra.mxu3 %v7483_v50  ;;  %4850 = vmatmul.msk.f32.vlgmr.msrb.gmra.mxu0 %vm612_vm1, %v7641_v55  ;;  %v4965_v50 = vld [vmem:[%s10257_s3 + $0x1e0] sm:$0xff] }
 0x4c8   : > { %2327 = vmatpush.msrb.mxu3 %v4962_v61  ;;  %2350 = vmatpush.msra.mxu0 %v4963_v41  ;;  %v4996_v61 = vld [vmem:[%s10257_s3 + $0x48] sm:$0xff]  ;;  %v4997_v41 = vld [vmem:[%s10257_s3 + $0x250] sm:$0xff] }
 0x4c9   : > { %2398 = vmatpush.msra.mxu2 %v4967_v49  ;;  %v5001_v49 = vld [vmem:[%s10257_s3 + $0x120] sm:$0xff] }
 0x4ca   : > { %2328 = vmatpush.msrb.mxu3 %v4965_v50  ;;  %2351 = vmatpush.msra.mxu0 %v4966_v16  ;;  %v4999_v50 = vld [vmem:[%s10257_s3 + $0x38] sm:$0xff]  ;;  %v5000_v16 = vld [vmem:[%s10257_s3 + $0x240] sm:$0xff] }
 0x4cb   : > { %2399 = vmatpush.msra.mxu2 %v4970_v42  ;;  %v5004_v42 = vld [vmem:[%s10257_s3 + $0x110] sm:$0xff] }
 0x4cc   : > { %2329 = vmatpush.msrb.mxu3 %v4968_v57  ;;  %2352 = vmatpush.msra.mxu0 %v4969_v60  ;;  %v5002_v57 = vld [vmem:[%s10257_s3 + $0x28] sm:$0xff]  ;;  %v5003_v60 = vld [vmem:[%s10257_s3 + $0x230] sm:$0xff] }
 0x4cd   : > { %2400 = vmatpush.msra.mxu2 %v4973_v8  ;;  %v5007_v8 = vld [vmem:[%s10257_s3 + $0x100] sm:$0xff] }
 0x4ce   : > { %2330 = vmatpush.msrb.mxu3 %v4971_v19  ;;  %2353 = vmatpush.msra.mxu0 %v4972_v20  ;;  %v5005_v19 = vld [vmem:[%s10257_s3 + $0x18] sm:$0xff]  ;;  %v5006_v20 = vld [vmem:[%s10257_s3 + $0x220] sm:$0xff] }
 0x4cf   : > { %4851 = vmatmul.msk.f32.gmra.mxu0 %vm612_vm1, %v7671_v53  ;;  %2401 = vmatpush.msra.mxu2 %v4976_v10  ;;  %v5010_v10 = vld [vmem:[%s10257_s3 + $0x2f8] sm:$0xff] }
 0x4d0   : > { %2331 = vmatpush.msrb.mxu3 %v4974_v9  ;;  %2354 = vmatpush.msra.mxu0 %v4975_v59  ;;  %v5008_v9 = vld [vmem:[%s10257_s3 + $0x8] sm:$0xff]  ;;  %v5009_v59 = vld [vmem:[%s10257_s3 + $0x3f0] sm:$0xff] }
 0x4d1   : > { %2402 = vmatpush.msra.mxu2 %v4979_v17  ;;  %v5013_v17 = vld [vmem:[%s10257_s3 + $0x2e8] sm:$0xff] }
 0x4d2   : > { %2332 = vmatpush.msrb.mxu3 %v4977_v5  ;;  %2355 = vmatpush.msra.mxu0 %v4978_v15  ;;  %v5011_v5 = vld [vmem:[%s10257_s3 + $0x210] sm:$0xff]  ;;  %v5012_v15 = vld [vmem:[%s10257_s3 + $0x3e0] sm:$0xff] }
 0x4d3   : > { %2403 = vmatpush.msra.mxu2 %v4982_v25  ;;  %v5016_v25 = vld [vmem:[%s10257_s3 + $0x2d8] sm:$0xff] }
 0x4d4   : > { %2333 = vmatpush.msrb.mxu3 %v4980_v21  ;;  %2356 = vmatpush.msra.mxu0 %v4981_v3  ;;  %v5014_v21 = vld [vmem:[%s10257_s3 + $0x200] sm:$0xff]  ;;  %v5015_v3 = vld [vmem:[%s10257_s3 + $0x3d0] sm:$0xff] }
 0x4d5   : > { %2404 = vmatpush.msra.mxu2 %v4985_v29  ;;  %v5019_v29 = vld [vmem:[%s10257_s3 + $0x3b0] sm:$0xff] }
 0x4d6   : > { %2334 = vmatpush.msrb.mxu3 %v4983_v23  ;;  %2357 = vmatpush.msra.mxu0 %v4984_v27  ;;  %v5017_v23 = vld [vmem:[%s10257_s3 + $0x3c0] sm:$0xff]  ;;  %v5018_v27 = vld [vmem:[%s10257_s3 + $0x2c8] sm:$0xff] }
 0x4d7   : > { %2405 = vmatpush.msra.mxu2 %v4988_v34  ;;  %v5022_v34 = vld [vmem:[%s10257_s3 + $0x2a8] sm:$0xff] }
 0x4d8   : > { %2335 = vmatpush.msrb.mxu3 %v4986_v30  ;;  %2358 = vmatpush.msra.mxu0 %v4987_v32  ;;  %v5020_v30 = vld [vmem:[%s10257_s3 + $0x2b8] sm:$0xff]  ;;  %v5021_v32 = vld [vmem:[%s10257_s3 + $0x3a0] sm:$0xff] }
 0x4d9   : > { %2406 = vmatpush.msra.mxu2 %v4991_v11  ;;  %v5025_v11 = vld [vmem:[%s10257_s3 + $0x380] sm:$0xff] }
 0x4da   : > { %2336 = vmatpush.msrb.mxu3 %v4989_v38  ;;  %2359 = vmatpush.msra.mxu0 %v4990_v43  ;;  %v5023_v38 = vld [vmem:[%s10257_s3 + $0x390] sm:$0xff]  ;;  %v5024_v43 = vld [vmem:[%s10257_s3 + $0x298] sm:$0xff] }
 0x4db   : > { %2407 = vmatpush.msra.mxu2 %v4994_v52  ;;  %v5028_v52 = vld [vmem:[%s10257_s3 + $0x278] sm:$0xff] }
 0x4dc   : > { %2337 = vmatpush.msrb.mxu3 %v4992_v48  ;;  %2360 = vmatpush.msra.mxu0 %v4993_v51  ;;  %v5026_v48 = vld [vmem:[%s10257_s3 + $0x288] sm:$0xff]  ;;  %v5027_v51 = vld [vmem:[%s10257_s3 + $0x370] sm:$0xff] }
 0x4dd   : > { %2408 = vmatpush.msra.mxu2 %v4997_v41  ;;  %v5031_v41 = vld [vmem:[%s10257_s3 + $0x350] sm:$0xff] }
 0x4de   : > { %2338 = vmatpush.msrb.mxu3 %v4995_v58  ;;  %2361 = vmatpush.msra.mxu0 %v4996_v61  ;;  %v5029_v58 = vld [vmem:[%s10257_s3 + $0x360] sm:$0xff]  ;;  %v5030_v61 = vld [vmem:[%s10257_s3 + $0x268] sm:$0xff] }
 0x4df   : > { %2409 = vmatpush.msra.mxu2 %v5000_v16  ;;  %v5034_v16 = vld [vmem:[%s10257_s3 + $0x248] sm:$0xff] }
 0x4e0   : > { %2339 = vmatpush.msrb.mxu3 %v4998_v4  ;;  %2362 = vmatpush.msra.mxu0 %v4999_v50  ;;  %v5032_v4 = vld [vmem:[%s10257_s3 + $0x258] sm:$0xff]  ;;  %v5033_v50 = vld [vmem:[%s10257_s3 + $0x340] sm:$0xff] }
 0x4e1   : > { %2410 = vmatpush.msra.mxu2 %v5003_v60  ;;  %v5037_v60 = vld [vmem:[%s10257_s3 + $0x320] sm:$0xff] }
 0x4e2   : > { %2340 = vmatpush.msrb.mxu3 %v5001_v49  ;;  %2363 = vmatpush.msra.mxu0 %v5002_v57  ;;  %v5035_v49 = vld [vmem:[%s10257_s3 + $0x330] sm:$0xff]  ;;  %v5036_v57 = vld [vmem:[%s10257_s3 + $0x238] sm:$0xff] }
 0x4e3   : > { %2411 = vmatpush.msra.mxu2 %v5006_v20  ;;  %v5040_v20 = vld [vmem:[%s10257_s3 + $0x218] sm:$0xff] }
 0x4e4   : > { %2341 = vmatpush.msrb.mxu3 %v5004_v42  ;;  %2364 = vmatpush.msra.mxu0 %v5005_v19  ;;  %v5038_v42 = vld [vmem:[%s10257_s3 + $0x228] sm:$0xff]  ;;  %v5039_v19 = vld [vmem:[%s10257_s3 + $0x310] sm:$0xff] }
 0x4e5   : > { %2412 = vmatpush.msra.mxu2 %v5011_v5 }
 0x4e6   : > { %2342 = vmatpush.msrb.mxu3 %v5007_v8  ;;  %2365 = vmatpush.msra.mxu0 %v5008_v9  ;;  %v5041_v8 = vld [vmem:[%s10257_s3 + $0x300] sm:$0xff]  ;;  %v5042_v9 = vld [vmem:[%s10257_s3 + $0x208] sm:$0xff] }
 0x4e7   : > { %2413 = vmatpush.msra.mxu2 %v5014_v21 }
 0x4e8   : > { %2421 = vmatpush.msra.mxu3 %v5009_v59  ;;  %2444 = vmatpush.msrb.mxu0 %v5010_v10  ;;  %v7900_v59 = vpop.f32.mrf.mxu2 }
 0x4ea   : > { %2422 = vmatpush.msra.mxu3 %v5012_v15  ;;  %2445 = vmatpush.msrb.mxu0 %v5013_v17 }
 0x4ec   : > { %2423 = vmatpush.msra.mxu3 %v5015_v3  ;;  %2446 = vmatpush.msrb.mxu0 %v5016_v25  ;;  %v5043_v25 = vld [vmem:[%s10257_s3 + $0x1f8] sm:$0xff] }
 0x4ee   : > { %2424 = vmatpush.msra.mxu3 %v5017_v23  ;;  %2447 = vmatpush.msrb.mxu0 %v5018_v27  ;;  %v5044_v23 = vld [vmem:[%s10257_s3 + $0x1e8] sm:$0xff]  ;;  %v5045_v27 = vld [vmem:[%s10257_s3 + $0x1d8] sm:$0xff] }
 0x4f0   : > { %2425 = vmatpush.msra.mxu3 %v5019_v29  ;;  %2448 = vmatpush.msrb.mxu0 %v5020_v30  ;;  %v7904_v5 = vpop.f32.mrf.mxu2  ;;  %v5046_v29 = vld [vmem:[%s10257_s3 + $0x1c8] sm:$0xff] }
 0x4f1   : > { %v5048_v30 = vld [vmem:[%s10257_s3 + $0x1a8] sm:$0xff] }
 0x4f2   : > { %2426 = vmatpush.msra.mxu3 %v5021_v32  ;;  %2449 = vmatpush.msrb.mxu0 %v5022_v34  ;;  %v5049_v32 = vld [vmem:[%s10257_s3 + $0x198] sm:$0xff]  ;;  %v5050_v34 = vld [vmem:[%s10257_s3 + $0x188] sm:$0xff] }
 0x4f4   : > { %2427 = vmatpush.msra.mxu3 %v5023_v38  ;;  %2450 = vmatpush.msrb.mxu0 %v5024_v43  ;;  %v5052_v38 = vld [vmem:[%s10257_s3 + $0x168] sm:$0xff]  ;;  %v5053_v43 = vld [vmem:[%s10257_s3 + $0x158] sm:$0xff] }
 0x4f6   : > { %2428 = vmatpush.msra.mxu3 %v5025_v11  ;;  %2451 = vmatpush.msrb.mxu0 %v5026_v48  ;;  %v5054_v11 = vld [vmem:[%s10257_s3 + $0x148] sm:$0xff]  ;;  %v5055_v48 = vld [vmem:[%s10257_s3 + $0x138] sm:$0xff] }
 0x4f8   : > { %2429 = vmatpush.msra.mxu3 %v5027_v51  ;;  %2452 = vmatpush.msrb.mxu0 %v5028_v52  ;;  %v2147_v17 = vpop.f32.mrf.mxu2  ;;  %v5056_v51 = vld [vmem:[%s10257_s3 + $0x128] sm:$0xff]  ;;  %v5057_v52 = vld [vmem:[%s10257_s3 + $0x118] sm:$0xff] }
 0x4fa   : > { %2430 = vmatpush.msra.mxu3 %v5029_v58  ;;  %2453 = vmatpush.msrb.mxu0 %v5030_v61  ;;  %v5058_v58 = vld [vmem:[%s10257_s3 + $0x108] sm:$0xff]  ;;  %v5059_v61 = vld [vmem:[%s10257_s3 + $0x3f8] sm:$0xff] }
 0x4fc   : > { %2431 = vmatpush.msra.mxu3 %v5031_v41  ;;  %2454 = vmatpush.msrb.mxu0 %v5032_v4  ;;  %v5060_v41 = vld [vmem:[%s10257_s3 + $0x3e8] sm:$0xff]  ;;  %v5061_v4 = vld [vmem:[%s10257_s3 + $0x3d8] sm:$0xff] }
 0x4fe   : > { %2432 = vmatpush.msra.mxu3 %v5033_v50  ;;  %2455 = vmatpush.msrb.mxu0 %v5034_v16  ;;  %v5062_v50 = vld [vmem:[%s10257_s3 + $0x3c8] sm:$0xff]  ;;  %v5063_v16 = vld [vmem:[%s10257_s3 + $0x3b8] sm:$0xff] }
 0x500   : > { %2433 = vmatpush.msra.mxu3 %v5035_v49  ;;  %2456 = vmatpush.msrb.mxu0 %v5036_v57  ;;  %v5064_v49 = vld [vmem:[%s10257_s3 + $0x3a8] sm:$0xff]  ;;  %v5065_v57 = vld [vmem:[%s10257_s3 + $0x398] sm:$0xff] }
 0x502   : > { %2434 = vmatpush.msra.mxu3 %v5037_v60  ;;  %2457 = vmatpush.msrb.mxu0 %v5038_v42  ;;  %v5066_v60 = vld [vmem:[%s10257_s3 + $0x388] sm:$0xff]  ;;  %v5067_v42 = vld [vmem:[%s10257_s3 + $0x378] sm:$0xff] }
 0x504   : > { %2435 = vmatpush.msra.mxu3 %v5039_v19  ;;  %2458 = vmatpush.msrb.mxu0 %v5040_v20  ;;  %v5068_v19 = vld [vmem:[%s10257_s3 + $0x368] sm:$0xff]  ;;  %v5069_v20 = vld [vmem:[%s10257_s3 + $0x358] sm:$0xff] }
 0x506   : > { %2436 = vmatpush.msra.mxu3 %v5041_v8  ;;  %2459 = vmatpush.msrb.mxu0 %v5042_v9  ;;  %v5070_v8 = vld [vmem:[%s10257_s3 + $0x348] sm:$0xff]  ;;  %v5071_v9 = vld [vmem:[%s10257_s3 + $0x338] sm:$0xff] }
 0x52a   : > { %v7902_v10 = vpop.f32.mrf.mxu3 }
 0x532   : > { %v7906_v15 = vpop.f32.mrf.mxu3 }
 0x54a   : > { %v2167_v21 = vpop.f32.mrf.mxu3 }
 0x54b   : > { %v2168_v3 = vadd.f32 %v2167_v21, %v2147_v17  ;;  %v5072_v17 = vld [vmem:[%s10257_s3 + $0x328] sm:$0xff]  ;;  %v5073_v21 = vld [vmem:[%s10257_s3 + $0x318] sm:$0xff] }
 0x54d   : > { %4852 = vmatpush.msk.msrb.mxu1 %vm619_vm0, %v2168_v3  ;;  %v5074_v3 = vld [vmem:[%s10257_s3 + $0x308] sm:$0xff] }
 0x54e   : > { %4853 = vmatmul.msk.f32.vlgmr.msrb.gmra.mxu1 %vm612_vm1, %v7641_v55  ;;  %v5047_v55 = vld [vmem:[%s10257_s3 + $0x1b8] sm:$0xff] }
 0x54f   : > { %2373 = vmatpush.msra.mxu1 %v5043_v25  ;;  %v702_v25 = vadd.f32 %v6327_v62, %v6358_v12  ;;  %v728_v62 = vadd.f32 %v6333_v1, %v6380_v22 }
 0x551   : > { %2374 = vmatpush.msra.mxu1 %v5044_v23  ;;  %v725_v23 = vadd.f32 %v6329_v63, %v6360_v13  ;;  %v2202_v13 = vpop.f32.mrf.mxu0 }
 0x553   : > { %2375 = vmatpush.msra.mxu1 %v5045_v27  ;;  %v942_v27 = vadd.f32 %v6583_v36, %v725_v23  ;;  %v944_v36 = vadd.f32 %v6605_v45, %v728_v62 }
 0x555   : > { %2376 = vmatpush.msra.mxu1 %v5046_v29  ;;  %v941_v29 = vadd.f32 %v6591_v39, %v702_v25 }
 0x556   : > { %4854 = vmatmul.msk.f32.gmra.mxu1 %vm612_vm1, %v7671_v53  ;;  %v5051_v53 = vld [vmem:[%s10257_s3 + $0x178] sm:$0xff] }
 0x557   : > { %2377 = vmatpush.msra.mxu1 %v5047_v55  ;;  %v1156_v55 = vadd.f32 %v6812_v6, %v941_v29 }
 0x559   : > { %2378 = vmatpush.msra.mxu1 %v5048_v30  ;;  %v1157_v30 = vadd.f32 %v6820_v7, %v942_v27 }
 0x55b   : > { %2379 = vmatpush.msra.mxu1 %v5049_v32  ;;  %v1371_v32 = vadd.f32 %v7041_v44, %v1156_v55 }
 0x55d   : > { %2380 = vmatpush.msra.mxu1 %v5050_v34  ;;  %v1372_v34 = vadd.f32 %v7046_v46, %v1157_v30  ;;  %v1586_v63 = vadd.f32 %v7270_v28, %v1371_v32 }
 0x55f   : > { %2381 = vmatpush.msra.mxu1 %v5051_v53  ;;  %v705_v53 = vadd.f32 %v6331_v0, %v6375_v18  ;;  %v1587_v12 = vadd.f32 %v7278_v31, %v1372_v34  ;;  %v1801_v6 = vadd.f32 %v7498_v24, %v1586_v63  ;;  %v1159_v0 = vadd.f32 %v6839_v2, %v944_v36 }
 0x561   : > { %2382 = vmatpush.msra.mxu1 %v5052_v38  ;;  %v943_v39 = vadd.f32 %v6610_v47, %v705_v53  ;;  %v1802_v7 = vadd.f32 %v7503_v26, %v1587_v12  ;;  %v2016_v18 = vadd.f32 %v7900_v59, %v1801_v6  ;;  %v1374_v28 = vadd.f32 %v7068_v56, %v1159_v0  ;;  %v2205_v59 = vpop.f32.mrf.mxu0 }
 0x563   : > { %2383 = vmatpush.msra.mxu1 %v5053_v43  ;;  %v1158_v44 = vadd.f32 %v6834_v14, %v943_v39  ;;  %v2017_v1 = vadd.f32 %v7902_v10, %v1802_v7  ;;  %v2231_v45 = vadd.f32 %v2202_v13, %v2016_v18  ;;  %v1589_v24 = vadd.f32 %v7297_v40, %v1374_v28 }
 0x565   : > { %2384 = vmatpush.msra.mxu1 %v5054_v11  ;;  %v1373_v46 = vadd.f32 %v7063_v54, %v1158_v44  ;;  %v1804_v2 = vadd.f32 %v7525_v35, %v1589_v24 }
 0x567   : > { %2385 = vmatpush.msra.mxu1 %v5055_v48  ;;  %v1588_v47 = vadd.f32 %v7292_v37, %v1373_v46  ;;  %v2019_v38 = vadd.f32 %v7906_v15, %v1804_v2  ;;  %v5531_v48 = vmov 256.0  }
 0x568   : > { %4921 = vrcp.f32 %v5531_v48 }
 0x569   : > { %2386 = vmatpush.msra.mxu1 %v5056_v51  ;;  %v1803_v14 = vadd.f32 %v7520_v33, %v1588_v47 }
 0x56b   : > { %2387 = vmatpush.msra.mxu1 %v5057_v52  ;;  %v2018_v10 = vadd.f32 %v7904_v5, %v1803_v14 }
 0x56d   : > { %2388 = vmatpush.msra.mxu1 %v5058_v58  ;;  %v2233_v43 = vadd.f32 %v2205_v59, %v2018_v10 }
 0x56e   : > { %v4922_v37 = vpop.eup %4921 }
 0x56f   : > { %2467 = vmatpush.msrb.mxu1 %v5059_v61  ;;  %v2242_v40 = vmul.f32 256.0, %v4922_v37  ;;  %vm2246_vm2 = vweird.f32 %v4922_v37 }
 0x571   : > { %2468 = vmatpush.msrb.mxu1 %v5060_v41  ;;  %v2243_v51 = vsub.f32 1.0, %v2242_v40 }
 0x573   : > { %2469 = vmatpush.msrb.mxu1 %v5061_v4  ;;  %v2244_v52 = vmul.f32 %v4922_v37, %v2243_v51 }
 0x575   : > { %2470 = vmatpush.msrb.mxu1 %v5062_v50  ;;  %v2245_v33 = vadd.f32 %v4922_v37, %v2244_v52 }
 0x577   : > { %2471 = vmatpush.msrb.mxu1 %v5063_v16  ;;  %v8041_v35 = vsel %vm2246_vm2, %v4922_v37, %v2245_v33  ;;  %v5075_v37 = vld [vmem:[%s10257_s3 + $0x5f8] sm:$0xff]  ;;  %v5076_v33 = vld [vmem:[%s10257_s3 + $0x5e8] sm:$0xff] }
 0x579   : > { %2472 = vmatpush.msrb.mxu1 %v5064_v49 }
 0x57b   : > { %2473 = vmatpush.msrb.mxu1 %v5065_v57 }
 0x57d   : > { %2474 = vmatpush.msrb.mxu1 %v5066_v60 }
 0x57f   : > { %2475 = vmatpush.msrb.mxu1 %v5067_v42 }
 0x581   : > { %2476 = vmatpush.msrb.mxu1 %v5068_v19 }
 0x583   : > { %2477 = vmatpush.msrb.mxu1 %v5069_v20 }
 0x585   : > { %2478 = vmatpush.msrb.mxu1 %v5070_v8 }
 0x587   : > { %2479 = vmatpush.msrb.mxu1 %v5071_v9 }
 0x589   : > { %2480 = vmatpush.msrb.mxu1 %v5072_v17 }
 0x58b   : > { %2481 = vmatpush.msrb.mxu1 %v5073_v21 }
 0x58d   : > { %2482 = vmatpush.msrb.mxu1 %v5074_v3 }
 0x5cb   : > { %v2225_v22 = vpop.f32.mrf.mxu1 }
 0x5cc   : > { %v2232_v31 = vadd.f32 %v2225_v22, %v2017_v1 }
 0x5ce   : > { %v2235_v26 = vadd.f32 %v2232_v31, %v2231_v45 }
 0x5d0   : > { %2236 = vadd.xlane.f32.xlu0 %v2235_v26 }
 0x5d3   : > { %v2228_v54 = vpop.f32.mrf.mxu1 }
 0x5d4   : > { %v2234_v56 = vadd.f32 %v2228_v54, %v2019_v38 }
 0x5d6   : > { %v2238_v11 = vadd.f32 %v2234_v56, %v2233_v43 }
 0x5d8   : > { %2239 = vadd.xlane.f32.xlu0 %v2238_v11 }
 0x643   : > { %v2237_v58 = vpop.xlane.xlu0 %2236 }
 0x644   : > { %v2248_v5 = vmul.f32 %v8041_v35, %v2237_v58  ;;  %v5077_v58 = vld [vmem:[%s10257_s3 + $0x5d8] sm:$0xff] }
 0x646   : > { %v2250_v61 = vsub.f32 %v2231_v45, %v2248_v5  ;;  %v2251_v15 = vsub.f32 %v2232_v31, %v2248_v5  ;;  %v5078_v5 = vld [vmem:[%s10257_s3 + $0x4f8] sm:$0xff] }
 0x648   : > { %v2254_v41 = vmul.f32 %v2250_v61, %v2250_v61  ;;  %v2255_v4 = vmul.f32 %v2251_v15, %v2251_v15 }
 0x64a   : > { %v2258_v50 = vadd.f32 %v2255_v4, %v2254_v41 }
 0x64b   : > { %v2240_v16 = vpop.xlane.xlu0 %2239 }
 0x64c   : > { %v2249_v49 = vmul.f32 %v8041_v35, %v2240_v16  ;;  %2259 = vadd.xlane.f32.xlu1 %v2258_v50  ;;  %v5080_v50 = vld [vmem:[%s10257_s3 + $0x4e8] sm:$0xff]  ;;  %v5081_v16 = vld [vmem:[%s10257_s3 + $0x5b8] sm:$0xff] }
 0x64e   : > { %v2252_v57 = vsub.f32 %v2233_v43, %v2249_v49  ;;  %v2253_v60 = vsub.f32 %v2234_v56, %v2249_v49  ;;  %v2396_v43 = vld [vmem:[%s10256_s2] sm:$0xff]  ;;  %v5082_v49 = vld [vmem:[%s10257_s3 + $0x4d8] sm:$0xff] }
 0x650   : > { %v2256_v42 = vmul.f32 %v2252_v57, %v2252_v57  ;;  %v2257_v19 = vmul.f32 %v2253_v60, %v2253_v60 }
 0x652   : > { %v2261_v20 = vadd.f32 %v2257_v19, %v2256_v42  ;;  %v5083_v42 = vld [vmem:[%s10257_s3 + $0x5a8] sm:$0xff] }
 0x654   : > { %2262 = vadd.xlane.f32.xlu1 %v2261_v20  ;;  %v5084_v20 = vld [vmem:[%s10257_s3 + $0x4c8] sm:$0xff] }
 0x6bf   : > { %v2260_v8 = vpop.xlane.xlu1 %2259 }
 0x6c0   : > { %v2264_v9 = vmul.f32 %v2260_v8, %v8041_v35  ;;  %v5085_v8 = vld [vmem:[%s10257_s3 + $0x598] sm:$0xff] }
 0x6c2   : > { %v2266_v17 = vadd.f32 1e-05, %v2264_v9 }
 0x6c4   : > { %4923 = vrsqrt.f32 %v2266_v17  ;;  %vm2274_vm4 = vweird.f32 %v2266_v17 }
 0x6c7   : > { %v2263_v21 = vpop.xlane.xlu1 %2262 }
 0x6c8   : > { %v2265_v3 = vmul.f32 %v2263_v21, %v8041_v35  ;;  %v5087_v21 = vld [vmem:[%s10257_s3 + $0x588] sm:$0xff] }
 0x6ca   : > { %v4924_v25 = vpop.eup %4923  ;;  %v2267_v23 = vadd.f32 1e-05, %v2265_v3  ;;  %v8123_v3 = vld [vmem:[%s10256_s2 + $0x10] sm:$0xff] }
 0x6cb   : > { %v2269_v27 = vmul.f32 %v4924_v25, %v2266_v17  ;;  %vm2275_vm3 = vweird.f32 %v4924_v25  ;;  %v5086_v17 = vld [vmem:[%s10257_s3 + $0x4b8] sm:$0xff] }
 0x6cc   : > { %4925 = vrsqrt.f32 %v2267_v23  ;;  %vm2276_vm5 = vmor %vm2274_vm4, %vm2275_vm3  ;;  %vm2284_vm9 = vweird.f32 %v2267_v23 }
 0x6cd   : > { %v2270_v29 = vmul.f32 %v4924_v25, %v2269_v27  ;;  %v5088_v27 = vld [vmem:[%s10257_s3 + $0x4a8] sm:$0xff] }
 0x6cf   : > { %v2271_v55 = vmul.f32 0.5, %v2270_v29 }
 0x6d1   : > { %v2272_v30 = vsub.f32 1.5, %v2271_v55  ;;  %v5089_v55 = vld [vmem:[%s10257_s3 + $0x5f0] sm:$0xff] }
 0x6d2   : > { %v4926_v32 = vpop.eup %4925 }
 0x6d3   : > { %v2273_v34 = vmul.f32 %v4924_v25, %v2272_v30  ;;  %v2279_v53 = vmul.f32 %v4926_v32, %v2267_v23  ;;  %vm2285_vm8 = vweird.f32 %v4926_v32  ;;  %v5090_v30 = vld [vmem:[%s10257_s3 + $0x578] sm:$0xff] }
 0x6d4   : > { %vm2286_vm10 = vmor %vm2284_vm9, %vm2285_vm8 }
 0x6d5   : > { %v2277_v62 = vsel %vm2276_vm5, %v4924_v25, %v2273_v34  ;;  %v2280_v63 = vmul.f32 %v4926_v32, %v2279_v53  ;;  %v5092_v34 = vld [vmem:[%s10257_s3 + $0x5e0] sm:$0xff]  ;;  %v5093_v53 = vld [vmem:[%s10257_s3 + $0x568] sm:$0xff] }
 0x6d6   : > { %v2288_v12 = vmul.f32 %v2277_v62, %v2250_v61  ;;  %v2289_v13 = vmul.f32 %v2277_v62, %v2251_v15  ;;  %v5079_v61 = vld [vmem:[%s10257_s3 + $0x5c8] sm:$0xff] }
 0x6d7   : > { %v2281_v36 = vmul.f32 0.5, %v2280_v63  ;;  %v2397_v15 = vld [vmem:[%s10256_s2 + $0x8] sm:$0xff] }
 0x6d8   : > { %vm2292_vm6 = vcmp.ge.f32.partialorder %v2288_v12, 0.0  ;;  %vm2293_vm7 = vcmp.ge.f32.partialorder %v2289_v13, 0.0  ;;  %v2296_v39 = vmul.f32 0.01, %v2288_v12  ;;  %v2297_v6 = vmul.f32 0.01, %v2289_v13 }
 0x6d9   : > { %v2282_v7 = vsub.f32 1.5, %v2281_v36  ;;  %v5094_v63 = vld [vmem:[%s10257_s3 + $0x488] sm:$0xff]  ;;  %v5097_v36 = vld [vmem:[%s10257_s3 + $0x478] sm:$0xff] }
 0x6da   : > { %v8047_v44 = vsel %vm2292_vm6, %v2288_v12, %v2296_v39  ;;  %v8049_v0 = vsel %vm2293_vm7, %v2289_v13, %v2297_v6  ;;  %v5095_v12 = vld [vmem:[%s10257_s3 + $0x5d0] sm:$0xff]  ;;  %v5096_v13 = vld [vmem:[%s10257_s3 + $0x558] sm:$0xff]  ;;  %v5099_v6 = vld [vmem:[%s10257_s3 + $0x5c0] sm:$0xff] }
 0x6db   : > { %v2283_v18 = vmul.f32 %v4926_v32, %v2282_v7  ;;  %2320 = vmatmul.f32.vlgmr.msrb.gmra.mxu2 %v8047_v44  ;;  %2343 = vmatmul.f32.vlgmr.msrb.gmra.mxu3 %v8049_v0  ;;  %v5098_v39 = vld [vmem:[%s10257_s3 + $0x4f0] sm:$0xff]  ;;  %v5100_v7 = vld [vmem:[%s10257_s3 + $0x548] sm:$0xff] }
 0x6dc   : > { %2366 = vmatmul.f32.vlgmr.msra.gmra.mxu0 %v8047_v44  ;;  %2389 = vmatmul.f32.vlgmr.msra.gmra.mxu1 %v8049_v0 }
 0x6dd   : > { %v2287_v1 = vsel %vm2286_vm10, %v4926_v32, %v2283_v18  ;;  %v5091_v32 = vld [vmem:[%s10257_s3 + $0x498] sm:$0xff]  ;;  %v5101_v18 = vld [vmem:[%s10257_s3 + $0x468] sm:$0xff] }
 0x6de   : > { %v2290_v22 = vmul.f32 %v2287_v1, %v2252_v57  ;;  %v2291_v46 = vmul.f32 %v2287_v1, %v2253_v60  ;;  %v5102_v1 = vld [vmem:[%s10257_s3 + $0x4e0] sm:$0xff] }
 0x6e0   : > { %vm2294_vm11 = vcmp.ge.f32.partialorder %v2290_v22, 0.0  ;;  %vm2295_vm12 = vcmp.ge.f32.partialorder %v2291_v46, 0.0  ;;  %v2298_v28 = vmul.f32 0.01, %v2290_v22  ;;  %v2299_v45 = vmul.f32 0.01, %v2291_v46 }
 0x6e2   : > { %v8055_v31 = vsel %vm2294_vm11, %v2290_v22, %v2298_v28  ;;  %v8057_v47 = vsel %vm2295_vm12, %v2291_v46, %v2299_v45  ;;  %v5103_v22 = vld [vmem:[%s10257_s3 + $0x5b0] sm:$0xff]  ;;  %v5104_v46 = vld [vmem:[%s10257_s3 + $0x538] sm:$0xff] }
 0x6e3   : > { %2323 = vmatmul.f32.gmra.mxu2 %v8055_v31  ;;  %2346 = vmatmul.f32.gmra.mxu3 %v8057_v47  ;;  %v5105_v28 = vld [vmem:[%s10257_s3 + $0x458] sm:$0xff]  ;;  %v5106_v45 = vld [vmem:[%s10257_s3 + $0x4d0] sm:$0xff] }
 0x6e4   : > { %2369 = vmatmul.f32.gmra.mxu0 %v8055_v31  ;;  %2392 = vmatmul.f32.gmra.mxu1 %v8057_v47 }
 0x6eb   : > { %2414 = vmatmul.f32.vlgmr.msra.gmra.mxu2 %v8047_v44  ;;  %2437 = vmatmul.f32.vlgmr.msra.gmra.mxu3 %v8049_v0 }
 0x6ec   : > { %2460 = vmatmul.f32.vlgmr.msrb.gmra.mxu0 %v8047_v44  ;;  %2483 = vmatmul.f32.vlgmr.msrb.gmra.mxu1 %v8049_v0 }
 0x6f3   : > { %2417 = vmatmul.f32.gmra.mxu2 %v8055_v31  ;;  %2440 = vmatmul.f32.gmra.mxu3 %v8057_v47 }
 0x6f4   : > { %2463 = vmatmul.f32.gmra.mxu0 %v8055_v31  ;;  %2486 = vmatmul.f32.gmra.mxu1 %v8057_v47 }
 0x759   : > { %v2367_v24 = vpop.f32.mrf.mxu0  ;;  %v2390_v26 = vpop.f32.mrf.mxu1 }
 0x75a   : > { %v2391_v54 = vadd.f32 %v2390_v26, %v2367_v24  ;;  %v5107_v24 = vld [vmem:[%s10257_s3 + $0x5a0] sm:$0xff]  ;;  %v5108_v26 = vld [vmem:[%s10257_s3 + $0x528] sm:$0xff] }
 0x75e   : > { %v2321_v14 = vpop.f32.mrf.mxu2  ;;  %v2344_v2 = vpop.f32.mrf.mxu3 }
 0x75f   : > { %v2345_v40 = vadd.f32 %v2344_v2, %v2321_v14  ;;  %v5109_v14 = vld [vmem:[%s10257_s3 + $0x448] sm:$0xff]  ;;  %v5110_v2 = vld [vmem:[%s10257_s3 + $0x4c0] sm:$0xff] }
 0x761   : > { %v2370_v59 = vpop.f32.mrf.mxu0  ;;  %v2393_v10 = vpop.f32.mrf.mxu1 }
 0x762   : > { %v2394_v38 = vadd.f32 %v2393_v10, %v2370_v59  ;;  %v5111_v59 = vld [vmem:[%s10257_s3 + $0x590] sm:$0xff]  ;;  %v5112_v10 = vld [vmem:[%s10257_s3 + $0x518] sm:$0xff] }
 0x764   : > { %2589 = vmatpush.msra.mxu1 %v2394_v38  ;;  %v5113_v38 = vld [vmem:[%s10257_s3 + $0x438] sm:$0xff] }
 0x766   : > { %2590 = vmatpush.msra.mxu1 %v2391_v54  ;;  %v2324_v56 = vpop.f32.mrf.mxu2  ;;  %v2347_v11 = vpop.f32.mrf.mxu3  ;;  %v5114_v54 = vld [vmem:[%s10257_s3 + $0x4b0] sm:$0xff] }
 0x767   : > { %v2348_v48 = vadd.f32 %v2347_v11, %v2324_v56  ;;  %4863 = vmatmul.msk.f32.vlgmr.msra.gmra.mxu1 %vm2493_vm13, %v2396_v43  ;;  %v5116_v56 = vld [vmem:[%s10257_s3 + $0x508] sm:$0xff] }
 0x768   : > { %2667 = vmatpush.msrb.mxu1 %v5075_v37  ;;  %v5117_v11 = vld [vmem:[%s10257_s3 + $0x428] sm:$0xff]  ;;  %v5119_v37 = vld [vmem:[%s10257_s3 + $0x7f0] sm:$0xff] }
 0x769   : > { %v2461_v51 = vpop.f32.mrf.mxu0  ;;  %v2484_v52 = vpop.f32.mrf.mxu1  ;;  %2566 = vmatpush.msra.mxu0 %v2348_v48  ;;  %v5118_v48 = vld [vmem:[%s10257_s3 + $0x4a0] sm:$0xff] }
 0x76a   : > { %2668 = vmatpush.msrb.mxu1 %v5076_v33  ;;  %v2485_v9 = vadd.f32 %v2484_v52, %v2461_v51  ;;  %v5121_v51 = vld [vmem:[%s10257_s3 + $0x490] sm:$0xff]  ;;  %v5122_v52 = vld [vmem:[%s10257_s3 + $0x418] sm:$0xff]  ;;  %v5123_v33 = vld [vmem:[%s10257_s3 + $0x7e0] sm:$0xff] }
 0x76b   : > { %2567 = vmatpush.msra.mxu0 %v2345_v40  ;;  %v5120_v40 = vld [vmem:[%s10257_s3 + $0x570] sm:$0xff] }
 0x76c   : > { %2669 = vmatpush.msrb.mxu1 %v5077_v58  ;;  %4861 = vmatmul.msk.f32.vlgmr.msra.gmra.mxu0 %vm2493_vm13, %v2396_v43  ;;  %v5115_v43 = vld [vmem:[%s10257_s3 + $0x580] sm:$0xff] }
 0x76d   : > { %2644 = vmatpush.msrb.mxu0 %v5078_v5  ;;  %v5124_v58 = vld [vmem:[%s10257_s3 + $0x560] sm:$0xff] }
 0x76e   : > { %2670 = vmatpush.msrb.mxu1 %v5079_v61  ;;  %v2415_v41 = vpop.f32.mrf.mxu2  ;;  %v2438_v4 = vpop.f32.mrf.mxu3  ;;  %v5125_v5 = vld [vmem:[%s10257_s3 + $0x480] sm:$0xff]  ;;  %v5126_v61 = vld [vmem:[%s10257_s3 + $0x408] sm:$0xff] }
 0x76f   : > { %2645 = vmatpush.msrb.mxu0 %v5080_v50  ;;  %4864 = vmatmul.msk.f32.gmra.mxu1 %vm2493_vm13, %v2397_v15  ;;  %v2439_v62 = vadd.f32 %v2438_v4, %v2415_v41  ;;  %v5128_v41 = vld [vmem:[%s10257_s3 + $0x550] sm:$0xff]  ;;  %v4856_v4 = vld [vmem:[%s10256_s2 + $0x18] sm:$0xff] }
 0x770   : > { %2671 = vmatpush.msrb.mxu1 %v5081_v16  ;;  %v5129_v50 = vld [vmem:[%s10257_s3 + $0x6f0] sm:$0xff]  ;;  %v5130_v16 = vld [vmem:[%s10257_s3 + $0x7c0] sm:$0xff] }
 0x771   : > { %2646 = vmatpush.msrb.mxu0 %v5082_v49  ;;  %v2464_v57 = vpop.f32.mrf.mxu0  ;;  %v2487_v60 = vpop.f32.mrf.mxu1  ;;  %v5131_v49 = vld [vmem:[%s10257_s3 + $0x470] sm:$0xff] }
 0x772   : > { %2672 = vmatpush.msrb.mxu1 %v5083_v42  ;;  %v2488_v19 = vadd.f32 %v2487_v60, %v2464_v57  ;;  %v5132_v57 = vld [vmem:[%s10257_s3 + $0x540] sm:$0xff]  ;;  %v5134_v42 = vld [vmem:[%s10257_s3 + $0x7b0] sm:$0xff] }
 0x773   : > { %2647 = vmatpush.msrb.mxu0 %v5084_v20  ;;  %v5133_v60 = vld [vmem:[%s10257_s3 + $0x6e0] sm:$0xff]  ;;  %v5136_v20 = vld [vmem:[%s10257_s3 + $0x530] sm:$0xff] }
 0x774   : > { %2673 = vmatpush.msrb.mxu1 %v5085_v8  ;;  %2537 = vmatpush.msrb.mxu3 %v2488_v19  ;;  %v5135_v19 = vld [vmem:[%s10257_s3 + $0x460] sm:$0xff]  ;;  %v5137_v8 = vld [vmem:[%s10257_s3 + $0x6d0] sm:$0xff] }
 0x775   : > { %2648 = vmatpush.msrb.mxu0 %v5086_v17  ;;  %v5139_v17 = vld [vmem:[%s10257_s3 + $0x450] sm:$0xff] }
 0x776   : > { %2674 = vmatpush.msrb.mxu1 %v5087_v21  ;;  %4862 = vmatmul.msk.f32.gmra.mxu0 %vm2493_vm13, %v2397_v15  ;;  %v2418_v25 = vpop.f32.mrf.mxu2  ;;  %v2441_v23 = vpop.f32.mrf.mxu3  ;;  %v5127_v15 = vld [vmem:[%s10257_s3 + $0x7d0] sm:$0xff]  ;;  %v5140_v21 = vld [vmem:[%s10257_s3 + $0x520] sm:$0xff] }
 0x777   : > { %2538 = vmatpush.msrb.mxu3 %v2485_v9  ;;  %2649 = vmatpush.msrb.mxu0 %v5088_v27  ;;  %v2442_v29 = vadd.f32 %v2441_v23, %v2418_v25  ;;  %v5138_v9 = vld [vmem:[%s10257_s3 + $0x7a0] sm:$0xff]  ;;  %v5142_v25 = vld [vmem:[%s10257_s3 + $0x790] sm:$0xff] }
 0x778   : > { %2675 = vmatpush.msrb.mxu1 %v5090_v30  ;;  %4859 = vmatmul.msk.f32.vlgmr.msrb.gmra.mxu3 %vm2493_vm13, %v8123_v3  ;;  %v5143_v23 = vld [vmem:[%s10257_s3 + $0x440] sm:$0xff]  ;;  %v5144_v27 = vld [vmem:[%s10257_s3 + $0x510] sm:$0xff] }
 0x779   : > { %2621 = vmatpush.msra.mxu3 %v5089_v55  ;;  %2650 = vmatpush.msrb.mxu0 %v5091_v32  ;;  %v5146_v55 = vld [vmem:[%s10257_s3 + $0x780] sm:$0xff]  ;;  %v5147_v30 = vld [vmem:[%s10257_s3 + $0x430] sm:$0xff] }
 0x77a   : > { %2676 = vmatpush.msrb.mxu1 %v5093_v53  ;;  %2514 = vmatpush.msrb.mxu2 %v2442_v29  ;;  %v5145_v29 = vld [vmem:[%s10257_s3 + $0x6b0] sm:$0xff]  ;;  %v5148_v32 = vld [vmem:[%s10257_s3 + $0x500] sm:$0xff] }
 0x77b   : > { %2622 = vmatpush.msra.mxu3 %v5092_v34  ;;  %2651 = vmatpush.msrb.mxu0 %v5094_v63  ;;  %v5149_v34 = vld [vmem:[%s10257_s3 + $0x6a0] sm:$0xff]  ;;  %v5150_v53 = vld [vmem:[%s10257_s3 + $0x770] sm:$0xff] }
 0x77c   : > { %2677 = vmatpush.msrb.mxu1 %v5096_v13  ;;  %2515 = vmatpush.msrb.mxu2 %v2439_v62  ;;  %v5151_v62 = vld [vmem:[%s10257_s3 + $0x420] sm:$0xff]  ;;  %v5152_v63 = vld [vmem:[%s10257_s3 + $0x690] sm:$0xff] }
 0x77d   : > { %2623 = vmatpush.msra.mxu3 %v5095_v12  ;;  %2652 = vmatpush.msrb.mxu0 %v5097_v36  ;;  %v5153_v12 = vld [vmem:[%s10257_s3 + $0x760] sm:$0xff]  ;;  %v5154_v13 = vld [vmem:[%s10257_s3 + $0x410] sm:$0xff] }
 0x77e   : > { %2598 = vmatpush.msra.mxu2 %v5098_v39  ;;  %2678 = vmatpush.msrb.mxu1 %v5100_v7  ;;  %v5155_v36 = vld [vmem:[%s10257_s3 + $0x680] sm:$0xff]  ;;  %v5156_v39 = vld [vmem:[%s10257_s3 + $0x750] sm:$0xff] }
 0x77f   : > { %2624 = vmatpush.msra.mxu3 %v5099_v6  ;;  %2653 = vmatpush.msrb.mxu0 %v5101_v18  ;;  %v5157_v6 = vld [vmem:[%s10257_s3 + $0x400] sm:$0xff]  ;;  %v5158_v7 = vld [vmem:[%s10257_s3 + $0x670] sm:$0xff] }
 0x780   : > { %2599 = vmatpush.msra.mxu2 %v5102_v1  ;;  %2679 = vmatpush.msrb.mxu1 %v5104_v46  ;;  %v5159_v18 = vld [vmem:[%s10257_s3 + $0x740] sm:$0xff]  ;;  %v5162_v46 = vld [vmem:[%s10257_s3 + $0x650] sm:$0xff] }
 0x781   : > { %2625 = vmatpush.msra.mxu3 %v5103_v22  ;;  %2654 = vmatpush.msrb.mxu0 %v5105_v28  ;;  %v5160_v1 = vld [vmem:[%s10257_s3 + $0x660] sm:$0xff]  ;;  %v5161_v22 = vld [vmem:[%s10257_s3 + $0x730] sm:$0xff] }
 0x782   : > { %2600 = vmatpush.msra.mxu2 %v5106_v45  ;;  %2680 = vmatpush.msrb.mxu1 %v5108_v26  ;;  %v5163_v28 = vld [vmem:[%s10257_s3 + $0x720] sm:$0xff]  ;;  %v5166_v26 = vld [vmem:[%s10257_s3 + $0x630] sm:$0xff] }
 0x783   : > { %2626 = vmatpush.msra.mxu3 %v5107_v24  ;;  %2655 = vmatpush.msrb.mxu0 %v5109_v14  ;;  %v5164_v45 = vld [vmem:[%s10257_s3 + $0x640] sm:$0xff]  ;;  %v5165_v24 = vld [vmem:[%s10257_s3 + $0x710] sm:$0xff] }
 0x784   : > { %2601 = vmatpush.msra.mxu2 %v5110_v2  ;;  %2681 = vmatpush.msrb.mxu1 %v5112_v10  ;;  %v5167_v14 = vld [vmem:[%s10257_s3 + $0x700] sm:$0xff] }
 0x785   : > { %2627 = vmatpush.msra.mxu3 %v5111_v59  ;;  %2656 = vmatpush.msrb.mxu0 %v5113_v38  ;;  %v5168_v2 = vld [vmem:[%s10257_s3 + $0x620] sm:$0xff]  ;;  %v5169_v59 = vld [vmem:[%s10257_s3 + $0x610] sm:$0xff] }
 0x786   : > { %2602 = vmatpush.msra.mxu2 %v5114_v54  ;;  %2682 = vmatpush.msrb.mxu1 %v5116_v56  ;;  %v5170_v10 = vld [vmem:[%s10257_s3 + $0x600] sm:$0xff] }
 0x787   : > { %2628 = vmatpush.msra.mxu3 %v5115_v43  ;;  %2657 = vmatpush.msrb.mxu0 %v5117_v11 }
 0x788   : > { %2683 = vmatmul.f32.vlgmr.msrb.gmra.mxu1 %v8049_v0  ;;  %2603 = vmatpush.msra.mxu2 %v5118_v48 }
 0x789   : > { %2772 = vmatpush.msra.mxu1 %v5119_v37  ;;  %2629 = vmatpush.msra.mxu3 %v5120_v40 }
 0x78a   : > { %2604 = vmatpush.msra.mxu2 %v5121_v51  ;;  %2658 = vmatpush.msrb.mxu0 %v5122_v52 }
 0x78b   : > { %2773 = vmatpush.msra.mxu1 %v5123_v33  ;;  %2630 = vmatpush.msra.mxu3 %v5124_v58 }
 0x78c   : > { %2605 = vmatpush.msra.mxu2 %v5125_v5  ;;  %2659 = vmatpush.msrb.mxu0 %v5126_v61  ;;  %v4865_v61 = vld [vmem:[%s10256_s2 + $0x20] sm:$0xff] }
 0x78d   : > { %2774 = vmatpush.msra.mxu1 %v5127_v15  ;;  %2631 = vmatpush.msra.mxu3 %v5128_v41  ;;  %v5171_v41 = vld [vmem:[%s10257_s3 + $0x7f8] sm:$0xff] }
 0x78e   : > { %4857 = vmatmul.msk.f32.vlgmr.msrb.gmra.mxu2 %vm2493_vm13, %v8123_v3  ;;  %2660 = vmatmul.f32.vlgmr.msrb.gmra.mxu0 %v8047_v44  ;;  %v5141_v3 = vld [vmem:[%s10257_s3 + $0x6c0] sm:$0xff] }
 0x78f   : > { %2749 = vmatpush.msra.mxu0 %v5129_v50  ;;  %2775 = vmatpush.msra.mxu1 %v5130_v16  ;;  %v5173_v50 = vld [vmem:[%s10257_s3 + $0x7d8] sm:$0xff]  ;;  %v4866_v16 = vld [vmem:[%s10256_s2 + $0x28] sm:$0xff] }
 0x790   : > { %2606 = vmatpush.msra.mxu2 %v5131_v49  ;;  %2632 = vmatpush.msra.mxu3 %v5132_v57  ;;  %v5174_v57 = vld [vmem:[%s10257_s3 + $0x7c8] sm:$0xff] }
 0x791   : > { %4860 = vmatmul.msk.f32.gmra.mxu3 %vm2493_vm13, %v4856_v4  ;;  %2686 = vmatmul.f32.gmra.mxu1 %v8057_v47 }
 0x792   : > { %2750 = vmatpush.msra.mxu0 %v5133_v60  ;;  %2776 = vmatpush.msra.mxu1 %v5134_v42  ;;  %v5175_v42 = vld [vmem:[%s10257_s3 + $0x7b8] sm:$0xff] }
 0x793   : > { %2607 = vmatpush.msra.mxu2 %v5135_v19  ;;  %2633 = vmatpush.msra.mxu3 %v5136_v20  ;;  %v5176_v19 = vld [vmem:[%s10257_s3 + $0x7a8] sm:$0xff]  ;;  %v5177_v20 = vld [vmem:[%s10257_s3 + $0x798] sm:$0xff] }
 0x794   : > { %2751 = vmatpush.msra.mxu0 %v5137_v8  ;;  %2777 = vmatpush.msra.mxu1 %v5138_v9  ;;  %v5178_v8 = vld [vmem:[%s10257_s3 + $0x788] sm:$0xff] }
 0x795   : > { %2608 = vmatpush.msra.mxu2 %v5139_v17  ;;  %2634 = vmatpush.msra.mxu3 %v5140_v21 }
 0x796   : > { %2752 = vmatpush.msra.mxu0 %v5141_v3  ;;  %2778 = vmatpush.msra.mxu1 %v5142_v25  ;;  %v5179_v3 = vld [vmem:[%s10257_s3 + $0x778] sm:$0xff] }
 0x797   : > { %2609 = vmatpush.msra.mxu2 %v5143_v23  ;;  %2635 = vmatpush.msra.mxu3 %v5144_v27  ;;  %v5180_v27 = vld [vmem:[%s10257_s3 + $0x768] sm:$0xff] }
 0x798   : > { %4858 = vmatmul.msk.f32.gmra.mxu2 %vm2493_vm13, %v4856_v4  ;;  %2663 = vmatmul.f32.gmra.mxu0 %v8055_v31  ;;  %v5172_v4 = vld [vmem:[%s10257_s3 + $0x7e8] sm:$0xff] }
 0x799   : > { %2753 = vmatpush.msra.mxu0 %v5145_v29  ;;  %2779 = vmatpush.msra.mxu1 %v5146_v55  ;;  %v5181_v55 = vld [vmem:[%s10257_s3 + $0x758] sm:$0xff] }
 0x79a   : > { %2610 = vmatpush.msra.mxu2 %v5147_v30  ;;  %2636 = vmatpush.msra.mxu3 %v5148_v32  ;;  %v5182_v30 = vld [vmem:[%s10257_s3 + $0x748] sm:$0xff]  ;;  %v5183_v32 = vld [vmem:[%s10257_s3 + $0x6f8] sm:$0xff] }
 0x79b   : > { %2637 = vmatmul.f32.vlgmr.msra.gmra.mxu3 %v8049_v0  ;;  %2754 = vmatpush.msra.mxu0 %v5149_v34  ;;  %v5184_v34 = vld [vmem:[%s10257_s3 + $0x738] sm:$0xff] }
 0x79c   : > { %2780 = vmatpush.msra.mxu1 %v5150_v53  ;;  %2611 = vmatpush.msra.mxu2 %v5151_v62  ;;  %v5185_v62 = vld [vmem:[%s10257_s3 + $0x6e8] sm:$0xff] }
 0x79d   : > { %2755 = vmatpush.msra.mxu0 %v5152_v63 }
 0x79e   : > { %2781 = vmatpush.msra.mxu1 %v5153_v12  ;;  %2612 = vmatpush.msra.mxu2 %v5154_v13  ;;  %v5186_v13 = vld [vmem:[%s10257_s3 + $0x728] sm:$0xff] }
 0x79f   : > { %2756 = vmatpush.msra.mxu0 %v5155_v36  ;;  %v5187_v36 = vld [vmem:[%s10257_s3 + $0x6d8] sm:$0xff] }
 0x7a0   : > { %2782 = vmatpush.msra.mxu1 %v5156_v39  ;;  %2613 = vmatpush.msra.mxu2 %v5157_v6  ;;  %v5188_v39 = vld [vmem:[%s10257_s3 + $0x718] sm:$0xff] }
 0x7a1   : > { %2614 = vmatmul.f32.vlgmr.msra.gmra.mxu2 %v8047_v44  ;;  %2757 = vmatpush.msra.mxu0 %v5158_v7  ;;  %v5189_v7 = vld [vmem:[%s10257_s3 + $0x6c8] sm:$0xff] }
 0x7a2   : > { %2783 = vmatpush.msra.mxu1 %v5159_v18  ;;  %v8480_v18 = vld [vmem:[%s10256_s2 + $0x30] sm:$0xff] }
 0x7a3   : > { %2640 = vmatmul.f32.gmra.mxu3 %v8057_v47  ;;  %2758 = vmatpush.msra.mxu0 %v5160_v1  ;;  %v5190_v1 = vld [vmem:[%s10257_s3 + $0x708] sm:$0xff] }
 0x7a4   : > { %2784 = vmatpush.msra.mxu1 %v5161_v22  ;;  %v5191_v22 = vld [vmem:[%s10257_s3 + $0x6b8] sm:$0xff] }
 0x7a5   : > { %2759 = vmatpush.msra.mxu0 %v5162_v46  ;;  %v5192_v46 = vld [vmem:[%s10257_s3 + $0x9f0] sm:$0xff] }
 0x7a6   : > { %2785 = vmatpush.msra.mxu1 %v5163_v28  ;;  %v5193_v28 = vld [vmem:[%s10257_s3 + $0x8f8] sm:$0xff] }
 0x7a7   : > { %2760 = vmatpush.msra.mxu0 %v5164_v45  ;;  %v5194_v45 = vld [vmem:[%s10257_s3 + $0x6a8] sm:$0xff] }
 0x7a8   : > { %2786 = vmatpush.msra.mxu1 %v5165_v24  ;;  %v5195_v24 = vld [vmem:[%s10257_s3 + $0x9e0] sm:$0xff] }
 0x7a9   : > { %2617 = vmatmul.f32.gmra.mxu2 %v8055_v31  ;;  %2761 = vmatpush.msra.mxu0 %v5166_v26  ;;  %v5196_v26 = vld [vmem:[%s10257_s3 + $0x8e8] sm:$0xff] }
 0x7aa   : > { %2787 = vmatpush.msra.mxu1 %v5167_v14  ;;  %v5197_v14 = vld [vmem:[%s10257_s3 + $0x698] sm:$0xff] }
 0x7ab   : > { %2788 = vmatmul.f32.vlgmr.msra.gmra.mxu1 %v8049_v0  ;;  %2762 = vmatpush.msra.mxu0 %v5168_v2  ;;  %v5198_v2 = vld [vmem:[%s10257_s3 + $0x9d0] sm:$0xff] }
 0x7ad   : > { %2763 = vmatpush.msra.mxu0 %v5169_v59  ;;  %v5199_v59 = vld [vmem:[%s10257_s3 + $0x8d8] sm:$0xff] }
 0x7af   : > { %2764 = vmatpush.msra.mxu0 %v5170_v10  ;;  %v5200_v10 = vld [vmem:[%s10257_s3 + $0x688] sm:$0xff] }
 0x7b0   : > { %2765 = vmatmul.f32.vlgmr.msra.gmra.mxu0 %v8047_v44 }
 0x7b3   : > { %2791 = vmatmul.f32.gmra.mxu1 %v8057_v47 }
 0x7b8   : > { %2768 = vmatmul.f32.gmra.mxu0 %v8055_v31 }
 0x7e4   : > { %v8395_v38 = vpop.f32.mrf.mxu1 }
 0x7e9   : > { %v8397_v54 = vpop.f32.mrf.mxu0 }
 0x7ec   : > { %v8399_v43 = vpop.f32.mrf.mxu1 }
 0x7f3   : > { %v8401_v56 = vpop.f32.mrf.mxu0 }
 0x7fb   : > { %v8403_v37 = vpop.f32.mrf.mxu3 }
 0x805   : > { %v2684_v11 = vpop.f32.mrf.mxu1 }
 0x80b   : > { %v2661_v48 = vpop.f32.mrf.mxu0 }
 0x80c   : > { %v2685_v58 = vadd.f32 %v2684_v11, %v2661_v48  ;;  %v8522_v11 = vld [vmem:[%s10256_s2 + $0x38] sm:$0xff]  ;;  %v5201_v48 = vld [vmem:[%s10257_s3 + $0x9c0] sm:$0xff] }
 0x80e   : > { %v2687_v51 = vpop.f32.mrf.mxu1 }
 0x811   : > { %v8405_v40 = vpop.f32.mrf.mxu2 }
 0x814   : > { %v8407_v5 = vpop.f32.mrf.mxu3 }
 0x815   : > { %v2664_v52 = vpop.f32.mrf.mxu0 }
 0x816   : > { %v2688_v33 = vadd.f32 %v2687_v51, %v2664_v52  ;;  %v5202_v51 = vld [vmem:[%s10257_s3 + $0x8c8] sm:$0xff]  ;;  %v5203_v52 = vld [vmem:[%s10257_s3 + $0x678] sm:$0xff] }
 0x818   : > { %2736 = vmatpush.msrb.mxu3 %v2688_v33  ;;  %v5204_v33 = vld [vmem:[%s10257_s3 + $0x9b0] sm:$0xff] }
 0x81a   : > { %2737 = vmatpush.msrb.mxu3 %v2685_v58  ;;  %v5205_v58 = vld [vmem:[%s10257_s3 + $0x8b8] sm:$0xff] }
 0x81b   : > { %v8412_v15 = vpop.f32.mrf.mxu2  ;;  %4869 = vmatmul.msk.f32.vlgmr.msrb.gmra.mxu3 %vm2493_vm13, %v4865_v61 }
 0x81c   : > { %2818 = vmatpush.msra.mxu3 %v5171_v41  ;;  %v5207_v41 = vld [vmem:[%s10257_s3 + $0x9a0] sm:$0xff] }
 0x81e   : > { %2819 = vmatpush.msra.mxu3 %v5172_v4  ;;  %v2638_v49 = vpop.f32.mrf.mxu3  ;;  %v5208_v4 = vld [vmem:[%s10257_s3 + $0x8a8] sm:$0xff] }
 0x820   : > { %2820 = vmatpush.msra.mxu3 %v5173_v50  ;;  %v5209_v50 = vld [vmem:[%s10257_s3 + $0x658] sm:$0xff] }
 0x822   : > { %2821 = vmatpush.msra.mxu3 %v5174_v57  ;;  %v5212_v57 = vld [vmem:[%s10257_s3 + $0x648] sm:$0xff] }
 0x823   : > { %4870 = vmatmul.msk.f32.gmra.mxu3 %vm2493_vm13, %v4866_v16 }
 0x824   : > { %v2615_v60 = vpop.f32.mrf.mxu2  ;;  %2822 = vmatpush.msra.mxu3 %v5175_v42  ;;  %v5214_v42 = vld [vmem:[%s10257_s3 + $0x888] sm:$0xff] }
 0x825   : > { %v2639_v29 = vadd.f32 %v2638_v49, %v2615_v60  ;;  %v5211_v49 = vld [vmem:[%s10257_s3 + $0x898] sm:$0xff]  ;;  %v5213_v60 = vld [vmem:[%s10257_s3 + $0x980] sm:$0xff] }
 0x826   : > { %2823 = vmatpush.msra.mxu3 %v5176_v19  ;;  %v2641_v17 = vpop.f32.mrf.mxu3  ;;  %v5215_v19 = vld [vmem:[%s10257_s3 + $0x638] sm:$0xff] }
 0x828   : > { %2824 = vmatpush.msra.mxu3 %v5177_v20  ;;  %v2789_v9 = vpop.f32.mrf.mxu1  ;;  %v5216_v20 = vld [vmem:[%s10257_s3 + $0x970] sm:$0xff] }
 0x82a   : > { %2825 = vmatpush.msra.mxu3 %v5178_v8  ;;  %v5217_v8 = vld [vmem:[%s10257_s3 + $0x878] sm:$0xff] }
 0x82c   : > { %v2618_v21 = vpop.f32.mrf.mxu2  ;;  %2826 = vmatpush.msra.mxu3 %v5179_v3  ;;  %v5221_v3 = vld [vmem:[%s10257_s3 + $0x618] sm:$0xff] }
 0x82d   : > { %v2642_v25 = vadd.f32 %v2641_v17, %v2618_v21  ;;  %v2766_v23 = vpop.f32.mrf.mxu0  ;;  %v5219_v17 = vld [vmem:[%s10257_s3 + $0x960] sm:$0xff]  ;;  %v5220_v21 = vld [vmem:[%s10257_s3 + $0x868] sm:$0xff] }
 0x82e   : > { %2827 = vmatpush.msra.mxu3 %v5180_v27  ;;  %v2790_v6 = vadd.f32 %v2789_v9, %v2766_v23  ;;  %v5218_v9 = vld [vmem:[%s10257_s3 + $0x628] sm:$0xff]  ;;  %v5223_v23 = vld [vmem:[%s10257_s3 + $0x858] sm:$0xff] }
 0x82f   : > { %2713 = vmatpush.msrb.mxu2 %v2642_v25  ;;  %v5222_v25 = vld [vmem:[%s10257_s3 + $0x950] sm:$0xff]  ;;  %v5224_v27 = vld [vmem:[%s10257_s3 + $0x608] sm:$0xff] }
 0x830   : > { %2828 = vmatpush.msra.mxu3 %v5181_v55  ;;  %v2792_v53 = vpop.f32.mrf.mxu1  ;;  %v5226_v55 = vld [vmem:[%s10257_s3 + $0x8f0] sm:$0xff] }
 0x831   : > { %2714 = vmatpush.msrb.mxu2 %v2639_v29  ;;  %v5225_v29 = vld [vmem:[%s10257_s3 + $0x940] sm:$0xff] }
 0x832   : > { %4867 = vmatmul.msk.f32.vlgmr.msrb.gmra.mxu2 %vm2493_vm13, %v4865_v61  ;;  %2829 = vmatpush.msra.mxu3 %v5182_v30  ;;  %v5206_v61 = vld [vmem:[%s10257_s3 + $0x668] sm:$0xff] }
 0x833   : > { %2795 = vmatpush.msra.mxu2 %v5183_v32  ;;  %v5227_v30 = vld [vmem:[%s10257_s3 + $0x848] sm:$0xff]  ;;  %v5228_v32 = vld [vmem:[%s10257_s3 + $0x930] sm:$0xff] }
 0x834   : > { %2830 = vmatpush.msra.mxu3 %v5184_v34  ;;  %v5229_v34 = vld [vmem:[%s10257_s3 + $0x8e0] sm:$0xff] }
 0x835   : > { %2796 = vmatpush.msra.mxu2 %v5185_v62  ;;  %v2769_v63 = vpop.f32.mrf.mxu0  ;;  %v5231_v62 = vld [vmem:[%s10257_s3 + $0x920] sm:$0xff] }
 0x836   : > { %v2793_v12 = vadd.f32 %v2792_v53, %v2769_v63  ;;  %2831 = vmatpush.msra.mxu3 %v5186_v13  ;;  %v5230_v53 = vld [vmem:[%s10257_s3 + $0x838] sm:$0xff]  ;;  %v5232_v63 = vld [vmem:[%s10257_s3 + $0x8d0] sm:$0xff] }
 0x837   : > { %2797 = vmatpush.msra.mxu2 %v5187_v36  ;;  %v5234_v13 = vld [vmem:[%s10257_s3 + $0x910] sm:$0xff]  ;;  %v5235_v36 = vld [vmem:[%s10257_s3 + $0x8c0] sm:$0xff] }
 0x838   : > { %2832 = vmatpush.msra.mxu3 %v5188_v39  ;;  %2864 = vmatpush.msrb.mxu0 %v2793_v12  ;;  %v5233_v12 = vld [vmem:[%s10257_s3 + $0x828] sm:$0xff]  ;;  %v5236_v39 = vld [vmem:[%s10257_s3 + $0x818] sm:$0xff] }
 0x839   : > { %2798 = vmatpush.msra.mxu2 %v5189_v7  ;;  %v5238_v7 = vld [vmem:[%s10257_s3 + $0x8b0] sm:$0xff] }
 0x83a   : > { %4868 = vmatmul.msk.f32.gmra.mxu2 %vm2493_vm13, %v4866_v16  ;;  %2833 = vmatpush.msra.mxu3 %v5190_v1  ;;  %v5210_v16 = vld [vmem:[%s10257_s3 + $0x990] sm:$0xff]  ;;  %v5239_v1 = vld [vmem:[%s10257_s3 + $0x808] sm:$0xff] }
 0x83b   : > { %2799 = vmatpush.msra.mxu2 %v5191_v22  ;;  %2865 = vmatpush.msrb.mxu0 %v2790_v6  ;;  %v5237_v6 = vld [vmem:[%s10257_s3 + $0x900] sm:$0xff]  ;;  %v5240_v22 = vld [vmem:[%s10257_s3 + $0xaf0] sm:$0xff] }
 0x83c   : > { %2834 = vmatmul.f32.vlgmr.msra.gmra.mxu3 %v8049_v0  ;;  %4873 = vmatmul.msk.f32.vlgmr.msrb.gmra.mxu0 %vm2493_vm13, %v8480_v18 }
 0x83d   : > { %2923 = vmatpush.msrb.mxu3 %v5192_v46  ;;  %2946 = vmatpush.msra.mxu0 %v5193_v28  ;;  %v5241_v46 = vld [vmem:[%s10257_s3 + $0x8a0] sm:$0xff] }
 0x83e   : > { %2800 = vmatpush.msra.mxu2 %v5194_v45  ;;  %v5242_v28 = vld [vmem:[%s10257_s3 + $0xae0] sm:$0xff]  ;;  %v5243_v45 = vld [vmem:[%s10257_s3 + $0x890] sm:$0xff] }
 0x83f   : > { %2924 = vmatpush.msrb.mxu3 %v5195_v24  ;;  %2947 = vmatpush.msra.mxu0 %v5196_v26  ;;  %v5244_v24 = vld [vmem:[%s10257_s3 + $0xad0] sm:$0xff]  ;;  %v5245_v26 = vld [vmem:[%s10257_s3 + $0x880] sm:$0xff] }
 0x840   : > { %2801 = vmatpush.msra.mxu2 %v5197_v14  ;;  %v5246_v14 = vld [vmem:[%s10257_s3 + $0xac0] sm:$0xff] }
 0x841   : > { %2925 = vmatpush.msrb.mxu3 %v5198_v2  ;;  %2948 = vmatpush.msra.mxu0 %v5199_v59  ;;  %v5247_v2 = vld [vmem:[%s10257_s3 + $0x870] sm:$0xff] }
 0x842   : > { %2802 = vmatpush.msra.mxu2 %v5200_v10  ;;  %v5248_v59 = vld [vmem:[%s10257_s3 + $0xab0] sm:$0xff]  ;;  %v5249_v10 = vld [vmem:[%s10257_s3 + $0x860] sm:$0xff] }
 0x843   : > { %2926 = vmatpush.msrb.mxu3 %v5201_v48  ;;  %2949 = vmatpush.msra.mxu0 %v5202_v51  ;;  %v5250_v48 = vld [vmem:[%s10257_s3 + $0xaa0] sm:$0xff]  ;;  %v5251_v51 = vld [vmem:[%s10257_s3 + $0x850] sm:$0xff] }
 0x844   : > { %2803 = vmatpush.msra.mxu2 %v5203_v52  ;;  %2837 = vmatmul.f32.gmra.mxu3 %v8057_v47  ;;  %v5252_v52 = vld [vmem:[%s10257_s3 + $0xa90] sm:$0xff] }
 0x845   : > { %4874 = vmatmul.msk.f32.gmra.mxu0 %vm2493_vm13, %v8522_v11  ;;  %2927 = vmatpush.msrb.mxu3 %v5204_v33  ;;  %v5253_v33 = vld [vmem:[%s10257_s3 + $0x840] sm:$0xff] }
 0x846   : > { %2950 = vmatpush.msra.mxu0 %v5205_v58  ;;  %2804 = vmatpush.msra.mxu2 %v5206_v61  ;;  %v5254_v58 = vld [vmem:[%s10257_s3 + $0xa80] sm:$0xff]  ;;  %v5255_v61 = vld [vmem:[%s10257_s3 + $0x830] sm:$0xff] }
 0x847   : > { %2928 = vmatpush.msrb.mxu3 %v5207_v41  ;;  %v5256_v41 = vld [vmem:[%s10257_s3 + $0xa70] sm:$0xff] }
 0x848   : > { %2951 = vmatpush.msra.mxu0 %v5208_v4  ;;  %2805 = vmatpush.msra.mxu2 %v5209_v50  ;;  %v5257_v4 = vld [vmem:[%s10257_s3 + $0x820] sm:$0xff] }
 0x849   : > { %2929 = vmatpush.msrb.mxu3 %v5210_v16  ;;  %v5258_v50 = vld [vmem:[%s10257_s3 + $0xa60] sm:$0xff]  ;;  %v5259_v16 = vld [vmem:[%s10257_s3 + $0x810] sm:$0xff] }
 0x84a   : > { %2952 = vmatpush.msra.mxu0 %v5211_v49  ;;  %2806 = vmatpush.msra.mxu2 %v5212_v57  ;;  %v5260_v49 = vld [vmem:[%s10257_s3 + $0xa50] sm:$0xff]  ;;  %v5261_v57 = vld [vmem:[%s10257_s3 + $0x800] sm:$0xff] }
 0x84b   : > { %2930 = vmatpush.msrb.mxu3 %v5213_v60  ;;  %v5262_v60 = vld [vmem:[%s10257_s3 + $0xa40] sm:$0xff] }
 0x84c   : > { %2953 = vmatpush.msra.mxu0 %v5214_v42  ;;  %2807 = vmatpush.msra.mxu2 %v5215_v19  ;;  %v5263_v42 = vld [vmem:[%s10257_s3 + $0xa30] sm:$0xff]  ;;  %v5264_v19 = vld [vmem:[%s10257_s3 + $0xa20] sm:$0xff] }
 0x84d   : > { %2931 = vmatpush.msrb.mxu3 %v5216_v20  ;;  %v5265_v20 = vld [vmem:[%s10257_s3 + $0xa10] sm:$0xff] }
 0x84e   : > { %2954 = vmatpush.msra.mxu0 %v5217_v8  ;;  %2808 = vmatpush.msra.mxu2 %v5218_v9  ;;  %v5266_v8 = vld [vmem:[%s10257_s3 + $0xa00] sm:$0xff]  ;;  %v2570_v9 = vadd.f32 %v8397_v54, %v8405_v40 }
 0x84f   : > { %2932 = vmatpush.msrb.mxu3 %v5219_v17 }
 0x850   : > { %2955 = vmatpush.msra.mxu0 %v5220_v21  ;;  %2809 = vmatpush.msra.mxu2 %v5221_v3 }
 0x851   : > { %2933 = vmatpush.msrb.mxu3 %v5222_v25 }
 0x852   : > { %2956 = vmatpush.msra.mxu0 %v5223_v23  ;;  %2810 = vmatpush.msra.mxu2 %v5224_v27  ;;  %v2573_v23 = vadd.f32 %v8401_v56, %v8412_v15  ;;  %v5267_v56 = vld [vmem:[%s10257_s3 + $0x9f8] sm:$0xff]  ;;  %v5268_v15 = vld [vmem:[%s10257_s3 + $0x9e8] sm:$0xff] }
 0x853   : > { %2811 = vmatmul.f32.vlgmr.msra.gmra.mxu2 %v8047_v44  ;;  %2934 = vmatpush.msrb.mxu3 %v5225_v29 }
 0x854   : > { %2900 = vmatpush.msrb.mxu2 %v5226_v55  ;;  %2957 = vmatpush.msra.mxu0 %v5227_v30 }
 0x855   : > { %2935 = vmatpush.msrb.mxu3 %v5228_v32 }
 0x856   : > { %2901 = vmatpush.msrb.mxu2 %v5229_v34  ;;  %2958 = vmatpush.msra.mxu0 %v5230_v53 }
 0x857   : > { %2936 = vmatpush.msrb.mxu3 %v5231_v62 }
 0x858   : > { %2902 = vmatpush.msrb.mxu2 %v5232_v63  ;;  %2959 = vmatpush.msra.mxu0 %v5233_v12 }
 0x859   : > { %2937 = vmatpush.msrb.mxu3 %v5234_v13  ;;  %v5269_v13 = vld [vmem:[%s10257_s3 + $0x9d8] sm:$0xff] }
 0x85a   : > { %2903 = vmatpush.msrb.mxu2 %v5235_v36  ;;  %2960 = vmatpush.msra.mxu0 %v5236_v39  ;;  %v5270_v36 = vld [vmem:[%s10257_s3 + $0x9c8] sm:$0xff] }
 0x85b   : > { %2814 = vmatmul.f32.gmra.mxu2 %v8055_v31  ;;  %2938 = vmatpush.msrb.mxu3 %v5237_v6  ;;  %v5272_v39 = vld [vmem:[%s10257_s3 + $0x9a8] sm:$0xff]  ;;  %v5273_v6 = vld [vmem:[%s10257_s3 + $0x998] sm:$0xff] }
 0x85c   : > { %2904 = vmatpush.msrb.mxu2 %v5238_v7  ;;  %2961 = vmatpush.msra.mxu0 %v5239_v1  ;;  %v5274_v7 = vld [vmem:[%s10257_s3 + $0x988] sm:$0xff]  ;;  %v5275_v1 = vld [vmem:[%s10257_s3 + $0x978] sm:$0xff] }
 0x85d   : > { %2939 = vmatmul.f32.vlgmr.msrb.gmra.mxu3 %v8049_v0  ;;  %2962 = vmatmul.f32.vlgmr.msra.gmra.mxu0 %v8047_v44 }
 0x85e   : > { %3051 = vmatpush.msrb.mxu0 %v5240_v22  ;;  %2905 = vmatpush.msrb.mxu2 %v5241_v46  ;;  %v5276_v46 = vld [vmem:[%s10257_s3 + $0x968] sm:$0xff] }
 0x860   : > { %3052 = vmatpush.msrb.mxu0 %v5242_v28  ;;  %2906 = vmatpush.msrb.mxu2 %v5243_v45  ;;  %v5277_v28 = vld [vmem:[%s10257_s3 + $0x958] sm:$0xff]  ;;  %v5278_v45 = vld [vmem:[%s10257_s3 + $0x948] sm:$0xff] }
 0x862   : > { %3053 = vmatpush.msrb.mxu0 %v5244_v24  ;;  %2907 = vmatpush.msrb.mxu2 %v5245_v26  ;;  %v5279_v24 = vld [vmem:[%s10257_s3 + $0x938] sm:$0xff] }
 0x864   : > { %3054 = vmatpush.msrb.mxu0 %v5246_v14  ;;  %2908 = vmatpush.msrb.mxu2 %v5247_v2 }
 0x865   : > { %2942 = vmatmul.f32.gmra.mxu3 %v8057_v47  ;;  %2965 = vmatmul.f32.gmra.mxu0 %v8055_v31 }
 0x866   : > { %3055 = vmatpush.msrb.mxu0 %v5248_v59  ;;  %2909 = vmatpush.msrb.mxu2 %v5249_v10  ;;  %v5280_v59 = vld [vmem:[%s10257_s3 + $0x928] sm:$0xff] }
 0x868   : > { %3056 = vmatpush.msrb.mxu0 %v5250_v48  ;;  %2910 = vmatpush.msrb.mxu2 %v5251_v51  ;;  %v5281_v48 = vld [vmem:[%s10257_s3 + $0x918] sm:$0xff]  ;;  %v8799_v51 = vld [vmem:[%s10256_s2 + $0x40] sm:$0xff] }
 0x86a   : > { %3057 = vmatpush.msrb.mxu0 %v5252_v52  ;;  %2911 = vmatpush.msrb.mxu2 %v5253_v33  ;;  %v5282_v52 = vld [vmem:[%s10257_s3 + $0x908] sm:$0xff]  ;;  %v5283_v33 = vld [vmem:[%s10257_s3 + $0xbf0] sm:$0xff] }
 0x86c   : > { %3058 = vmatpush.msrb.mxu0 %v5254_v58  ;;  %2912 = vmatpush.msrb.mxu2 %v5255_v61  ;;  %v5284_v58 = vld [vmem:[%s10257_s3 + $0xaf8] sm:$0xff]  ;;  %v5285_v61 = vld [vmem:[%s10257_s3 + $0xbe0] sm:$0xff] }
 0x86e   : > { %3059 = vmatpush.msrb.mxu0 %v5256_v41  ;;  %2913 = vmatpush.msrb.mxu2 %v5257_v4  ;;  %v5286_v41 = vld [vmem:[%s10257_s3 + $0xae8] sm:$0xff]  ;;  %v5287_v4 = vld [vmem:[%s10257_s3 + $0xbd0] sm:$0xff] }
 0x870   : > { %3060 = vmatpush.msrb.mxu0 %v5258_v50  ;;  %2914 = vmatpush.msrb.mxu2 %v5259_v16  ;;  %v5288_v50 = vld [vmem:[%s10257_s3 + $0xad8] sm:$0xff]  ;;  %v8828_v16 = vld [vmem:[%s10256_s2 + $0x48] sm:$0xff] }
 0x872   : > { %3061 = vmatpush.msrb.mxu0 %v5260_v49  ;;  %2915 = vmatpush.msrb.mxu2 %v5261_v57  ;;  %v5289_v49 = vld [vmem:[%s10257_s3 + $0xbc0] sm:$0xff]  ;;  %v5290_v57 = vld [vmem:[%s10257_s3 + $0xac8] sm:$0xff] }
 0x873   : > { %2916 = vmatmul.f32.vlgmr.msrb.gmra.mxu2 %v8047_v44 }
 0x874   : > { %3062 = vmatpush.msrb.mxu0 %v5262_v60  ;;  %v5291_v60 = vld [vmem:[%s10257_s3 + $0xbb0] sm:$0xff] }
 0x876   : > { %3063 = vmatpush.msrb.mxu0 %v5263_v42  ;;  %v5292_v42 = vld [vmem:[%s10257_s3 + $0xab8] sm:$0xff] }
 0x878   : > { %3064 = vmatpush.msrb.mxu0 %v5264_v19  ;;  %v5293_v19 = vld [vmem:[%s10257_s3 + $0xba0] sm:$0xff] }
 0x87a   : > { %3065 = vmatpush.msrb.mxu0 %v5265_v20  ;;  %v5294_v20 = vld [vmem:[%s10257_s3 + $0xaa8] sm:$0xff] }
 0x87b   : > { %2919 = vmatmul.f32.gmra.mxu2 %v8055_v31 }
 0x87c   : > { %3066 = vmatpush.msrb.mxu0 %v5266_v8  ;;  %v5295_v8 = vld [vmem:[%s10257_s3 + $0xb90] sm:$0xff] }
 0x87d   : > { %3067 = vmatmul.f32.vlgmr.msrb.gmra.mxu0 %v8047_v44 }
 0x885   : > { %3070 = vmatmul.f32.gmra.mxu0 %v8055_v31 }
 0x89e   : > { %v8741_v55 = vpop.f32.mrf.mxu3 }
 0x8a6   : > { %v8745_v34 = vpop.f32.mrf.mxu3 }
 0x8b5   : > { %v2716_v17 = vpop.f32.mrf.mxu2 }
 0x8b6   : > { %v2745_v21 = vadd.f32 %v2716_v17, %v2570_v9  ;;  %v5296_v9 = vld [vmem:[%s10257_s3 + $0xa98] sm:$0xff]  ;;  %v5297_v17 = vld [vmem:[%s10257_s3 + $0xb80] sm:$0xff] }
 0x8b9   : > { %v2867_v3 = vpop.f32.mrf.mxu0 }
 0x8ba   : > { %v8737_v25 = vadd.f32 %v2867_v3, %v2745_v21  ;;  %v5298_v21 = vld [vmem:[%s10257_s3 + $0xa88] sm:$0xff]  ;;  %v5299_v3 = vld [vmem:[%s10257_s3 + $0xb70] sm:$0xff] }
 0x8bd   : > { %v2719_v27 = vpop.f32.mrf.mxu2 }
 0x8be   : > { %v2747_v29 = vadd.f32 %v2719_v27, %v2573_v23  ;;  %v5300_v23 = vld [vmem:[%s10257_s3 + $0xa78] sm:$0xff]  ;;  %v5301_v27 = vld [vmem:[%s10257_s3 + $0xb60] sm:$0xff] }
 0x8bf   : > { %v2835_v53 = vpop.f32.mrf.mxu3 }
 0x8c2   : > { %v2870_v30 = vpop.f32.mrf.mxu0 }
 0x8c3   : > { %v8743_v32 = vadd.f32 %v2870_v30, %v2747_v29  ;;  %v5302_v29 = vld [vmem:[%s10257_s3 + $0xa68] sm:$0xff]  ;;  %v5303_v30 = vld [vmem:[%s10257_s3 + $0xb50] sm:$0xff] }
 0x8c7   : > { %v2838_v54 = vpop.f32.mrf.mxu3 }
 0x8d6   : > { %v2812_v62 = vpop.f32.mrf.mxu2 }
 0x8d7   : > { %v2836_v12 = vadd.f32 %v2835_v53, %v2812_v62  ;;  %v5304_v53 = vld [vmem:[%s10257_s3 + $0xa58] sm:$0xff]  ;;  %v5305_v62 = vld [vmem:[%s10257_s3 + $0xb40] sm:$0xff] }
 0x8de   : > { %v2815_v40 = vpop.f32.mrf.mxu2 }
 0x8df   : > { %v2839_v63 = vadd.f32 %v2838_v54, %v2815_v40  ;;  %v5306_v54 = vld [vmem:[%s10257_s3 + $0xa48] sm:$0xff]  ;;  %v5307_v40 = vld [vmem:[%s10257_s3 + $0xb30] sm:$0xff] }
 0x8e1   : > { %2887 = vmatpush.msrb.mxu1 %v2839_v63  ;;  %v5308_v63 = vld [vmem:[%s10257_s3 + $0xa38] sm:$0xff] }
 0x8e3   : > { %2888 = vmatpush.msrb.mxu1 %v2836_v12  ;;  %v5309_v12 = vld [vmem:[%s10257_s3 + $0xb20] sm:$0xff] }
 0x8e4   : > { %4875 = vmatmul.msk.f32.vlgmr.msrb.gmra.mxu1 %vm2493_vm13, %v8480_v18  ;;  %v5271_v18 = vld [vmem:[%s10257_s3 + $0x9b8] sm:$0xff] }
 0x8e5   : > { %2969 = vmatpush.msra.mxu1 %v5267_v56  ;;  %v5310_v56 = vld [vmem:[%s10257_s3 + $0xa28] sm:$0xff] }
 0x8e7   : > { %2970 = vmatpush.msra.mxu1 %v5268_v15  ;;  %v5311_v15 = vld [vmem:[%s10257_s3 + $0xb10] sm:$0xff] }
 0x8e9   : > { %2971 = vmatpush.msra.mxu1 %v5269_v13  ;;  %v5312_v13 = vld [vmem:[%s10257_s3 + $0xa18] sm:$0xff] }
 0x8eb   : > { %2972 = vmatpush.msra.mxu1 %v5270_v36  ;;  %v5313_v36 = vld [vmem:[%s10257_s3 + $0xb00] sm:$0xff] }
 0x8ec   : > { %4876 = vmatmul.msk.f32.gmra.mxu1 %vm2493_vm13, %v8522_v11  ;;  %v2940_v11 = vpop.f32.mrf.mxu3 }
 0x8ed   : > { %2973 = vmatpush.msra.mxu1 %v5271_v18  ;;  %v5314_v18 = vld [vmem:[%s10257_s3 + $0xa08] sm:$0xff] }
 0x8ef   : > { %2974 = vmatpush.msra.mxu1 %v5272_v39  ;;  %v5315_v39 = vld [vmem:[%s10257_s3 + $0xcf0] sm:$0xff] }
 0x8f1   : > { %2975 = vmatpush.msra.mxu1 %v5273_v6  ;;  %v5316_v6 = vld [vmem:[%s10257_s3 + $0xce0] sm:$0xff] }
 0x8f3   : > { %2976 = vmatpush.msra.mxu1 %v5274_v7  ;;  %v5317_v7 = vld [vmem:[%s10257_s3 + $0xcd0] sm:$0xff] }
 0x8f4   : > { %v2943_v26 = vpop.f32.mrf.mxu3 }
 0x8f5   : > { %2977 = vmatpush.msra.mxu1 %v5275_v1  ;;  %v5319_v1 = vld [vmem:[%s10257_s3 + $0xcb0] sm:$0xff] }
 0x8f6   : > { %v2917_v22 = vpop.f32.mrf.mxu2 }
 0x8f7   : > { %2978 = vmatpush.msra.mxu1 %v5276_v46  ;;  %v2941_v10 = vadd.f32 %v2940_v11, %v2917_v22  ;;  %v5318_v11 = vld [vmem:[%s10257_s3 + $0xcc0] sm:$0xff]  ;;  %v5321_v46 = vld [vmem:[%s10257_s3 + $0xc90] sm:$0xff] }
 0x8f8   : > { %v5320_v22 = vld [vmem:[%s10257_s3 + $0xca0] sm:$0xff] }
 0x8f9   : > { %2979 = vmatpush.msra.mxu1 %v5277_v28  ;;  %v5322_v28 = vld [vmem:[%s10257_s3 + $0xc80] sm:$0xff] }
 0x8fb   : > { %2980 = vmatpush.msra.mxu1 %v5278_v45  ;;  %v5323_v45 = vld [vmem:[%s10257_s3 + $0xc70] sm:$0xff] }
 0x8fd   : > { %2981 = vmatpush.msra.mxu1 %v5279_v24  ;;  %v5324_v24 = vld [vmem:[%s10257_s3 + $0xc60] sm:$0xff] }
 0x8fe   : > { %v2920_v14 = vpop.f32.mrf.mxu2 }
 0x8ff   : > { %v2944_v2 = vadd.f32 %v2943_v26, %v2920_v14  ;;  %2982 = vmatpush.msra.mxu1 %v5280_v59  ;;  %v5325_v26 = vld [vmem:[%s10257_s3 + $0xc50] sm:$0xff]  ;;  %v5326_v14 = vld [vmem:[%s10257_s3 + $0xc40] sm:$0xff] }
 0x900   : > { %v5328_v59 = vld [vmem:[%s10257_s3 + $0xc20] sm:$0xff] }
 0x901   : > { %2983 = vmatpush.msra.mxu1 %v5281_v48  ;;  %3015 = vmatpush.msra.mxu2 %v2944_v2  ;;  %v5327_v2 = vld [vmem:[%s10257_s3 + $0xc30] sm:$0xff]  ;;  %v5330_v48 = vld [vmem:[%s10257_s3 + $0xc00] sm:$0xff] }
 0x903   : > { %2984 = vmatpush.msra.mxu1 %v5282_v52  ;;  %3016 = vmatpush.msra.mxu2 %v2941_v10  ;;  %v5329_v10 = vld [vmem:[%s10257_s3 + $0xc10] sm:$0xff]  ;;  %v2593_v52 = vadd.f32 %v8395_v38, %v8403_v37 }
 0x904   : > { %2985 = vmatmul.f32.vlgmr.msra.gmra.mxu1 %v8049_v0  ;;  %4879 = vmatmul.msk.f32.vlgmr.msra.gmra.mxu2 %vm2493_vm13, %v8799_v51 }
 0x905   : > { %3074 = vmatpush.msrb.mxu1 %v5283_v33  ;;  %3097 = vmatpush.msrb.mxu2 %v5284_v58  ;;  %v2746_v33 = vadd.f32 %v8741_v55, %v2593_v52  ;;  %v5364_v52 = vld [vmem:[%s10257_s3 + $0xc78] sm:$0xff] }
 0x907   : > { %3075 = vmatpush.msrb.mxu1 %v5285_v61  ;;  %3098 = vmatpush.msrb.mxu2 %v5286_v41  ;;  %v2596_v41 = vadd.f32 %v8399_v43, %v8407_v5  ;;  %v5331_v5 = vld [vmem:[%s10257_s3 + $0xbf8] sm:$0xff] }
 0x909   : > { %3076 = vmatpush.msrb.mxu1 %v5287_v4  ;;  %3099 = vmatpush.msrb.mxu2 %v5288_v50  ;;  %v2748_v4 = vadd.f32 %v8745_v34, %v2596_v41  ;;  %v5333_v34 = vld [vmem:[%s10257_s3 + $0xbd8] sm:$0xff]  ;;  %v5367_v41 = vld [vmem:[%s10257_s3 + $0xd50] sm:$0xff] }
 0x90b   : > { %3077 = vmatpush.msrb.mxu1 %v5289_v49  ;;  %3100 = vmatpush.msrb.mxu2 %v5290_v57  ;;  %v2963_v57 = vpop.f32.mrf.mxu0 }
 0x90c   : > { %2988 = vmatmul.f32.gmra.mxu1 %v8057_v47  ;;  %4880 = vmatmul.msk.f32.gmra.mxu2 %vm2493_vm13, %v8828_v16 }
 0x90d   : > { %3078 = vmatpush.msrb.mxu1 %v5291_v60  ;;  %3101 = vmatpush.msrb.mxu2 %v5292_v42 }
 0x90f   : > { %3079 = vmatpush.msrb.mxu1 %v5293_v19  ;;  %3102 = vmatpush.msrb.mxu2 %v5294_v20 }
 0x911   : > { %3080 = vmatpush.msrb.mxu1 %v5295_v8  ;;  %3103 = vmatpush.msrb.mxu2 %v5296_v9  ;;  %v5336_v9 = vld [vmem:[%s10257_s3 + $0xba8] sm:$0xff] }
 0x913   : > { %3081 = vmatpush.msrb.mxu1 %v5297_v17  ;;  %3104 = vmatpush.msrb.mxu2 %v5298_v21  ;;  %v2966_v38 = vpop.f32.mrf.mxu0  ;;  %v5337_v17 = vld [vmem:[%s10257_s3 + $0xb98] sm:$0xff]  ;;  %v5338_v21 = vld [vmem:[%s10257_s3 + $0xb88] sm:$0xff] }
 0x915   : > { %3082 = vmatpush.msrb.mxu1 %v5299_v3  ;;  %3105 = vmatpush.msrb.mxu2 %v5300_v23  ;;  %v5339_v3 = vld [vmem:[%s10257_s3 + $0xb78] sm:$0xff] }
 0x917   : > { %3083 = vmatpush.msrb.mxu1 %v5301_v27  ;;  %3106 = vmatpush.msrb.mxu2 %v5302_v29  ;;  %v5340_v27 = vld [vmem:[%s10257_s3 + $0xb68] sm:$0xff]  ;;  %v5341_v29 = vld [vmem:[%s10257_s3 + $0xb58] sm:$0xff] }
 0x919   : > { %3084 = vmatpush.msrb.mxu1 %v5303_v30  ;;  %3107 = vmatpush.msrb.mxu2 %v5304_v53  ;;  %v5342_v30 = vld [vmem:[%s10257_s3 + $0xb48] sm:$0xff]  ;;  %v5343_v53 = vld [vmem:[%s10257_s3 + $0xb38] sm:$0xff] }
 0x91b   : > { %3085 = vmatpush.msrb.mxu1 %v5305_v62  ;;  %3108 = vmatpush.msrb.mxu2 %v5306_v54 }
 0x91d   : > { %3086 = vmatpush.msrb.mxu1 %v5307_v40  ;;  %3109 = vmatpush.msrb.mxu2 %v5308_v63  ;;  %v5344_v63 = vld [vmem:[%s10257_s3 + $0xb28] sm:$0xff] }
 0x91f   : > { %3087 = vmatpush.msrb.mxu1 %v5309_v12  ;;  %3110 = vmatpush.msrb.mxu2 %v5310_v56  ;;  %v5345_v56 = vld [vmem:[%s10257_s3 + $0xb18] sm:$0xff] }
 0x921   : > { %3088 = vmatpush.msrb.mxu1 %v5311_v15  ;;  %3111 = vmatpush.msrb.mxu2 %v5312_v13  ;;  %v9033_v15 = vld [vmem:[%s10256_s2 + $0x50] sm:$0xff]  ;;  %v5346_v13 = vld [vmem:[%s10257_s3 + $0xb08] sm:$0xff] }
 0x923   : > { %3089 = vmatpush.msrb.mxu1 %v5313_v36  ;;  %3112 = vmatpush.msrb.mxu2 %v5314_v18  ;;  %v5347_v36 = vld [vmem:[%s10257_s3 + $0xdf0] sm:$0xff]  ;;  %v5348_v18 = vld [vmem:[%s10257_s3 + $0xcf8] sm:$0xff] }
 0x924   : > { %3090 = vmatmul.f32.vlgmr.msrb.gmra.mxu1 %v8049_v0  ;;  %3113 = vmatmul.f32.vlgmr.msrb.gmra.mxu2 %v8047_v44 }
 0x925   : > { %3202 = vmatpush.msra.mxu2 %v5315_v39  ;;  %v5349_v39 = vld [vmem:[%s10257_s3 + $0xde0] sm:$0xff] }
 0x927   : > { %3203 = vmatpush.msra.mxu2 %v5316_v6  ;;  %v5350_v6 = vld [vmem:[%s10257_s3 + $0xce8] sm:$0xff] }
 0x929   : > { %3204 = vmatpush.msra.mxu2 %v5317_v7  ;;  %v5351_v7 = vld [vmem:[%s10257_s3 + $0xdd0] sm:$0xff] }
 0x92b   : > { %3205 = vmatpush.msra.mxu2 %v5318_v11  ;;  %v5352_v11 = vld [vmem:[%s10257_s3 + $0xcd8] sm:$0xff] }
 0x92c   : > { %3093 = vmatmul.f32.gmra.mxu1 %v8057_v47  ;;  %3116 = vmatmul.f32.gmra.mxu2 %v8055_v31 }
 0x92d   : > { %3206 = vmatpush.msra.mxu2 %v5319_v1  ;;  %v9062_v1 = vld [vmem:[%s10256_s2 + $0x58] sm:$0xff] }
 0x92f   : > { %3207 = vmatpush.msra.mxu2 %v5320_v22  ;;  %v5353_v22 = vld [vmem:[%s10257_s3 + $0xdc0] sm:$0xff] }
 0x931   : > { %3208 = vmatpush.msra.mxu2 %v5321_v46  ;;  %v5354_v46 = vld [vmem:[%s10257_s3 + $0xcc8] sm:$0xff] }
 0x933   : > { %3209 = vmatpush.msra.mxu2 %v5322_v28  ;;  %v5355_v28 = vld [vmem:[%s10257_s3 + $0xdb0] sm:$0xff] }
 0x935   : > { %3210 = vmatpush.msra.mxu2 %v5323_v45  ;;  %v5356_v45 = vld [vmem:[%s10257_s3 + $0xcb8] sm:$0xff] }
 0x937   : > { %3211 = vmatpush.msra.mxu2 %v5324_v24  ;;  %v5357_v24 = vld [vmem:[%s10257_s3 + $0xda0] sm:$0xff] }
 0x939   : > { %3212 = vmatpush.msra.mxu2 %v5325_v26  ;;  %v5358_v26 = vld [vmem:[%s10257_s3 + $0xca8] sm:$0xff] }
 0x93b   : > { %3213 = vmatpush.msra.mxu2 %v5326_v14  ;;  %v5359_v14 = vld [vmem:[%s10257_s3 + $0xd90] sm:$0xff] }
 0x93d   : > { %3214 = vmatpush.msra.mxu2 %v5327_v2  ;;  %v5360_v2 = vld [vmem:[%s10257_s3 + $0xc98] sm:$0xff] }
 0x93f   : > { %3215 = vmatpush.msra.mxu2 %v5328_v59  ;;  %v5361_v59 = vld [vmem:[%s10257_s3 + $0xd80] sm:$0xff] }
 0x941   : > { %3216 = vmatpush.msra.mxu2 %v5329_v10  ;;  %v5362_v10 = vld [vmem:[%s10257_s3 + $0xc88] sm:$0xff] }
 0x943   : > { %3217 = vmatpush.msra.mxu2 %v5330_v48  ;;  %v5363_v48 = vld [vmem:[%s10257_s3 + $0xd70] sm:$0xff] }
 0x944   : > { %3218 = vmatmul.f32.vlgmr.msra.gmra.mxu2 %v8047_v44 }
 0x94c   : > { %3221 = vmatmul.f32.gmra.mxu2 %v8055_v31 }
 0x961   : > { %v2890_v58 = vpop.f32.mrf.mxu1 }
 0x962   : > { %v8968_v61 = vadd.f32 %v2890_v58, %v2746_v33  ;;  %v5365_v33 = vld [vmem:[%s10257_s3 + $0xd60] sm:$0xff]  ;;  %v5366_v58 = vld [vmem:[%s10257_s3 + $0xc68] sm:$0xff] }
 0x969   : > { %v2893_v50 = vpop.f32.mrf.mxu1 }
 0x96a   : > { %v8973_v49 = vadd.f32 %v2893_v50, %v2748_v4  ;;  %v5368_v4 = vld [vmem:[%s10257_s3 + $0xc58] sm:$0xff]  ;;  %v5369_v50 = vld [vmem:[%s10257_s3 + $0xd40] sm:$0xff] }
 0x981   : > { %v2986_v60 = vpop.f32.mrf.mxu1 }
 0x982   : > { %v2987_v20 = vadd.f32 %v2986_v60, %v2963_v57  ;;  %v5370_v57 = vld [vmem:[%s10257_s3 + $0xc48] sm:$0xff]  ;;  %v5371_v60 = vld [vmem:[%s10257_s3 + $0xd30] sm:$0xff] }
 0x987   : > { %v3018_v42 = vpop.f32.mrf.mxu2 }
 0x988   : > { %v8976_v19 = vadd.f32 %v3018_v42, %v8737_v25  ;;  %v5332_v25 = vld [vmem:[%s10257_s3 + $0xbe8] sm:$0xff]  ;;  %v5372_v42 = vld [vmem:[%s10257_s3 + $0xc38] sm:$0xff] }
 0x989   : > { %v2989_v37 = vpop.f32.mrf.mxu1 }
 0x98a   : > { %v2990_v55 = vadd.f32 %v2989_v37, %v2966_v38  ;;  %v5373_v38 = vld [vmem:[%s10257_s3 + $0xd20] sm:$0xff]  ;;  %v5374_v37 = vld [vmem:[%s10257_s3 + $0xc28] sm:$0xff] }
 0x98c   : > { %3038 = vmatpush.msra.mxu3 %v2990_v55  ;;  %v5375_v55 = vld [vmem:[%s10257_s3 + $0xd10] sm:$0xff] }
 0x98e   : > { %3039 = vmatpush.msra.mxu3 %v2987_v20  ;;  %v5376_v20 = vld [vmem:[%s10257_s3 + $0xc18] sm:$0xff] }
 0x98f   : > { %v3021_v8 = vpop.f32.mrf.mxu2  ;;  %4881 = vmatmul.msk.f32.vlgmr.msra.gmra.mxu3 %vm2493_vm13, %v8799_v51  ;;  %v5335_v51 = vld [vmem:[%s10257_s3 + $0xbb8] sm:$0xff] }
 0x990   : > { %v8981_v43 = vadd.f32 %v3021_v8, %v8743_v32  ;;  %3120 = vmatpush.msrb.mxu3 %v5331_v5  ;;  %v5334_v32 = vld [vmem:[%s10257_s3 + $0xbc8] sm:$0xff]  ;;  %v5377_v8 = vld [vmem:[%s10257_s3 + $0xd00] sm:$0xff] }
 0x991   : > { %v5378_v5 = vld [vmem:[%s10257_s3 + $0xc08] sm:$0xff] }
 0x992   : > { %3121 = vmatpush.msrb.mxu3 %v5332_v25  ;;  %v5379_v25 = vld [vmem:[%s10257_s3 + $0xef0] sm:$0xff] }
 0x994   : > { %3122 = vmatpush.msrb.mxu3 %v5333_v34  ;;  %v5380_v34 = vld [vmem:[%s10257_s3 + $0xee0] sm:$0xff] }
 0x996   : > { %3123 = vmatpush.msrb.mxu3 %v5334_v32  ;;  %v5381_v32 = vld [vmem:[%s10257_s3 + $0xed0] sm:$0xff] }
 0x997   : > { %4882 = vmatmul.msk.f32.gmra.mxu3 %vm2493_vm13, %v8828_v16  ;;  %v3068_v16 = vpop.f32.mrf.mxu0 }
 0x998   : > { %3124 = vmatpush.msrb.mxu3 %v5335_v51  ;;  %v5382_v51 = vld [vmem:[%s10257_s3 + $0xec0] sm:$0xff] }
 0x99a   : > { %3125 = vmatpush.msrb.mxu3 %v5336_v9  ;;  %v5383_v9 = vld [vmem:[%s10257_s3 + $0xeb0] sm:$0xff] }
 0x99c   : > { %3126 = vmatpush.msrb.mxu3 %v5337_v17  ;;  %v5384_v17 = vld [vmem:[%s10257_s3 + $0xea0] sm:$0xff] }
 0x99e   : > { %3127 = vmatpush.msrb.mxu3 %v5338_v21  ;;  %v5385_v21 = vld [vmem:[%s10257_s3 + $0xe90] sm:$0xff] }
 0x99f   : > { %v3071_v62 = vpop.f32.mrf.mxu0 }
 0x9a0   : > { %3128 = vmatpush.msrb.mxu3 %v5339_v3  ;;  %v5387_v3 = vld [vmem:[%s10257_s3 + $0xe70] sm:$0xff] }
 0x9a1   : > { %v3091_v23 = vpop.f32.mrf.mxu1 }
 0x9a2   : > { %3129 = vmatpush.msrb.mxu3 %v5340_v27  ;;  %v3092_v12 = vadd.f32 %v3091_v23, %v3068_v16  ;;  %v5386_v16 = vld [vmem:[%s10257_s3 + $0xe80] sm:$0xff]  ;;  %v5389_v27 = vld [vmem:[%s10257_s3 + $0xe50] sm:$0xff] }
 0x9a3   : > { %v5388_v23 = vld [vmem:[%s10257_s3 + $0xe60] sm:$0xff] }
 0x9a4   : > { %3130 = vmatpush.msrb.mxu3 %v5341_v29  ;;  %v5390_v29 = vld [vmem:[%s10257_s3 + $0xe40] sm:$0xff] }
 0x9a6   : > { %3131 = vmatpush.msrb.mxu3 %v5342_v30  ;;  %v5391_v30 = vld [vmem:[%s10257_s3 + $0xe30] sm:$0xff] }
 0x9a8   : > { %3132 = vmatpush.msrb.mxu3 %v5343_v53  ;;  %v5392_v53 = vld [vmem:[%s10257_s3 + $0xe20] sm:$0xff] }
 0x9a9   : > { %v3094_v54 = vpop.f32.mrf.mxu1 }
 0x9aa   : > { %v3095_v40 = vadd.f32 %v3094_v54, %v3071_v62  ;;  %3133 = vmatpush.msrb.mxu3 %v5344_v63  ;;  %v5393_v62 = vld [vmem:[%s10257_s3 + $0xe10] sm:$0xff]  ;;  %v5394_v54 = vld [vmem:[%s10257_s3 + $0xe00] sm:$0xff] }
 0x9ac   : > { %3134 = vmatpush.msrb.mxu3 %v5345_v56  ;;  %3166 = vmatpush.msra.mxu0 %v3095_v40 }
 0x9ae   : > { %3135 = vmatpush.msrb.mxu3 %v5346_v13  ;;  %3167 = vmatpush.msra.mxu0 %v3092_v12 }
 0x9af   : > { %3136 = vmatmul.f32.vlgmr.msrb.gmra.mxu3 %v8049_v0  ;;  %4885 = vmatmul.msk.f32.vlgmr.msra.gmra.mxu0 %vm2493_vm13, %v9033_v15 }
 0x9b0   : > { %3225 = vmatpush.msra.mxu3 %v5347_v36  ;;  %3248 = vmatpush.msrb.mxu0 %v5348_v18  ;;  %v3114_v18 = vpop.f32.mrf.mxu2 }
 0x9b2   : > { %3226 = vmatpush.msra.mxu3 %v5349_v39  ;;  %3249 = vmatpush.msrb.mxu0 %v5350_v6 }
 0x9b4   : > { %3227 = vmatpush.msra.mxu3 %v5351_v7  ;;  %3250 = vmatpush.msrb.mxu0 %v5352_v11 }
 0x9b6   : > { %3228 = vmatpush.msra.mxu3 %v5353_v22  ;;  %3251 = vmatpush.msrb.mxu0 %v5354_v46 }
 0x9b7   : > { %3139 = vmatmul.f32.gmra.mxu3 %v8057_v47  ;;  %4886 = vmatmul.msk.f32.gmra.mxu0 %vm2493_vm13, %v9062_v1 }
 0x9b8   : > { %3229 = vmatpush.msra.mxu3 %v5355_v28  ;;  %3252 = vmatpush.msrb.mxu0 %v5356_v45  ;;  %v3117_v11 = vpop.f32.mrf.mxu2  ;;  %v5400_v45 = vld [vmem:[%s10257_s3 + $0xda8] sm:$0xff] }
 0x9ba   : > { %3230 = vmatpush.msra.mxu3 %v5357_v24  ;;  %3253 = vmatpush.msrb.mxu0 %v5358_v26  ;;  %v5401_v24 = vld [vmem:[%s10257_s3 + $0xd98] sm:$0xff]  ;;  %v5402_v26 = vld [vmem:[%s10257_s3 + $0xd88] sm:$0xff] }
 0x9bc   : > { %3231 = vmatpush.msra.mxu3 %v5359_v14  ;;  %3254 = vmatpush.msrb.mxu0 %v5360_v2  ;;  %v5403_v14 = vld [vmem:[%s10257_s3 + $0xd78] sm:$0xff] }
 0x9be   : > { %3232 = vmatpush.msra.mxu3 %v5361_v59  ;;  %3255 = vmatpush.msrb.mxu0 %v5362_v10  ;;  %v5404_v59 = vld [vmem:[%s10257_s3 + $0xd68] sm:$0xff]  ;;  %v5405_v10 = vld [vmem:[%s10257_s3 + $0xd58] sm:$0xff] }
 0x9c0   : > { %3233 = vmatpush.msra.mxu3 %v5363_v48  ;;  %3256 = vmatpush.msrb.mxu0 %v5364_v52  ;;  %v5406_v48 = vld [vmem:[%s10257_s3 + $0xd48] sm:$0xff]  ;;  %v5407_v52 = vld [vmem:[%s10257_s3 + $0xd38] sm:$0xff] }
 0x9c2   : > { %3234 = vmatpush.msra.mxu3 %v5365_v33  ;;  %3257 = vmatpush.msrb.mxu0 %v5366_v58 }
 0x9c4   : > { %3235 = vmatpush.msra.mxu3 %v5367_v41  ;;  %3258 = vmatpush.msrb.mxu0 %v5368_v4  ;;  %v5408_v4 = vld [vmem:[%s10257_s3 + $0xd28] sm:$0xff] }
 0x9c6   : > { %3236 = vmatpush.msra.mxu3 %v5369_v50  ;;  %3259 = vmatpush.msrb.mxu0 %v5370_v57  ;;  %v5409_v57 = vld [vmem:[%s10257_s3 + $0xd18] sm:$0xff] }
 0x9c8   : > { %3237 = vmatpush.msra.mxu3 %v5371_v60  ;;  %3260 = vmatpush.msrb.mxu0 %v5372_v42  ;;  %v9263_v60 = vld [vmem:[%s10256_s2 + $0x60] sm:$0xff]  ;;  %v5410_v42 = vld [vmem:[%s10257_s3 + $0xd08] sm:$0xff] }
 0x9ca   : > { %3238 = vmatpush.msra.mxu3 %v5373_v38  ;;  %3261 = vmatpush.msrb.mxu0 %v5374_v37  ;;  %v5411_v38 = vld [vmem:[%s10257_s3 + $0xff0] sm:$0xff]  ;;  %v5412_v37 = vld [vmem:[%s10257_s3 + $0xef8] sm:$0xff] }
 0x9cc   : > { %3239 = vmatpush.msra.mxu3 %v5375_v55  ;;  %3262 = vmatpush.msrb.mxu0 %v5376_v20  ;;  %v5413_v55 = vld [vmem:[%s10257_s3 + $0xfe0] sm:$0xff]  ;;  %v5414_v20 = vld [vmem:[%s10257_s3 + $0xee8] sm:$0xff] }
 0x9ce   : > { %3240 = vmatpush.msra.mxu3 %v5377_v8  ;;  %3263 = vmatpush.msrb.mxu0 %v5378_v5  ;;  %v5415_v8 = vld [vmem:[%s10257_s3 + $0xfd0] sm:$0xff]  ;;  %v5416_v5 = vld [vmem:[%s10257_s3 + $0xed8] sm:$0xff] }
 0x9cf   : > { %3241 = vmatmul.f32.vlgmr.msra.gmra.mxu3 %v8049_v0  ;;  %3264 = vmatmul.f32.vlgmr.msrb.gmra.mxu0 %v8047_v44 }
 0x9d0   : > { %3353 = vmatpush.msra.mxu0 %v5379_v25  ;;  %v9292_v25 = vld [vmem:[%s10256_s2 + $0x68] sm:$0xff] }
 0x9d2   : > { %3354 = vmatpush.msra.mxu0 %v5380_v34  ;;  %v5417_v34 = vld [vmem:[%s10257_s3 + $0xfc0] sm:$0xff] }
 0x9d4   : > { %3355 = vmatpush.msra.mxu0 %v5381_v32  ;;  %v5418_v32 = vld [vmem:[%s10257_s3 + $0xec8] sm:$0xff] }
 0x9d6   : > { %3356 = vmatpush.msra.mxu0 %v5382_v51  ;;  %v5419_v51 = vld [vmem:[%s10257_s3 + $0xfb0] sm:$0xff] }
 0x9d7   : > { %3244 = vmatmul.f32.gmra.mxu3 %v8057_v47  ;;  %3267 = vmatmul.f32.gmra.mxu0 %v8055_v31 }
 0x9d8   : > { %3357 = vmatpush.msra.mxu0 %v5383_v9  ;;  %v5420_v9 = vld [vmem:[%s10257_s3 + $0xeb8] sm:$0xff] }
 0x9da   : > { %3358 = vmatpush.msra.mxu0 %v5384_v17  ;;  %v5421_v17 = vld [vmem:[%s10257_s3 + $0xfa0] sm:$0xff] }
 0x9dc   : > { %3359 = vmatpush.msra.mxu0 %v5385_v21  ;;  %v5422_v21 = vld [vmem:[%s10257_s3 + $0xea8] sm:$0xff] }
 0x9de   : > { %3360 = vmatpush.msra.mxu0 %v5386_v16  ;;  %v5423_v16 = vld [vmem:[%s10257_s3 + $0xf90] sm:$0xff] }
 0x9e0   : > { %3361 = vmatpush.msra.mxu0 %v5387_v3  ;;  %v5424_v3 = vld [vmem:[%s10257_s3 + $0xe98] sm:$0xff] }
 0x9e2   : > { %3362 = vmatpush.msra.mxu0 %v5388_v23  ;;  %v5425_v23 = vld [vmem:[%s10257_s3 + $0xf80] sm:$0xff] }
 0x9e4   : > { %3363 = vmatpush.msra.mxu0 %v5389_v27  ;;  %v5426_v27 = vld [vmem:[%s10257_s3 + $0xe88] sm:$0xff] }
 0x9e6   : > { %3364 = vmatpush.msra.mxu0 %v5390_v29  ;;  %v5427_v29 = vld [vmem:[%s10257_s3 + $0xf70] sm:$0xff] }
 0x9e8   : > { %3365 = vmatpush.msra.mxu0 %v5391_v30  ;;  %v5428_v30 = vld [vmem:[%s10257_s3 + $0xe78] sm:$0xff] }
 0x9ea   : > { %3366 = vmatpush.msra.mxu0 %v5392_v53  ;;  %v5429_v53 = vld [vmem:[%s10257_s3 + $0xf60] sm:$0xff] }
 0x9ec   : > { %3367 = vmatpush.msra.mxu0 %v5393_v62  ;;  %v5430_v62 = vld [vmem:[%s10257_s3 + $0xe68] sm:$0xff] }
 0x9ee   : > { %3368 = vmatpush.msra.mxu0 %v5394_v54  ;;  %v5431_v54 = vld [vmem:[%s10257_s3 + $0xf50] sm:$0xff] }
 0x9ef   : > { %3369 = vmatmul.f32.vlgmr.msra.gmra.mxu0 %v8047_v44 }
 0x9f7   : > { %3372 = vmatmul.f32.gmra.mxu0 %v8055_v31 }
 0xa12   : > { %v3041_v40 = vpop.f32.mrf.mxu3 }
 0xa13   : > { %v9200_v63 = vadd.f32 %v3041_v40, %v8968_v61  ;;  %v5395_v61 = vld [vmem:[%s10257_s3 + $0xdf8] sm:$0xff] }
 0xa14   : > { %v5432_v40 = vld [vmem:[%s10257_s3 + $0xe58] sm:$0xff] }
 0xa1a   : > { %v3044_v12 = vpop.f32.mrf.mxu3 }
 0xa1b   : > { %v9203_v56 = vadd.f32 %v3044_v12, %v8973_v49  ;;  %v5396_v49 = vld [vmem:[%s10257_s3 + $0xde8] sm:$0xff]  ;;  %v5433_v12 = vld [vmem:[%s10257_s3 + $0xf40] sm:$0xff] }
 0xa2c   : > { %v3169_v13 = vpop.f32.mrf.mxu0 }
 0xa2d   : > { %v9206_v36 = vadd.f32 %v3169_v13, %v8976_v19  ;;  %v5397_v19 = vld [vmem:[%s10257_s3 + $0xdd8] sm:$0xff]  ;;  %v5434_v13 = vld [vmem:[%s10257_s3 + $0xe48] sm:$0xff] }
 0xa32   : > { %v3137_v39 = vpop.f32.mrf.mxu3 }
 0xa33   : > { %v3138_v28 = vadd.f32 %v3137_v39, %v3114_v18  ;;  %v5435_v18 = vld [vmem:[%s10257_s3 + $0xf30] sm:$0xff]  ;;  %v5436_v39 = vld [vmem:[%s10257_s3 + $0xe38] sm:$0xff] }
 0xa34   : > { %v3172_v6 = vpop.f32.mrf.mxu0 }
 0xa35   : > { %v9209_v7 = vadd.f32 %v3172_v6, %v8981_v43  ;;  %v5398_v43 = vld [vmem:[%s10257_s3 + $0xdc8] sm:$0xff]  ;;  %v5437_v6 = vld [vmem:[%s10257_s3 + $0xf20] sm:$0xff] }
 0xa3a   : > { %v3140_v22 = vpop.f32.mrf.mxu3 }
 0xa3b   : > { %v3141_v46 = vadd.f32 %v3140_v22, %v3117_v11  ;;  %v5438_v11 = vld [vmem:[%s10257_s3 + $0xe28] sm:$0xff]  ;;  %v5439_v22 = vld [vmem:[%s10257_s3 + $0xf10] sm:$0xff] }
 0xa3d   : > { %3189 = vmatpush.msra.mxu1 %v3141_v46  ;;  %v5440_v46 = vld [vmem:[%s10257_s3 + $0xe18] sm:$0xff] }
 0xa3f   : > { %3190 = vmatpush.msra.mxu1 %v3138_v28  ;;  %v5441_v28 = vld [vmem:[%s10257_s3 + $0xf00] sm:$0xff] }
 0xa40   : > { %4887 = vmatmul.msk.f32.vlgmr.msra.gmra.mxu1 %vm2493_vm13, %v9033_v15  ;;  %v5399_v15 = vld [vmem:[%s10257_s3 + $0xdb8] sm:$0xff] }
 0xa41   : > { %3271 = vmatpush.msrb.mxu1 %v5395_v61  ;;  %v5442_v61 = vld [vmem:[%s10257_s3 + $0xe08] sm:$0xff] }
 0xa43   : > { %3272 = vmatpush.msrb.mxu1 %v5396_v49  ;;  %v5443_v49 = vld [vmem:[%s10257_s3 + $0x10f0] sm:$0xff] }
 0xa45   : > { %3273 = vmatpush.msrb.mxu1 %v5397_v19  ;;  %v5444_v19 = vld [vmem:[%s10257_s3 + $0x10e0] sm:$0xff] }
 0xa47   : > { %3274 = vmatpush.msrb.mxu1 %v5398_v43  ;;  %v5445_v43 = vld [vmem:[%s10257_s3 + $0x10d0] sm:$0xff] }
 0xa48   : > { %4888 = vmatmul.msk.f32.gmra.mxu1 %vm2493_vm13, %v9062_v1  ;;  %v3219_v1 = vpop.f32.mrf.mxu2 }
 0xa49   : > { %3275 = vmatpush.msrb.mxu1 %v5399_v15  ;;  %v5446_v15 = vld [vmem:[%s10257_s3 + $0x10c0] sm:$0xff] }
 0xa4b   : > { %3276 = vmatpush.msrb.mxu1 %v5400_v45  ;;  %v5447_v45 = vld [vmem:[%s10257_s3 + $0x10b0] sm:$0xff] }
 0xa4d   : > { %3277 = vmatpush.msrb.mxu1 %v5401_v24  ;;  %v5448_v24 = vld [vmem:[%s10257_s3 + $0x10a0] sm:$0xff] }
 0xa4f   : > { %3278 = vmatpush.msrb.mxu1 %v5402_v26  ;;  %v5449_v26 = vld [vmem:[%s10257_s3 + $0x1090] sm:$0xff] }
 0xa50   : > { %v3222_v33 = vpop.f32.mrf.mxu2 }
 0xa51   : > { %3279 = vmatpush.msrb.mxu1 %v5403_v14  ;;  %v5451_v14 = vld [vmem:[%s10257_s3 + $0x1070] sm:$0xff] }
 0xa52   : > { %v3242_v2 = vpop.f32.mrf.mxu3 }
 0xa53   : > { %3280 = vmatpush.msrb.mxu1 %v5404_v59  ;;  %v3243_v50 = vadd.f32 %v3242_v2, %v3219_v1  ;;  %v5450_v1 = vld [vmem:[%s10257_s3 + $0x1080] sm:$0xff]  ;;  %v5453_v59 = vld [vmem:[%s10257_s3 + $0x1050] sm:$0xff] }
 0xa54   : > { %v5452_v2 = vld [vmem:[%s10257_s3 + $0x1060] sm:$0xff] }
 0xa55   : > { %3281 = vmatpush.msrb.mxu1 %v5405_v10  ;;  %v5454_v10 = vld [vmem:[%s10257_s3 + $0x1040] sm:$0xff] }
 0xa57   : > { %3282 = vmatpush.msrb.mxu1 %v5406_v48  ;;  %v5455_v48 = vld [vmem:[%s10257_s3 + $0x1030] sm:$0xff] }
 0xa59   : > { %3283 = vmatpush.msrb.mxu1 %v5407_v52  ;;  %v5456_v52 = vld [vmem:[%s10257_s3 + $0x1020] sm:$0xff] }
 0xa5a   : > { %v3245_v58 = vpop.f32.mrf.mxu3 }
 0xa5b   : > { %v3246_v41 = vadd.f32 %v3245_v58, %v3222_v33  ;;  %3284 = vmatpush.msrb.mxu1 %v5408_v4  ;;  %v5457_v33 = vld [vmem:[%s10257_s3 + $0x1010] sm:$0xff]  ;;  %v5458_v58 = vld [vmem:[%s10257_s3 + $0x1000] sm:$0xff] }
 0xa5d   : > { %3285 = vmatpush.msrb.mxu1 %v5409_v57  ;;  %3317 = vmatpush.msrb.mxu2 %v3246_v41 }
 0xa5f   : > { %3286 = vmatpush.msrb.mxu1 %v5410_v42  ;;  %3318 = vmatpush.msrb.mxu2 %v3243_v50  ;;  %v3265_v42 = vpop.f32.mrf.mxu0 }
 0xa60   : > { %3287 = vmatmul.f32.vlgmr.msrb.gmra.mxu1 %v8049_v0  ;;  %4891 = vmatmul.msk.f32.vlgmr.msrb.gmra.mxu2 %vm2493_vm13, %v9263_v60 }
 0xa61   : > { %3376 = vmatpush.msra.mxu1 %v5411_v38  ;;  %3399 = vmatpush.msra.mxu2 %v5412_v37 }
 0xa63   : > { %3377 = vmatpush.msra.mxu1 %v5413_v55  ;;  %3400 = vmatpush.msra.mxu2 %v5414_v20 }
 0xa65   : > { %3378 = vmatpush.msra.mxu1 %v5415_v8  ;;  %3401 = vmatpush.msra.mxu2 %v5416_v5 }
 0xa67   : > { %3379 = vmatpush.msra.mxu1 %v5417_v34  ;;  %3402 = vmatpush.msra.mxu2 %v5418_v32  ;;  %v3268_v20 = vpop.f32.mrf.mxu0 }
 0xa68   : > { %3290 = vmatmul.f32.gmra.mxu1 %v8057_v47  ;;  %4892 = vmatmul.msk.f32.gmra.mxu2 %vm2493_vm13, %v9292_v25 }
 0xa69   : > { %3380 = vmatpush.msra.mxu1 %v5419_v51  ;;  %3403 = vmatpush.msra.mxu2 %v5420_v9  ;;  %v5461_v51 = vld [vmem:[%s10257_s3 + $0xfd8] sm:$0xff]  ;;  %v5464_v9 = vld [vmem:[%s10257_s3 + $0xfa8] sm:$0xff] }
 0xa6b   : > { %3381 = vmatpush.msra.mxu1 %v5421_v17  ;;  %3404 = vmatpush.msra.mxu2 %v5422_v21  ;;  %v5465_v17 = vld [vmem:[%s10257_s3 + $0xf98] sm:$0xff]  ;;  %v5466_v21 = vld [vmem:[%s10257_s3 + $0xf88] sm:$0xff] }
 0xa6d   : > { %3382 = vmatpush.msra.mxu1 %v5423_v16  ;;  %3405 = vmatpush.msra.mxu2 %v5424_v3  ;;  %v5467_v16 = vld [vmem:[%s10257_s3 + $0xf78] sm:$0xff] }
 0xa6f   : > { %3383 = vmatpush.msra.mxu1 %v5425_v23  ;;  %3406 = vmatpush.msra.mxu2 %v5426_v27  ;;  %v5468_v23 = vld [vmem:[%s10257_s3 + $0xf68] sm:$0xff]  ;;  %v5469_v27 = vld [vmem:[%s10257_s3 + $0xf58] sm:$0xff] }
 0xa71   : > { %3384 = vmatpush.msra.mxu1 %v5427_v29  ;;  %3407 = vmatpush.msra.mxu2 %v5428_v30  ;;  %v5470_v29 = vld [vmem:[%s10257_s3 + $0xf48] sm:$0xff]  ;;  %v5471_v30 = vld [vmem:[%s10257_s3 + $0xf38] sm:$0xff] }
 0xa73   : > { %3385 = vmatpush.msra.mxu1 %v5429_v53  ;;  %3408 = vmatpush.msra.mxu2 %v5430_v62 }
 0xa75   : > { %3386 = vmatpush.msra.mxu1 %v5431_v54  ;;  %3409 = vmatpush.msra.mxu2 %v5432_v40  ;;  %v5472_v40 = vld [vmem:[%s10257_s3 + $0xf28] sm:$0xff] }
 0xa77   : > { %3387 = vmatpush.msra.mxu1 %v5433_v12  ;;  %3410 = vmatpush.msra.mxu2 %v5434_v13  ;;  %v5473_v13 = vld [vmem:[%s10257_s3 + $0xf18] sm:$0xff] }
 0xa79   : > { %3388 = vmatpush.msra.mxu1 %v5435_v18  ;;  %3411 = vmatpush.msra.mxu2 %v5436_v39  ;;  %v9493_v18 = vld [vmem:[%s10256_s2 + $0x70] sm:$0xff]  ;;  %v5474_v39 = vld [vmem:[%s10257_s3 + $0xf08] sm:$0xff] }
 0xa7b   : > { %3389 = vmatpush.msra.mxu1 %v5437_v6  ;;  %3412 = vmatpush.msra.mxu2 %v5438_v11  ;;  %v5475_v6 = vld [vmem:[%s10257_s3 + $0x11f0] sm:$0xff]  ;;  %v5476_v11 = vld [vmem:[%s10257_s3 + $0x10f8] sm:$0xff] }
 0xa7d   : > { %3390 = vmatpush.msra.mxu1 %v5439_v22  ;;  %3413 = vmatpush.msra.mxu2 %v5440_v46  ;;  %v5477_v22 = vld [vmem:[%s10257_s3 + $0x11e0] sm:$0xff]  ;;  %v5478_v46 = vld [vmem:[%s10257_s3 + $0x10e8] sm:$0xff] }
 0xa7f   : > { %3391 = vmatpush.msra.mxu1 %v5441_v28  ;;  %3414 = vmatpush.msra.mxu2 %v5442_v61  ;;  %v5479_v28 = vld [vmem:[%s10257_s3 + $0x11d0] sm:$0xff]  ;;  %v5480_v61 = vld [vmem:[%s10257_s3 + $0x10d8] sm:$0xff] }
 0xa80   : > { %3392 = vmatmul.f32.vlgmr.msra.gmra.mxu1 %v8049_v0  ;;  %3415 = vmatmul.f32.vlgmr.msra.gmra.mxu2 %v8047_v44 }
 0xa81   : > { %3504 = vmatpush.msrb.mxu2 %v5443_v49  ;;  %v9522_v49 = vld [vmem:[%s10256_s2 + $0x78] sm:$0xff] }
 0xa83   : > { %3505 = vmatpush.msrb.mxu2 %v5444_v19  ;;  %v5481_v19 = vld [vmem:[%s10257_s3 + $0x11c0] sm:$0xff] }
 0xa85   : > { %3506 = vmatpush.msrb.mxu2 %v5445_v43  ;;  %v5482_v43 = vld [vmem:[%s10257_s3 + $0x10c8] sm:$0xff] }
 0xa87   : > { %3507 = vmatpush.msrb.mxu2 %v5446_v15  ;;  %v5483_v15 = vld [vmem:[%s10257_s3 + $0x11b0] sm:$0xff] }
 0xa88   : > { %3395 = vmatmul.f32.gmra.mxu1 %v8057_v47  ;;  %3418 = vmatmul.f32.gmra.mxu2 %v8055_v31 }
 0xa89   : > { %3508 = vmatpush.msrb.mxu2 %v5447_v45  ;;  %v5484_v45 = vld [vmem:[%s10257_s3 + $0x10b8] sm:$0xff] }
 0xa8b   : > { %3509 = vmatpush.msrb.mxu2 %v5448_v24  ;;  %v5485_v24 = vld [vmem:[%s10257_s3 + $0x11a0] sm:$0xff] }
 0xa8d   : > { %3510 = vmatpush.msrb.mxu2 %v5449_v26  ;;  %v5486_v26 = vld [vmem:[%s10257_s3 + $0x10a8] sm:$0xff] }
 0xa8f   : > { %3511 = vmatpush.msrb.mxu2 %v5450_v1  ;;  %v5487_v1 = vld [vmem:[%s10257_s3 + $0x1190] sm:$0xff] }
 0xa91   : > { %3512 = vmatpush.msrb.mxu2 %v5451_v14  ;;  %v5488_v14 = vld [vmem:[%s10257_s3 + $0x1098] sm:$0xff] }
 0xa93   : > { %3513 = vmatpush.msrb.mxu2 %v5452_v2  ;;  %v5489_v2 = vld [vmem:[%s10257_s3 + $0x1180] sm:$0xff] }
 0xa95   : > { %3514 = vmatpush.msrb.mxu2 %v5453_v59  ;;  %v5490_v59 = vld [vmem:[%s10257_s3 + $0x1088] sm:$0xff] }
 0xa97   : > { %3515 = vmatpush.msrb.mxu2 %v5454_v10  ;;  %v5491_v10 = vld [vmem:[%s10257_s3 + $0x1170] sm:$0xff] }
 0xa99   : > { %3516 = vmatpush.msrb.mxu2 %v5455_v48  ;;  %v5492_v48 = vld [vmem:[%s10257_s3 + $0x1078] sm:$0xff] }
 0xa9b   : > { %3517 = vmatpush.msrb.mxu2 %v5456_v52  ;;  %v5493_v52 = vld [vmem:[%s10257_s3 + $0x1160] sm:$0xff] }
 0xa9d   : > { %3518 = vmatpush.msrb.mxu2 %v5457_v33  ;;  %v5494_v33 = vld [vmem:[%s10257_s3 + $0x1068] sm:$0xff] }
 0xa9f   : > { %3519 = vmatpush.msrb.mxu2 %v5458_v58  ;;  %v5495_v58 = vld [vmem:[%s10257_s3 + $0x1150] sm:$0xff] }
 0xaa0   : > { %3520 = vmatmul.f32.vlgmr.msrb.gmra.mxu2 %v8047_v44 }
 0xaa8   : > { %3523 = vmatmul.f32.gmra.mxu2 %v8055_v31 }
 0xabd   : > { %v3192_v41 = vpop.f32.mrf.mxu1 }
 0xabe   : > { %v9430_v4 = vadd.f32 %v3192_v41, %v9200_v63  ;;  %v5496_v41 = vld [vmem:[%s10257_s3 + $0x1058] sm:$0xff] }
 0xac5   : > { %v3195_v50 = vpop.f32.mrf.mxu1 }
 0xac6   : > { %v9433_v57 = vadd.f32 %v3195_v50, %v9203_v56  ;;  %v5459_v56 = vld [vmem:[%s10257_s3 + $0xff8] sm:$0xff]  ;;  %v5497_v50 = vld [vmem:[%s10257_s3 + $0x1140] sm:$0xff] }
 0xadd   : > { %v3288_v38 = vpop.f32.mrf.mxu1 }
 0xade   : > { %v3289_v34 = vadd.f32 %v3288_v38, %v3265_v42  ;;  %v5498_v42 = vld [vmem:[%s10257_s3 + $0x1048] sm:$0xff]  ;;  %v5499_v38 = vld [vmem:[%s10257_s3 + $0x1130] sm:$0xff] }
 0xae3   : > { %v3320_v37 = vpop.f32.mrf.mxu2 }
 0xae4   : > { %v9436_v55 = vadd.f32 %v3320_v37, %v9206_v36  ;;  %v5460_v36 = vld [vmem:[%s10257_s3 + $0xfe8] sm:$0xff]  ;;  %v5500_v37 = vld [vmem:[%s10257_s3 + $0x1038] sm:$0xff] }
 0xae5   : > { %v3291_v8 = vpop.f32.mrf.mxu1 }
 0xae6   : > { %v3292_v5 = vadd.f32 %v3291_v8, %v3268_v20  ;;  %v5501_v20 = vld [vmem:[%s10257_s3 + $0x1120] sm:$0xff]  ;;  %v5502_v8 = vld [vmem:[%s10257_s3 + $0x1028] sm:$0xff] }
 0xae8   : > { %3340 = vmatpush.msrb.mxu3 %v3292_v5  ;;  %v5503_v5 = vld [vmem:[%s10257_s3 + $0x1110] sm:$0xff] }
 0xaea   : > { %3341 = vmatpush.msrb.mxu3 %v3289_v34  ;;  %v5504_v34 = vld [vmem:[%s10257_s3 + $0x1018] sm:$0xff] }
 0xaeb   : > { %v3323_v32 = vpop.f32.mrf.mxu2  ;;  %4893 = vmatmul.msk.f32.vlgmr.msrb.gmra.mxu3 %vm2493_vm13, %v9263_v60  ;;  %v5463_v60 = vld [vmem:[%s10257_s3 + $0xfb8] sm:$0xff] }
 0xaec   : > { %v9441_v63 = vadd.f32 %v3323_v32, %v9209_v7  ;;  %3422 = vmatpush.msra.mxu3 %v5459_v56  ;;  %v5462_v7 = vld [vmem:[%s10257_s3 + $0xfc8] sm:$0xff]  ;;  %v5505_v32 = vld [vmem:[%s10257_s3 + $0x1100] sm:$0xff] }
 0xaed   : > { %v5506_v56 = vld [vmem:[%s10257_s3 + $0x1008] sm:$0xff] }
 0xaee   : > { %3423 = vmatpush.msra.mxu3 %v5460_v36 }
 0xaf0   : > { %3424 = vmatpush.msra.mxu3 %v5461_v51 }
 0xaf2   : > { %3425 = vmatpush.msra.mxu3 %v5462_v7 }
 0xaf3   : > { %4894 = vmatmul.msk.f32.gmra.mxu3 %vm2493_vm13, %v9292_v25  ;;  %v3370_v25 = vpop.f32.mrf.mxu0 }
 0xaf4   : > { %3426 = vmatpush.msra.mxu3 %v5463_v60 }
 0xaf6   : > { %3427 = vmatpush.msra.mxu3 %v5464_v9 }
 0xaf8   : > { %3428 = vmatpush.msra.mxu3 %v5465_v17 }
 0xafa   : > { %3429 = vmatpush.msra.mxu3 %v5466_v21 }
 0xafb   : > { %v3373_v53 = vpop.f32.mrf.mxu0 }
 0xafc   : > { %3430 = vmatpush.msra.mxu3 %v5467_v16 }
 0xafd   : > { %v3393_v3 = vpop.f32.mrf.mxu1 }
 0xafe   : > { %3431 = vmatpush.msra.mxu3 %v5468_v23  ;;  %v3394_v12 = vadd.f32 %v3393_v3, %v3370_v25 }
 0xb00   : > { %3432 = vmatpush.msra.mxu3 %v5469_v27 }
 0xb02   : > { %3433 = vmatpush.msra.mxu3 %v5470_v29  ;;  %v5511_v29 = vld [vmem:[%s10257_s3 + $0x11b8] sm:$0xff] }
 0xb03   : > { %v3416_v21 = vpop.f32.mrf.mxu2 }
 0xb04   : > { %3434 = vmatpush.msra.mxu3 %v5471_v30  ;;  %v5512_v30 = vld [vmem:[%s10257_s3 + $0x11a8] sm:$0xff] }
 0xb05   : > { %v3396_v62 = vpop.f32.mrf.mxu1 }
 0xb06   : > { %v3397_v54 = vadd.f32 %v3396_v62, %v3373_v53  ;;  %3435 = vmatpush.msra.mxu3 %v5472_v40  ;;  %v5513_v53 = vld [vmem:[%s10257_s3 + $0x1198] sm:$0xff]  ;;  %v5514_v62 = vld [vmem:[%s10257_s3 + $0x1188] sm:$0xff] }
 0xb07   : > { %v5515_v40 = vld [vmem:[%s10257_s3 + $0x1178] sm:$0xff] }
 0xb08   : > { %3436 = vmatpush.msra.mxu3 %v5473_v13  ;;  %3468 = vmatpush.msrb.mxu0 %v3397_v54  ;;  %v5516_v13 = vld [vmem:[%s10257_s3 + $0x1168] sm:$0xff] }
 0xb0a   : > { %3437 = vmatpush.msra.mxu3 %v5474_v39  ;;  %3469 = vmatpush.msrb.mxu0 %v3394_v12  ;;  %v5518_v39 = vld [vmem:[%s10257_s3 + $0x1148] sm:$0xff] }
 0xb0b   : > { %3438 = vmatmul.f32.vlgmr.msra.gmra.mxu3 %v8049_v0  ;;  %4897 = vmatmul.msk.f32.vlgmr.msrb.gmra.mxu0 %vm2493_vm13, %v9493_v18  ;;  %v3419_v3 = vpop.f32.mrf.mxu2 }
 0xb0c   : > { %3527 = vmatpush.msrb.mxu3 %v5475_v6  ;;  %3550 = vmatpush.msra.mxu0 %v5476_v11  ;;  %v5519_v6 = vld [vmem:[%s10257_s3 + $0x1138] sm:$0xff] }
 0xb0e   : > { %3528 = vmatpush.msrb.mxu3 %v5477_v22  ;;  %3551 = vmatpush.msra.mxu0 %v5478_v46 }
 0xb10   : > { %3529 = vmatpush.msrb.mxu3 %v5479_v28  ;;  %3552 = vmatpush.msra.mxu0 %v5480_v61  ;;  %v5520_v28 = vld [vmem:[%s10257_s3 + $0x1128] sm:$0xff] }
 0xb12   : > { %3530 = vmatpush.msrb.mxu3 %v5481_v19  ;;  %3553 = vmatpush.msra.mxu0 %v5482_v43  ;;  %v4901_v19 = vld [vmem:[%s10256_s2 + $0x80] sm:$0xff]  ;;  %v5522_v43 = vld [vmem:[%s10257_s3 + $0x1108] sm:$0xff] }
 0xb13   : > { %3441 = vmatmul.f32.gmra.mxu3 %v8057_v47  ;;  %4898 = vmatmul.msk.f32.gmra.mxu0 %vm2493_vm13, %v9522_v49 }
 0xb14   : > { %3531 = vmatpush.msrb.mxu3 %v5483_v15  ;;  %3554 = vmatpush.msra.mxu0 %v5484_v45  ;;  %v4902_v15 = vld [vmem:[%s10256_s2 + $0x88] sm:$0xff] }
 0xb16   : > { %3532 = vmatpush.msrb.mxu3 %v5485_v24  ;;  %3555 = vmatpush.msra.mxu0 %v5486_v26 }
 0xb18   : > { %3533 = vmatpush.msrb.mxu3 %v5487_v1  ;;  %3556 = vmatpush.msra.mxu0 %v5488_v14 }
 0xb1a   : > { %3534 = vmatpush.msrb.mxu3 %v5489_v2  ;;  %3557 = vmatpush.msra.mxu0 %v5490_v59 }
 0xb1c   : > { %3535 = vmatpush.msrb.mxu3 %v5491_v10  ;;  %3558 = vmatpush.msra.mxu0 %v5492_v48 }
 0xb1e   : > { %3536 = vmatpush.msrb.mxu3 %v5493_v52  ;;  %3559 = vmatpush.msra.mxu0 %v5494_v33 }
 0xb20   : > { %3537 = vmatpush.msrb.mxu3 %v5495_v58  ;;  %3560 = vmatpush.msra.mxu0 %v5496_v41 }
 0xb22   : > { %3538 = vmatpush.msrb.mxu3 %v5497_v50  ;;  %3561 = vmatpush.msra.mxu0 %v5498_v42 }
 0xb23   : > { %v3521_v54 = vpop.f32.mrf.mxu2 }
 0xb24   : > { %3539 = vmatpush.msrb.mxu3 %v5499_v38  ;;  %3562 = vmatpush.msra.mxu0 %v5500_v37 }
 0xb26   : > { %3540 = vmatpush.msrb.mxu3 %v5501_v20  ;;  %3563 = vmatpush.msra.mxu0 %v5502_v8  ;;  %v3735_v8 = vld [vmem:[%s10258_s4 + $0xf0] sm:$0xff] }
 0xb28   : > { %3541 = vmatpush.msrb.mxu3 %v5503_v5  ;;  %3564 = vmatpush.msra.mxu0 %v5504_v34  ;;  %v3767_v5 = vld [vmem:[%s10258_s4 + $0x1f0] sm:$0xff]  ;;  %v3736_v34 = vld [vmem:[%s10258_s4 + $0xf8] sm:$0xff] }
 0xb2a   : > { %3542 = vmatpush.msrb.mxu3 %v5505_v32  ;;  %3565 = vmatpush.msra.mxu0 %v5506_v56  ;;  %v3768_v32 = vld [vmem:[%s10258_s4 + $0x1f8] sm:$0xff]  ;;  %v3733_v56 = vld [vmem:[%s10258_s4 + $0xe0] sm:$0xff] }
 0xb2b   : > { %3543 = vmatmul.f32.vlgmr.msrb.gmra.mxu3 %v8049_v0  ;;  %3566 = vmatmul.f32.vlgmr.msra.gmra.mxu0 %v8047_v44  ;;  %v3524_v11 = vpop.f32.mrf.mxu2 }
 0xb2c   : > { %3775 = vmatpush.msrb.mxu0 %v3735_v8  ;;  %v3743_v8 = vld [vmem:[%s10258_s4 + $0x130] sm:$0xff] }
 0xb2e   : > { %3776 = vmatpush.msrb.mxu0 %v3733_v56  ;;  %v3741_v56 = vld [vmem:[%s10258_s4 + $0x120] sm:$0xff] }
 0xb33   : > { %3546 = vmatmul.f32.gmra.mxu3 %v8057_v47  ;;  %3569 = vmatmul.f32.gmra.mxu0 %v8055_v31 }
 0xb6e   : > { %v3343_v36 = vpop.f32.mrf.mxu3 }
 0xb6f   : > { %v9610_v51 = vadd.f32 %v3343_v36, %v9430_v4  ;;  %v5507_v4 = vld [vmem:[%s10257_s3 + $0x11f8] sm:$0xff]  ;;  %v3765_v36 = vld [vmem:[%s10258_s4 + $0x1e0] sm:$0xff] }
 0xb76   : > { %v3346_v7 = vpop.f32.mrf.mxu3 }
 0xb77   : > { %v9613_v60 = vadd.f32 %v3346_v7, %v9433_v57  ;;  %v5508_v57 = vld [vmem:[%s10257_s3 + $0x11e8] sm:$0xff] }
 0xb78   : > { %v3766_v7 = vld [vmem:[%s10258_s4 + $0x1e8] sm:$0xff] }
 0xb88   : > { %v3471_v9 = vpop.f32.mrf.mxu0 }
 0xb89   : > { %v9616_v17 = vadd.f32 %v3471_v9, %v9436_v55  ;;  %v5509_v55 = vld [vmem:[%s10257_s3 + $0x11d8] sm:$0xff]  ;;  %v3763_v9 = vld [vmem:[%s10258_s4 + $0x1d0] sm:$0xff] }
 0xb8e   : > { %v3439_v25 = vpop.f32.mrf.mxu3 }
 0xb8f   : > { %v3440_v27 = vadd.f32 %v3439_v25, %v3416_v21  ;;  %v3764_v21 = vld [vmem:[%s10258_s4 + $0x1d8] sm:$0xff]  ;;  %v3729_v25 = vld [vmem:[%s10258_s4 + $0xc0] sm:$0xff] }
 0xb90   : > { %v3474_v16 = vpop.f32.mrf.mxu0 }
 0xb91   : > { %v9619_v44 = vadd.f32 %v3474_v16, %v9441_v63  ;;  %v5510_v63 = vld [vmem:[%s10257_s3 + $0x11c8] sm:$0xff]  ;;  %v3761_v16 = vld [vmem:[%s10258_s4 + $0x1c0] sm:$0xff] }
 0xb96   : > { %v3442_v31 = vpop.f32.mrf.mxu3 }
 0xb97   : > { %v3443_v23 = vadd.f32 %v3442_v31, %v3419_v3  ;;  %v3762_v3 = vld [vmem:[%s10258_s4 + $0x1c8] sm:$0xff] }
 0xb99   : > { %3491 = vmatpush.msrb.mxu1 %v3443_v23 }
 0xb9b   : > { %3492 = vmatpush.msrb.mxu1 %v3440_v27 }
 0xb9c   : > { %4899 = vmatmul.msk.f32.vlgmr.msrb.gmra.mxu1 %vm2493_vm13, %v9493_v18  ;;  %v5517_v18 = vld [vmem:[%s10257_s3 + $0x1158] sm:$0xff] }
 0xb9d   : > { %3573 = vmatpush.msra.mxu1 %v5507_v4 }
 0xb9f   : > { %3574 = vmatpush.msra.mxu1 %v5508_v57 }
 0xba1   : > { %3575 = vmatpush.msra.mxu1 %v5509_v55 }
 0xba3   : > { %3576 = vmatpush.msra.mxu1 %v5510_v63 }
 0xba4   : > { %4900 = vmatmul.msk.f32.gmra.mxu1 %vm2493_vm13, %v9522_v49  ;;  %v5521_v49 = vld [vmem:[%s10257_s3 + $0x1118] sm:$0xff] }
 0xba5   : > { %3577 = vmatpush.msra.mxu1 %v5511_v29 }
 0xba7   : > { %3578 = vmatpush.msra.mxu1 %v5512_v30 }
 0xba8   : > { %v3567_v14 = vpop.f32.mrf.mxu0 }
 0xba9   : > { %3579 = vmatpush.msra.mxu1 %v5513_v53 }
 0xbab   : > { %3580 = vmatpush.msra.mxu1 %v5514_v62 }
 0xbad   : > { %3581 = vmatpush.msra.mxu1 %v5515_v40 }
 0xbae   : > { %v3544_v12 = vpop.f32.mrf.mxu3 }
 0xbaf   : > { %3582 = vmatpush.msra.mxu1 %v5516_v13  ;;  %v3545_v61 = vadd.f32 %v3544_v12, %v3521_v54  ;;  %v3727_v13 = vld [vmem:[%s10258_s4 + $0xb0] sm:$0xff] }
 0xbb0   : > { %v3570_v59 = vpop.f32.mrf.mxu0 }
 0xbb1   : > { %3583 = vmatpush.msra.mxu1 %v5517_v18  ;;  %v3759_v18 = vld [vmem:[%s10258_s4 + $0x1b0] sm:$0xff] }
 0xbb3   : > { %3584 = vmatpush.msra.mxu1 %v5518_v39  ;;  %v3728_v39 = vld [vmem:[%s10258_s4 + $0xb8] sm:$0xff] }
 0xbb5   : > { %3585 = vmatpush.msra.mxu1 %v5519_v6  ;;  %v3760_v6 = vld [vmem:[%s10258_s4 + $0x1b8] sm:$0xff] }
 0xbb6   : > { %v3547_v22 = vpop.f32.mrf.mxu3 }
 0xbb7   : > { %v3548_v46 = vadd.f32 %v3547_v22, %v3524_v11  ;;  %3586 = vmatpush.msra.mxu1 %v5520_v28  ;;  %v3725_v11 = vld [vmem:[%s10258_s4 + $0xa0] sm:$0xff]  ;;  %v3758_v28 = vld [vmem:[%s10258_s4 + $0x1a8] sm:$0xff] }
 0xbb8   : > { %v3757_v22 = vld [vmem:[%s10258_s4 + $0x1a0] sm:$0xff] }
 0xbb9   : > { %3587 = vmatpush.msra.mxu1 %v5521_v49  ;;  %3619 = vmatpush.msra.mxu2 %v3548_v46  ;;  %v3726_v46 = vld [vmem:[%s10258_s4 + $0xa8] sm:$0xff]  ;;  %v3755_v49 = vld [vmem:[%s10258_s4 + $0x190] sm:$0xff] }
 0xbbb   : > { %3588 = vmatpush.msra.mxu1 %v5522_v43  ;;  %3620 = vmatpush.msra.mxu2 %v3545_v61  ;;  %v3723_v61 = vld [vmem:[%s10258_s4 + $0x90] sm:$0xff]  ;;  %v3756_v43 = vld [vmem:[%s10258_s4 + $0x198] sm:$0xff] }
 0xbbc   : > { %3589 = vmatmul.f32.vlgmr.msra.gmra.mxu1 %v8049_v0  ;;  %4903 = vmatmul.msk.f32.vlgmr.msra.gmra.mxu2 %vm2493_vm13, %v4901_v19 }
 0xbbd   : > { %3798 = vmatpush.msrb.mxu1 %v3767_v5  ;;  %3821 = vmatpush.msrb.mxu2 %v3736_v34  ;;  %v3712_v5 = vld [vmem:[%s10258_s4 + $0x38] sm:$0xff] }
 0xbbe   : > { %v3744_v34 = vld [vmem:[%s10258_s4 + $0x138] sm:$0xff] }
 0xbbf   : > { %3799 = vmatpush.msrb.mxu1 %v3765_v36  ;;  %v3710_v36 = vld [vmem:[%s10258_s4 + $0x28] sm:$0xff] }
 0xbc1   : > { %3800 = vmatpush.msrb.mxu1 %v3763_v9  ;;  %v3708_v9 = vld [vmem:[%s10258_s4 + $0x18] sm:$0xff] }
 0xbc3   : > { %3801 = vmatpush.msrb.mxu1 %v3761_v16  ;;  %v3706_v16 = vld [vmem:[%s10258_s4 + $0x8] sm:$0xff] }
 0xbc4   : > { %3592 = vmatmul.f32.gmra.mxu1 %v8057_v47  ;;  %4904 = vmatmul.msk.f32.gmra.mxu2 %vm2493_vm13, %v4902_v15 }
 0xbc5   : > { %3802 = vmatpush.msrb.mxu1 %v3759_v18 }
 0xbc7   : > { %3803 = vmatpush.msrb.mxu1 %v3757_v22 }
 0xbc9   : > { %3804 = vmatpush.msrb.mxu1 %v3755_v49 }
 0xc19   : > { %v3494_v45 = vpop.f32.mrf.mxu1 }
 0xc1a   : > { %v3501_v24 = vadd.f32 %v3494_v45, %v9610_v51  ;;  %v3734_v51 = vld [vmem:[%s10258_s4 + $0xe8] sm:$0xff]  ;;  %v3753_v45 = vld [vmem:[%s10258_s4 + $0x180] sm:$0xff] }
 0xc1b   : > { %3822 = vmatpush.msrb.mxu2 %v3734_v51  ;;  %3805 = vmatpush.msrb.mxu1 %v3753_v45  ;;  %v3742_v51 = vld [vmem:[%s10258_s4 + $0x128] sm:$0xff] }
 0xc21   : > { %v3497_v26 = vpop.f32.mrf.mxu1 }
 0xc22   : > { %v3503_v1 = vadd.f32 %v3497_v26, %v9613_v60  ;;  %v3731_v60 = vld [vmem:[%s10258_s4 + $0xd0] sm:$0xff]  ;;  %v3754_v26 = vld [vmem:[%s10258_s4 + $0x188] sm:$0xff] }
 0xc23   : > { %3777 = vmatpush.msrb.mxu0 %v3731_v60  ;;  %v3739_v60 = vld [vmem:[%s10258_s4 + $0x110] sm:$0xff] }
 0xc25   : > { %3778 = vmatpush.msrb.mxu0 %v3729_v25  ;;  %v3737_v25 = vld [vmem:[%s10258_s4 + $0x100] sm:$0xff] }
 0xc27   : > { %3779 = vmatpush.msrb.mxu0 %v3727_v13 }
 0xc29   : > { %3780 = vmatpush.msrb.mxu0 %v3725_v11 }
 0xc2b   : > { %3781 = vmatpush.msrb.mxu0 %v3723_v61 }
 0xc39   : > { %v3590_v2 = vpop.f32.mrf.mxu1 }
 0xc3a   : > { %v3591_v48 = vadd.f32 %v3590_v2, %v3567_v14  ;;  %v3751_v14 = vld [vmem:[%s10258_s4 + $0x170] sm:$0xff]  ;;  %v3720_v2 = vld [vmem:[%s10258_s4 + $0x78] sm:$0xff] }
 0xc3b   : > { %3806 = vmatpush.msrb.mxu1 %v3751_v14 }
 0xc3f   : > { %v3622_v47 = vpop.f32.mrf.mxu2 }
 0xc40   : > { %v3651_v33 = vadd.f32 %v3622_v47, %v9616_v17  ;;  %v3732_v17 = vld [vmem:[%s10258_s4 + $0xd8] sm:$0xff]  ;;  %v3750_v47 = vld [vmem:[%s10258_s4 + $0x168] sm:$0xff] }
 0xc41   : > { %v3593_v0 = vpop.f32.mrf.mxu1  ;;  %3823 = vmatpush.msrb.mxu2 %v3732_v17  ;;  %v3740_v17 = vld [vmem:[%s10258_s4 + $0x118] sm:$0xff] }
 0xc42   : > { %v3594_v10 = vadd.f32 %v3593_v0, %v3570_v59  ;;  %v3752_v59 = vld [vmem:[%s10258_s4 + $0x178] sm:$0xff]  ;;  %v3717_v0 = vld [vmem:[%s10258_s4 + $0x60] sm:$0xff] }
 0xc44   : > { %3642 = vmatpush.msra.mxu3 %v3594_v10  ;;  %v3749_v10 = vld [vmem:[%s10258_s4 + $0x160] sm:$0xff] }
 0xc45   : > { %3807 = vmatpush.msrb.mxu1 %v3749_v10 }
 0xc46   : > { %3643 = vmatpush.msra.mxu3 %v3591_v48  ;;  %v3718_v48 = vld [vmem:[%s10258_s4 + $0x68] sm:$0xff] }
 0xc47   : > { %4905 = vmatmul.msk.f32.vlgmr.msra.gmra.mxu3 %vm2493_vm13, %v4901_v19  ;;  %v3625_v50 = vpop.f32.mrf.mxu2  ;;  %v3724_v19 = vld [vmem:[%s10258_s4 + $0x98] sm:$0xff] }
 0xc48   : > { %v3653_v38 = vadd.f32 %v3625_v50, %v9619_v44  ;;  %3844 = vmatpush.msrb.mxu3 %v3768_v32  ;;  %v3730_v44 = vld [vmem:[%s10258_s4 + $0xc8] sm:$0xff]  ;;  %v3713_v50 = vld [vmem:[%s10258_s4 + $0x40] sm:$0xff] }
 0xc49   : > { %3824 = vmatpush.msrb.mxu2 %v3730_v44  ;;  %v3709_v32 = vld [vmem:[%s10258_s4 + $0x20] sm:$0xff]  ;;  %v3738_v44 = vld [vmem:[%s10258_s4 + $0x108] sm:$0xff] }
 0xc4a   : > { %3845 = vmatpush.msrb.mxu3 %v3766_v7  ;;  %v3707_v7 = vld [vmem:[%s10258_s4 + $0x10] sm:$0xff] }
 0xc4b   : > { %3825 = vmatpush.msrb.mxu2 %v3728_v39 }
 0xc4c   : > { %3846 = vmatpush.msrb.mxu3 %v3764_v21  ;;  %v3705_v21 = vld [vmem:[%s10258_s4] sm:$0xff] }
 0xc4d   : > { %3826 = vmatpush.msrb.mxu2 %v3726_v46 }
 0xc4e   : > { %3847 = vmatpush.msrb.mxu3 %v3762_v3 }
 0xc4f   : > { %4906 = vmatmul.msk.f32.gmra.mxu3 %vm2493_vm13, %v4902_v15  ;;  %3827 = vmatpush.msrb.mxu2 %v3724_v19  ;;  %v3721_v15 = vld [vmem:[%s10258_s4 + $0x80] sm:$0xff] }
 0xc50   : > { %3848 = vmatpush.msrb.mxu3 %v3760_v6  ;;  %3782 = vmatpush.msrb.mxu0 %v3721_v15  ;;  %v9924_v19 = vld [vmem:[%s10259_s5] sm:$0x3] }
 0xc52   : > { %3849 = vmatpush.msrb.mxu3 %v3758_v28 }
 0xc54   : > { %3850 = vmatpush.msrb.mxu3 %v3756_v43  ;;  %v3771_v43 = vperm.slane %v9924_v19, 0 }
 0xc56   : > { %3851 = vmatpush.msrb.mxu3 %v3754_v26  ;;  %v4055_v26 = vld [vmem:[%s10260_s6 + $0xe0] sm:$0xff] }
 0xc58   : > { %3852 = vmatpush.msrb.mxu3 %v3752_v59  ;;  %v4054_v59 = vld [vmem:[%s10260_s6 + $0xd8] sm:$0xff] }
 0xc5a   : > { %3853 = vmatpush.msrb.mxu3 %v3750_v47  ;;  %v4089_v47 = vld [vmem:[%s10260_s6 + $0x1f0] sm:$0xff] }
 0xcca   : > { %v3645_v52 = vpop.f32.mrf.mxu3 }
 0xccb   : > { %v3652_v58 = vadd.f32 %v3645_v52, %v3501_v24  ;;  %v3722_v24 = vld [vmem:[%s10258_s4 + $0x88] sm:$0xff]  ;;  %v3715_v52 = vld [vmem:[%s10258_s4 + $0x50] sm:$0xff] }
 0xccc   : > { %3828 = vmatpush.msrb.mxu2 %v3722_v24 }
 0xccd   : > { %v3655_v41 = vadd.f32 %v3652_v58, %v3651_v33 }
 0xcce   : > { %3829 = vmatpush.msrb.mxu2 %v3720_v2  ;;  %v4053_v2 = vld [vmem:[%s10260_s6 + $0xd0] sm:$0xff] }
 0xccf   : > { %3656 = vadd.xlane.f32.xlu2 %v3655_v41  ;;  %v3748_v41 = vld [vmem:[%s10258_s4 + $0x158] sm:$0xff] }
 0xcd0   : > { %3830 = vmatpush.msrb.mxu2 %v3718_v48  ;;  %3854 = vmatpush.msrb.mxu3 %v3748_v41  ;;  %v4051_v48 = vld [vmem:[%s10260_s6 + $0xc0] sm:$0xff] }
 0xcd2   : > { %v3648_v42 = vpop.f32.mrf.mxu3 }
 0xcd3   : > { %v3654_v37 = vadd.f32 %v3648_v42, %v3503_v1  ;;  %v3719_v1 = vld [vmem:[%s10258_s4 + $0x70] sm:$0xff]  ;;  %v3745_v42 = vld [vmem:[%s10258_s4 + $0x140] sm:$0xff] }
 0xcd4   : > { %3783 = vmatpush.msrb.mxu0 %v3719_v1  ;;  %v4056_v1 = vld [vmem:[%s10260_s6 + $0xe8] sm:$0xff] }
 0xcd5   : > { %v3658_v20 = vadd.f32 %v3654_v37, %v3653_v38 }
 0xcd6   : > { %3784 = vmatpush.msrb.mxu0 %v3717_v0  ;;  %v3772_v0 = vperm.slane %v9924_v19, 1 }
 0xcd7   : > { %3659 = vadd.xlane.f32.xlu2 %v3658_v20  ;;  %v3711_v20 = vld [vmem:[%s10258_s4 + $0x30] sm:$0xff] }
 0xcd8   : > { %3785 = vmatpush.msrb.mxu0 %v3715_v52  ;;  %v4052_v52 = vld [vmem:[%s10260_s6 + $0xc8] sm:$0xff] }
 0xcda   : > { %3786 = vmatpush.msrb.mxu0 %v3713_v50 }
 0xcdc   : > { %3787 = vmatpush.msrb.mxu0 %v3711_v20 }
 0xcde   : > { %3788 = vmatpush.msrb.mxu0 %v3709_v32 }
 0xce0   : > { %3789 = vmatpush.msrb.mxu0 %v3707_v7 }
 0xce2   : > { %3790 = vmatpush.msrb.mxu0 %v3705_v21 }
 0xd42   : > { %v3657_v31 = vpop.xlane.xlu2 %3656 }
 0xd43   : > { %v3661_v23 = vmul.f32 %v3657_v31, %v8041_v35 }
 0xd45   : > { %v9738_v27 = vsub.f32 %v3651_v33, %v3661_v23  ;;  %v9740_v4 = vsub.f32 %v3652_v58, %v3661_v23  ;;  %v3747_v33 = vld [vmem:[%s10258_s4 + $0x150] sm:$0xff]  ;;  %v3716_v58 = vld [vmem:[%s10258_s4 + $0x58] sm:$0xff] }
 0xd46   : > { %3808 = vmatpush.msrb.mxu1 %v3747_v33  ;;  %3831 = vmatpush.msrb.mxu2 %v3716_v58  ;;  %v4090_v33 = vld [vmem:[%s10260_s6 + $0x1f8] sm:$0xff] }
 0xd47   : > { %v3667_v57 = vmul.f32 %v9738_v27, %v9738_v27  ;;  %v3668_v55 = vmul.f32 %v9740_v4, %v9740_v4 }
 0xd48   : > { %3809 = vmatpush.msrb.mxu1 %v3745_v42  ;;  %v4049_v42 = vld [vmem:[%s10260_s6 + $0xb0] sm:$0xff] }
 0xd49   : > { %v3671_v63 = vadd.f32 %v3668_v55, %v3667_v57 }
 0xd4a   : > { %v3660_v29 = vpop.xlane.xlu2 %3659  ;;  %3810 = vmatpush.msrb.mxu1 %v3743_v8 }
 0xd4b   : > { %v3662_v30 = vmul.f32 %v3660_v29, %v8041_v35  ;;  %3672 = vadd.xlane.f32.xlu0 %v3671_v63 }
 0xd4c   : > { %3811 = vmatpush.msrb.mxu1 %v3741_v56  ;;  %v4047_v56 = vld [vmem:[%s10260_s6 + $0xa0] sm:$0xff] }
 0xd4d   : > { %v9747_v53 = vsub.f32 %v3653_v38, %v3662_v30  ;;  %v9749_v62 = vsub.f32 %v3654_v37, %v3662_v30  ;;  %v3714_v38 = vld [vmem:[%s10258_s4 + $0x48] sm:$0xff] }
 0xd4e   : > { %v3746_v37 = vld [vmem:[%s10258_s4 + $0x148] sm:$0xff]  ;;  %3832 = vmatpush.msrb.mxu2 %v3714_v38  ;;  %3812 = vmatpush.msrb.mxu1 %v3739_v60  ;;  %v4087_v38 = vld [vmem:[%s10260_s6 + $0x1e0] sm:$0xff] }
 0xd4f   : > { %v3669_v54 = vmul.f32 %v9747_v53, %v9747_v53  ;;  %v3670_v40 = vmul.f32 %v9749_v62, %v9749_v62  ;;  %3855 = vmatpush.msrb.mxu3 %v3746_v37  ;;  %v4050_v37 = vld [vmem:[%s10260_s6 + $0xb8] sm:$0xff] }
 0xd50   : > { %3833 = vmatpush.msrb.mxu2 %v3712_v5  ;;  %3813 = vmatpush.msrb.mxu1 %v3737_v25  ;;  %v4088_v5 = vld [vmem:[%s10260_s6 + $0x1e8] sm:$0xff]  ;;  %v4045_v25 = vld [vmem:[%s10260_s6 + $0x90] sm:$0xff] }
 0xd51   : > { %v3674_v12 = vadd.f32 %v3670_v40, %v3669_v54  ;;  %3856 = vmatpush.msrb.mxu3 %v3744_v34 }
 0xd52   : > { %3834 = vmatpush.msrb.mxu2 %v3710_v36  ;;  %4120 = vmatpush.msra.mxu1 %v4089_v47  ;;  %v4085_v36 = vld [vmem:[%s10260_s6 + $0x1d0] sm:$0xff]  ;;  %v4035_v47 = vld [vmem:[%s10260_s6 + $0x40] sm:$0xff] }
 0xd53   : > { %3675 = vadd.xlane.f32.xlu1 %v3674_v12  ;;  %3857 = vmatpush.msrb.mxu3 %v3742_v51  ;;  %v4048_v51 = vld [vmem:[%s10260_s6 + $0xa8] sm:$0xff] }
 0xd54   : > { %3835 = vmatpush.msrb.mxu2 %v3708_v9  ;;  %4121 = vmatpush.msra.mxu1 %v4087_v38  ;;  %v4086_v9 = vld [vmem:[%s10260_s6 + $0x1d8] sm:$0xff] }
 0xd55   : > { %3858 = vmatpush.msrb.mxu3 %v3740_v17 }
 0xd56   : > { %3836 = vmatpush.msrb.mxu2 %v3706_v16  ;;  %4122 = vmatpush.msra.mxu1 %v4085_v36  ;;  %v4083_v16 = vld [vmem:[%s10260_s6 + $0x1c0] sm:$0xff]  ;;  %v4032_v36 = vld [vmem:[%s10260_s6 + $0x28] sm:$0xff] }
 0xd57   : > { %3859 = vmatpush.msrb.mxu3 %v3738_v44  ;;  %v4046_v44 = vld [vmem:[%s10260_s6 + $0x98] sm:$0xff] }
 0xd58   : > { %4123 = vmatpush.msra.mxu1 %v4083_v16 }
 0xd59   : > { %4166 = vmatpush.msra.mxu3 %v4090_v33 }
 0xd5b   : > { %4167 = vmatpush.msra.mxu3 %v4088_v5  ;;  %v4072_v5 = vld [vmem:[%s10260_s6 + $0x168] sm:$0xff] }
 0xd5d   : > { %4168 = vmatpush.msra.mxu3 %v4086_v9 }
 0xdbe   : > { %v3673_v3 = vpop.xlane.xlu0 %3672 }
 0xdbf   : > { %v3677_v31 = vmul.f32 %v3673_v3, %v8041_v35 }
 0xdc1   : > { %v3679_v23 = vadd.f32 1e-05, %v3677_v31  ;;  %v4084_v31 = vld [vmem:[%s10260_s6 + $0x1c8] sm:$0xff] }
 0xdc2   : > { %4169 = vmatpush.msra.mxu3 %v4084_v31  ;;  %v4029_v31 = vld [vmem:[%s10260_s6 + $0x10] sm:$0xff] }
 0xdc3   : > { %4927 = vrsqrt.f32 %v3679_v23  ;;  %vm3687_vm15 = vweird.f32 %v3679_v23 }
 0xdc6   : > { %v3676_v57 = vpop.xlane.xlu1 %3675 }
 0xdc7   : > { %v3678_v55 = vmul.f32 %v3676_v57, %v8041_v35  ;;  %v4081_v57 = vld [vmem:[%s10260_s6 + $0x1b0] sm:$0xff] }
 0xdc8   : > { %4124 = vmatpush.msra.mxu1 %v4081_v57  ;;  %v4030_v57 = vld [vmem:[%s10260_s6 + $0x18] sm:$0xff] }
 0xdc9   : > { %v4928_v63 = vpop.eup %4927  ;;  %v3680_v29 = vadd.f32 1e-05, %v3678_v55  ;;  %v4044_v55 = vld [vmem:[%s10260_s6 + $0x88] sm:$0xff] }
 0xdca   : > { %v3682_v30 = vmul.f32 %v4928_v63, %v3679_v23  ;;  %vm3688_vm14 = vweird.f32 %v4928_v63  ;;  %v4043_v23 = vld [vmem:[%s10260_s6 + $0x80] sm:$0xff] }
 0xdcb   : > { %4929 = vrsqrt.f32 %v3680_v29  ;;  %vm3689_vm0 = vmor %vm3687_vm15, %vm3688_vm14  ;;  %vm3697_vm2 = vweird.f32 %v3680_v29 }
 0xdcc   : > { %v3683_v54 = vmul.f32 %v4928_v63, %v3682_v30 }
 0xdce   : > { %v3684_v40 = vmul.f32 0.5, %v3683_v54  ;;  %v4082_v54 = vld [vmem:[%s10260_s6 + $0x1b8] sm:$0xff] }
 0xdcf   : > { %4170 = vmatpush.msra.mxu3 %v4082_v54  ;;  %v4068_v54 = vld [vmem:[%s10260_s6 + $0x148] sm:$0xff] }
 0xdd0   : > { %v3685_v12 = vsub.f32 1.5, %v3684_v40 }
 0xdd1   : > { %v4930_v13 = vpop.eup %4929 }
 0xdd2   : > { %v3686_v18 = vmul.f32 %v4928_v63, %v3685_v12  ;;  %v3692_v39 = vmul.f32 %v4930_v13, %v3680_v29  ;;  %vm3698_vm1 = vweird.f32 %v4930_v13 }
 0xdd3   : > { %vm3699_vm3 = vmor %vm3697_vm2, %vm3698_vm1 }
 0xdd4   : > { %v3690_v6 = vsel %vm3689_vm0, %v4928_v63, %v3686_v18  ;;  %v3693_v11 = vmul.f32 %v4930_v13, %v3692_v39  ;;  %v4079_v18 = vld [vmem:[%s10260_s6 + $0x1a0] sm:$0xff]  ;;  %v4042_v39 = vld [vmem:[%s10260_s6 + $0x78] sm:$0xff] }
 0xdd5   : > { %v9902_v22 = vmul.f32 %v3690_v6, %v9738_v27  ;;  %v9905_v35 = vmul.f32 %v3690_v6, %v9740_v4  ;;  %4125 = vmatpush.msra.mxu1 %v4079_v18  ;;  %v4027_v18 = vld [vmem:[%s10260_s6] sm:$0xff] }
 0xdd6   : > { %v3694_v46 = vmul.f32 0.5, %v3693_v11 }
 0xdd7   : > { %3791 = vmatmul.f32.vlgmr.msrb.gmra.mxu0 %v9902_v22  ;;  %3814 = vmatmul.f32.vlgmr.msrb.gmra.mxu1 %v9905_v35 }
 0xdd8   : > { %v3695_v28 = vsub.f32 1.5, %v3694_v46  ;;  %3837 = vmatmul.f32.vlgmr.msrb.gmra.mxu2 %v9902_v22  ;;  %3860 = vmatmul.f32.vlgmr.msrb.gmra.mxu3 %v9905_v35  ;;  %v4080_v46 = vld [vmem:[%s10260_s6 + $0x1a8] sm:$0xff] }
 0xdd9   : > { %4171 = vmatpush.msra.mxu3 %v4080_v46 }
 0xdda   : > { %v3696_v61 = vmul.f32 %v4930_v13, %v3695_v28  ;;  %v4039_v28 = vld [vmem:[%s10260_s6 + $0x60] sm:$0xff] }
 0xddc   : > { %v3700_v49 = vsel %vm3699_vm3, %v4930_v13, %v3696_v61  ;;  %v4041_v13 = vld [vmem:[%s10260_s6 + $0x70] sm:$0xff] }
 0xddd   : > { %v9912_v27 = vmul.f32 %v3700_v49, %v9747_v53  ;;  %v9915_v4 = vmul.f32 %v3700_v49, %v9749_v62  ;;  %v4057_v53 = vld [vmem:[%s10260_s6 + $0xf0] sm:$0xff]  ;;  %v4058_v62 = vld [vmem:[%s10260_s6 + $0xf8] sm:$0xff] }
 0xdde   : > { %4097 = vmatpush.msra.mxu0 %v4057_v53  ;;  %4143 = vmatpush.msra.mxu2 %v4058_v62  ;;  %v4077_v61 = vld [vmem:[%s10260_s6 + $0x190] sm:$0xff]  ;;  %v4078_v53 = vld [vmem:[%s10260_s6 + $0x198] sm:$0xff] }
 0xddf   : > { %3794 = vmatmul.f32.gmra.mxu0 %v9912_v27  ;;  %3817 = vmatmul.f32.gmra.mxu1 %v9915_v4 }
 0xde0   : > { %3840 = vmatmul.f32.gmra.mxu2 %v9912_v27  ;;  %3863 = vmatmul.f32.gmra.mxu3 %v9915_v4 }
 0xde1   : > { %4098 = vmatpush.msra.mxu0 %v4055_v26  ;;  %4144 = vmatpush.msra.mxu2 %v4056_v1  ;;  %v4038_v26 = vld [vmem:[%s10260_s6 + $0x58] sm:$0xff] }
 0xde2   : > { %4126 = vmatpush.msra.mxu1 %v4077_v61  ;;  %4172 = vmatpush.msra.mxu3 %v4078_v53  ;;  %v4066_v53 = vld [vmem:[%s10260_s6 + $0x138] sm:$0xff] }
 0xde3   : > { %4099 = vmatpush.msra.mxu0 %v4053_v2  ;;  %4145 = vmatpush.msra.mxu2 %v4054_v59  ;;  %v4076_v2 = vld [vmem:[%s10260_s6 + $0x188] sm:$0xff] }
 0xde4   : > { %4173 = vmatpush.msra.mxu3 %v4076_v2  ;;  %v4061_v2 = vld [vmem:[%s10260_s6 + $0x110] sm:$0xff] }
 0xde5   : > { %4100 = vmatpush.msra.mxu0 %v4051_v48  ;;  %4146 = vmatpush.msra.mxu2 %v4052_v52  ;;  %v4073_v52 = vld [vmem:[%s10260_s6 + $0x170] sm:$0xff] }
 0xde7   : > { %4101 = vmatpush.msra.mxu0 %v4049_v42  ;;  %4147 = vmatpush.msra.mxu2 %v4050_v37  ;;  %v4033_v42 = vld [vmem:[%s10260_s6 + $0x30] sm:$0xff] }
 0xde9   : > { %4102 = vmatpush.msra.mxu0 %v4047_v56  ;;  %4148 = vmatpush.msra.mxu2 %v4048_v51  ;;  %v4069_v56 = vld [vmem:[%s10260_s6 + $0x150] sm:$0xff] }
 0xdeb   : > { %4103 = vmatpush.msra.mxu0 %v4045_v25  ;;  %4149 = vmatpush.msra.mxu2 %v4046_v44 }
 0xded   : > { %4104 = vmatpush.msra.mxu0 %v4043_v23  ;;  %4150 = vmatpush.msra.mxu2 %v4044_v55  ;;  %v4067_v23 = vld [vmem:[%s10260_s6 + $0x140] sm:$0xff] }
 0xdef   : > { %4105 = vmatpush.msra.mxu0 %v4041_v13  ;;  %4151 = vmatpush.msra.mxu2 %v4042_v39  ;;  %v4065_v39 = vld [vmem:[%s10260_s6 + $0x130] sm:$0xff] }
 0xdf1   : > { %4106 = vmatpush.msra.mxu0 %v4039_v28 }
 0xe54   : > { %v3792_v15 = vpop.f32.mrf.mxu0  ;;  %v3815_v45 = vpop.f32.mrf.mxu1 }
 0xe55   : > { %v3793_v24 = vadd.f32 %v3792_v15, %v3771_v43 }
 0xe57   : > { %v9939_v14 = vadd.f32 %v3815_v45, %v3793_v24  ;;  %v4037_v45 = vld [vmem:[%s10260_s6 + $0x50] sm:$0xff]  ;;  %v4075_v24 = vld [vmem:[%s10260_s6 + $0x180] sm:$0xff] }
 0xe58   : > { %4107 = vmatpush.msra.mxu0 %v4037_v45  ;;  %4127 = vmatpush.msra.mxu1 %v4075_v24  ;;  %v4063_v45 = vld [vmem:[%s10260_s6 + $0x120] sm:$0xff]  ;;  %v4064_v24 = vld [vmem:[%s10260_s6 + $0x128] sm:$0xff] }
 0xe59   : > { %v9949_v10 = vmul.f32 0.70710677, %v9939_v14 }
 0xe5a   : > { %4108 = vmatpush.msra.mxu0 %v4035_v47  ;;  %4128 = vmatpush.msra.mxu1 %v4073_v52 }
 0xe5b   : > { %v9964_v58 = vand.u32 2147483647, %v9949_v10  ;;  %v3838_v41 = vpop.f32.mrf.mxu2  ;;  %v3861_v50 = vpop.f32.mrf.mxu3  ;;  %vm3875_vm3 = vcmp.ge.f32.partialorder %v9949_v10, 0.0 }
 0xe5c   : > { %v3839_v20 = vadd.f32 %v3838_v41, %v3772_v0  ;;  %v3795_v8 = vpop.f32.mrf.mxu0  ;;  %v3818_v60 = vpop.f32.mrf.mxu1  ;;  %v4036_v41 = vld [vmem:[%s10260_s6 + $0x48] sm:$0xff]  ;;  %4109 = vmatpush.msra.mxu0 %v4033_v42 }
 0xe5d   : > { %v3887_v34 = vmul.f32 0.3275911, %v9964_v58  ;;  %v3796_v32 = vadd.f32 %v3795_v8, %v3771_v43  ;;  %v4040_v43 = vld [vmem:[%s10260_s6 + $0x68] sm:$0xff]  ;;  %v4034_v8 = vld [vmem:[%s10260_s6 + $0x38] sm:$0xff] }
 0xe5e   : > { %v9988_v7 = vadd.f32 %v3861_v50, %v3839_v20  ;;  %4152 = vmatpush.msra.mxu2 %v4040_v43  ;;  %v4074_v50 = vld [vmem:[%s10260_s6 + $0x178] sm:$0xff]  ;;  %v4071_v20 = vld [vmem:[%s10260_s6 + $0x160] sm:$0xff] }
 0xe5f   : > { %v9993_v17 = vadd.f32 1.0, %v3887_v34  ;;  %v9995_v21 = vadd.f32 %v3818_v60, %v3796_v32  ;;  %4174 = vmatpush.msra.mxu3 %v4074_v50  ;;  %4129 = vmatpush.msra.mxu1 %v4071_v20  ;;  %v4031_v32 = vld [vmem:[%s10260_s6 + $0x20] sm:$0xff] }
 0xe60   : > { %v10007_v3 = vmul.f32 0.70710677, %v9988_v7  ;;  %4153 = vmatpush.msra.mxu2 %v4038_v26  ;;  %4110 = vmatpush.msra.mxu0 %v4031_v32 }
 0xe61   : > { %4931 = vrcp.f32 %v9993_v17  ;;  %v10026_v29 = vmul.f32 0.70710677, %v9995_v21  ;;  %v3906_v33 = vand.u32 2147483648, %v9993_v17  ;;  %v3904_v37 = vand.u32 2147483647, %v9993_v17  ;;  %4175 = vmatpush.msra.mxu3 %v4072_v5  ;;  %4130 = vmatpush.msra.mxu1 %v4069_v56 }
 0xe62   : > { %v10023_v63 = vand.u32 2147483647, %v10007_v3  ;;  %4154 = vmatpush.msra.mxu2 %v4036_v41  ;;  %vm3900_vm5 = vweird.f32 %v9993_v17  ;;  %4111 = vmatpush.msra.mxu0 %v4029_v31 }
 0xe63   : > { %v3841_v30 = vpop.f32.mrf.mxu2  ;;  %v10042_v6 = vand.u32 2147483647, %v10026_v29  ;;  %v3864_v11 = vpop.f32.mrf.mxu3  ;;  %v3907_v25 = vor.u32 1.1754944e-38, %v3906_v33  ;;  %vm3905_vm7 = vcmp.eq.f32.partialorder %v3904_v37, 8.507059e+37  ;;  %4131 = vmatpush.msra.mxu1 %v4067_v23  ;;  %v4062_v33 = vld [vmem:[%s10260_s6 + $0x118] sm:$0xff]  ;;  %v4060_v37 = vld [vmem:[%s10260_s6 + $0x108] sm:$0xff] }
 0xe64   : > { %v3888_v40 = vmul.f32 0.3275911, %v10023_v63  ;;  %v3842_v12 = vadd.f32 %v3841_v30, %v3772_v0  ;;  %4155 = vmatpush.msra.mxu2 %v4034_v8  ;;  %v3991_v30 = vsub.f32 0.0, %v9964_v58  ;;  %4112 = vmatpush.msra.mxu0 %v4027_v18  ;;  %v3992_v47 = vsub.f32 0.0, %v10023_v63 }
 0xe65   : > { %v3889_v15 = vmul.f32 0.3275911, %v10042_v6  ;;  %4132 = vmatpush.msra.mxu1 %v4065_v39  ;;  %v3993_v23 = vsub.f32 0.0, %v10042_v6 }
 0xe66   : > { %v10053_v49 = vadd.f32 1.0, %v3888_v40  ;;  %v10055_v19 = vadd.f32 %v3864_v11, %v3842_v12  ;;  %4156 = vmatpush.msra.mxu2 %v4032_v36  ;;  %v4028_v11 = vld [vmem:[%s10260_s6 + $0x8] sm:$0xff] }
 0xe67   : > { %v10063_v62 = vpop.eup %4931  ;;  %v10081_v59 = vadd.f32 1.0, %v3889_v15  ;;  %4133 = vmatpush.msra.mxu1 %v4063_v45 }
 0xe68   : > { %v3896_v1 = vmul.f32 %v10063_v62, %v9993_v17  ;;  %4933 = vrcp.f32 %v10053_v49  ;;  %v10084_v48 = vmul.f32 0.70710677, %v10055_v19  ;;  %vm3901_vm4 = vweird.f32 %v10063_v62  ;;  %v4070_v17 = vld [vmem:[%s10260_s6 + $0x158] sm:$0xff]  ;;  %4157 = vmatpush.msra.mxu2 %v4030_v57 }
 0xe69   : > { %4935 = vrcp.f32 %v10081_v59  ;;  %vm10133_vm6 = vmor %vm3900_vm5, %vm3901_vm4  ;;  %4176 = vmatpush.msra.mxu3 %v4070_v17  ;;  %v3919_v61 = vand.u32 2147483647, %v10053_v49  ;;  %v3921_v43 = vand.u32 2147483648, %v10053_v49  ;;  %vm3915_vm9 = vweird.f32 %v10053_v49  ;;  %4134 = vmatpush.msra.mxu1 %v4061_v2 }
 0xe6a   : > { %v3897_v0 = vsub.f32 1.0, %v3896_v1  ;;  %v10117_v34 = vand.u32 2147483647, %v10084_v48  ;;  %v3995_v1 = vmul.f32 %v3991_v30, %v9964_v58  ;;  %4158 = vmatpush.msra.mxu2 %v4028_v11  ;;  %v3936_v50 = vand.u32 2147483648, %v10081_v59 }
 0xe6b   : > { %4177 = vmatpush.msra.mxu3 %v4068_v54  ;;  %vm3920_vm11 = vcmp.eq.f32.partialorder %v3919_v61, 8.507059e+37  ;;  %v3922_v41 = vor.u32 1.1754944e-38, %v3921_v43  ;;  %v3934_v20 = vand.u32 2147483647, %v10081_v59  ;;  %vm3930_vm13 = vweird.f32 %v10081_v59 }
 0xe6c   : > { %v3898_v38 = vmul.f32 %v10063_v62, %v3897_v0  ;;  %v3890_v44 = vmul.f32 0.3275911, %v10117_v34  ;;  %v3999_v56 = vmul.f32 1.442695, %v3995_v1  ;;  %v3937_v17 = vor.u32 1.1754944e-38, %v3936_v50 }
 0xe6d   : > { %4178 = vmatpush.msra.mxu3 %v4066_v53  ;;  %vm3935_vm15 = vcmp.eq.f32.partialorder %v3934_v20, 8.507059e+37  ;;  %v3997_v61 = vmul.f32 %v3993_v23, %v10042_v6  ;;  %v3994_v2 = vsub.f32 0.0, %v10117_v34  ;;  %vm3876_vm5 = vcmp.ge.f32.partialorder %v10007_v3, 0.0 }
 0xe6e   : > { %v10128_v51 = vpop.eup %4933  ;;  %v3899_v60 = vadd.f32 %v10063_v62, %v3898_v38  ;;  %v10161_v13 = vadd.f32 1.0, %v3890_v44  ;;  %v3868_v3 = vmul.f32 0.5, %v9988_v7 }
 0xe6f   : > { %v3911_v16 = vmul.f32 %v10128_v51, %v10053_v49  ;;  %v4936_v46 = vpop.eup %4935  ;;  %vm3916_vm8 = vweird.f32 %v10128_v51  ;;  %4179 = vmatpush.msra.mxu3 %v4064_v24  ;;  %v4059_v49 = vld [vmem:[%s10260_s6 + $0x100] sm:$0xff] }
 0xe70   : > { %v3903_v55 = vsel %vm10133_vm6, %v10063_v62, %v3899_v60  ;;  %v3926_v15 = vmul.f32 %v4936_v46, %v10081_v59  ;;  %4937 = vrcp.f32 %v10161_v13  ;;  %vm3917_vm10 = vmor %vm3915_vm9, %vm3916_vm8  ;;  %vm3931_vm12 = vweird.f32 %v4936_v46  ;;  %4135 = vmatpush.msra.mxu1 %v4059_v49 }
 0xe71   : > { %v10159_v40 = vsel %vm3905_vm7, %v3907_v25, %v3903_v55  ;;  %v3912_v12 = vsub.f32 1.0, %v3911_v16  ;;  %4180 = vmatpush.msra.mxu3 %v4062_v33  ;;  %vm3932_vm14 = vmor %vm3930_vm13, %vm3931_vm12  ;;  %v3996_v16 = vmul.f32 %v3992_v47, %v10023_v63  ;;  %4939 = vpow2.f32 %v3999_v56 }
 0xe72   : > { %v3955_v28 = vmul.f32 1.0614054, %v10159_v40  ;;  %v3927_v52 = vsub.f32 1.0, %v3926_v15  ;;  %v3951_v30 = vand.u32 2147483648, %v10161_v13  ;;  %v3949_v39 = vand.u32 2147483647, %v10161_v13 }
 0xe73   : > { %v3913_v62 = vmul.f32 %v10128_v51, %v3912_v12  ;;  %4181 = vmatpush.msra.mxu3 %v4060_v37  ;;  %v4001_v11 = vmul.f32 1.442695, %v3996_v16  ;;  %vm3945_vm1 = vweird.f32 %v10161_v13  ;;  %v5532_v49 = vmov -1.0  }
 0xe74   : > { %v3959_v26 = vadd.f32 -1.4531521, %v3955_v28  ;;  %v3928_v38 = vmul.f32 %v4936_v46, %v3927_v52  ;;  %v3952_v15 = vor.u32 1.1754944e-38, %v3951_v30  ;;  %vm3950_vm4 = vcmp.eq.f32.partialorder %v3949_v39, 8.507059e+37 }
 0xe75   : > { %v3914_v0 = vadd.f32 %v10128_v51, %v3913_v62  ;;  %4941 = vpow2.f32 %v4001_v11  ;;  %vm3877_vm6 = vcmp.ge.f32.partialorder %v10026_v29, 0.0  ;;  %vm3878_vm7 = vcmp.ge.f32.partialorder %v10084_v48, 0.0 }
 0xe76   : > { %v3963_v58 = vmul.f32 %v3959_v26, %v10159_v40  ;;  %v4938_v32 = vpop.eup %4937 }
 0xe77   : > { %v3918_v42 = vsel %vm3917_vm10, %v10128_v51, %v3914_v0  ;;  %v3929_v51 = vadd.f32 %v4936_v46, %v3928_v38  ;;  %v3941_v9 = vmul.f32 %v4938_v32, %v10161_v13  ;;  %vm3946_vm0 = vweird.f32 %v4938_v32  ;;  %v4940_v26 = vpop.eup %4939 }
 0xe78   : > { %v3967_v8 = vadd.f32 1.4214138, %v3963_v58  ;;  %v10210_v5 = vsel %vm3920_vm11, %v3922_v41, %v3918_v42  ;;  %vm3947_vm2 = vmor %vm3945_vm1, %vm3946_vm0  ;;  %v4003_v13 = vmul.f32 1.442695, %v3997_v61  ;;  %v3998_v38 = vmul.f32 %v3994_v2, %v10117_v34 }
 0xe79   : > { %v3956_v36 = vmul.f32 1.0614054, %v10210_v5  ;;  %v3933_v44 = vsel %vm3932_vm14, %v4936_v46, %v3929_v51  ;;  %v3942_v57 = vsub.f32 1.0, %v3941_v9  ;;  %v3867_v51 = vmul.f32 0.5, %v9939_v14 }
 0xe7a   : > { %v3971_v60 = vmul.f32 %v3967_v8, %v10159_v40  ;;  %v3938_v55 = vsel %vm3935_vm15, %v3937_v17, %v3933_v44  ;;  %4943 = vpow2.f32 %v4003_v13  ;;  %v4005_v10 = vmul.f32 1.442695, %v3998_v38 }
 0xe7b   : > { %v3960_v25 = vadd.f32 -1.4531521, %v3956_v36  ;;  %v3957_v54 = vmul.f32 1.0614054, %v3938_v55  ;;  %v3943_v18 = vmul.f32 %v4938_v32, %v3942_v57  ;;  %v4942_v36 = vpop.eup %4941  ;;  %v3880_v57 = vsel %vm3876_vm5, 1.0, %v5532_v49 }
 0xe7c   : > { %v3975_v31 = vadd.f32 -0.28449672, %v3971_v60  ;;  %4945 = vpow2.f32 %v4005_v10 }
 0xe7d   : > { %v3964_v59 = vmul.f32 %v3960_v25, %v10210_v5  ;;  %v3961_v46 = vadd.f32 -1.4531521, %v3957_v54  ;;  %v3944_v43 = vadd.f32 %v4938_v32, %v3943_v18  ;;  %v3881_v18 = vsel %vm3877_vm6, 1.0, %v5532_v49 }
 0xe7e   : > { %v3979_v12 = vmul.f32 %v3975_v31, %v10159_v40 }
 0xe7f   : > { %v3968_v63 = vadd.f32 1.4214138, %v3964_v59  ;;  %v3965_v62 = vmul.f32 %v3961_v46, %v3938_v55  ;;  %v3948_v24 = vsel %vm3947_vm2, %v4938_v32, %v3944_v43 }
 0xe80   : > { %v3983_v28 = vadd.f32 0.2548296, %v3979_v12  ;;  %v3953_v6 = vsel %vm3950_vm4, %v3952_v15, %v3948_v24  ;;  %v4944_v23 = vpop.eup %4943  ;;  %v3870_v15 = vmul.f32 0.5, %v10055_v19 }
 0xe81   : > { %v3972_v53 = vmul.f32 %v3968_v63, %v10210_v5  ;;  %v3969_v0 = vadd.f32 1.4214138, %v3965_v62  ;;  %v3958_v52 = vmul.f32 1.0614054, %v3953_v6  ;;  %v3882_v62 = vsel %vm3878_vm7, 1.0, %v5532_v49 }
 0xe82   : > { %v3987_v45 = vmul.f32 %v3983_v28, %v10159_v40  ;;  %v3879_v40 = vsel %vm3875_vm3, 1.0, %v5532_v49  ;;  %v4946_v46 = vpop.eup %4945  ;;  %v3869_v28 = vmul.f32 0.5, %v9995_v21  ;;  %v4091_v21 = vld [vmem:[%s10261_s7] sm:$0x3] }
 0xe83   : > { %v3976_v1 = vadd.f32 -0.28449672, %v3972_v53  ;;  %v3973_v58 = vmul.f32 %v3969_v0, %v3938_v55  ;;  %v3962_v50 = vadd.f32 -1.4531521, %v3958_v52 }
 0xe84   : > { %v4007_v47 = vmul.f32 %v4940_v26, %v3987_v45  ;;  %v4093_v26 = vperm.slane %v4091_v21, 0 }
 0xe85   : > { %v3980_v33 = vmul.f32 %v3976_v1, %v10210_v5  ;;  %v3977_v37 = vadd.f32 -0.28449672, %v3973_v58  ;;  %v3966_v8 = vmul.f32 %v3962_v50, %v3953_v6 }
 0xe86   : > { %v4011_v41 = vsub.f32 1.0, %v4007_v47 }
 0xe87   : > { %v3984_v42 = vadd.f32 0.2548296, %v3980_v33  ;;  %v3981_v56 = vmul.f32 %v3977_v37, %v3938_v55  ;;  %v3970_v9 = vadd.f32 1.4214138, %v3966_v8 }
 0xe88   : > { %v4015_v20 = vmul.f32 %v4011_v41, %v3879_v40 }
 0xe89   : > { %v3988_v32 = vmul.f32 %v3984_v42, %v10210_v5  ;;  %v3985_v25 = vadd.f32 0.2548296, %v3981_v56  ;;  %v3974_v44 = vmul.f32 %v3970_v9, %v3953_v6 }
 0xe8a   : > { %v4019_v60 = vadd.f32 1.0, %v4015_v20 }
 0xe8b   : > { %v4008_v17 = vmul.f32 %v4942_v36, %v3988_v32  ;;  %v3989_v31 = vmul.f32 %v3985_v25, %v3938_v55  ;;  %v3978_v5 = vadd.f32 -0.28449672, %v3974_v44 }
 0xe8c   : > { %v4023_v16 = vmul.f32 %v4019_v60, %v3867_v51 }
 0xe8d   : > { %v4012_v34 = vsub.f32 1.0, %v4008_v17  ;;  %v4009_v14 = vmul.f32 %v4944_v23, %v3989_v31  ;;  %v3982_v30 = vmul.f32 %v3978_v5, %v3953_v6 }
 0xe8e   : > { %4113 = vmatmul.f32.vlgmr.msra.gmra.mxu0 %v4023_v16  ;;  %4159 = vmatmul.f32.vlgmr.msra.gmra.mxu2 %v4023_v16 }
 0xe8f   : > { %v4016_v59 = vmul.f32 %v4012_v34, %v3880_v57  ;;  %v4013_v12 = vsub.f32 1.0, %v4009_v14  ;;  %v3986_v39 = vadd.f32 0.2548296, %v3982_v30 }
 0xe91   : > { %v4020_v54 = vadd.f32 1.0, %v4016_v59  ;;  %v4017_v11 = vmul.f32 %v4013_v12, %v3881_v18  ;;  %v3990_v55 = vmul.f32 %v3986_v39, %v3953_v6  ;;  %v4094_v6 = vperm.slane %v4091_v21, 1 }
 0xe93   : > { %v4024_v63 = vmul.f32 %v4020_v54, %v3868_v3  ;;  %v4021_v61 = vadd.f32 1.0, %v4017_v11  ;;  %v4010_v29 = vmul.f32 %v4946_v46, %v3990_v55 }
 0xe95   : > { %4136 = vmatmul.f32.vlgmr.msra.gmra.mxu1 %v4024_v63  ;;  %4182 = vmatmul.f32.vlgmr.msra.gmra.mxu3 %v4024_v63  ;;  %v4025_v43 = vmul.f32 %v4021_v61, %v3869_v28  ;;  %v4014_v53 = vsub.f32 1.0, %v4010_v29 }
 0xe97   : > { %4116 = vmatmul.f32.gmra.mxu0 %v4025_v43  ;;  %4162 = vmatmul.f32.gmra.mxu2 %v4025_v43  ;;  %v4018_v7 = vmul.f32 %v4014_v53, %v3882_v62 }
 0xe99   : > { %v4022_v45 = vadd.f32 1.0, %v4018_v7 }
 0xe9b   : > { %v4026_v24 = vmul.f32 %v4022_v45, %v3870_v15 }
 0xe9d   : > { %4139 = vmatmul.f32.gmra.mxu1 %v4026_v24  ;;  %4185 = vmatmul.f32.gmra.mxu3 %v4026_v24 }
 0xf0b   : > { %v4114_v48 = vpop.f32.mrf.mxu0 }
 0xf0c   : > { %v4115_v1 = vadd.f32 %v4114_v48, %v4093_v26 }
 0xf11   : > { %v4160_v47 = vpop.f32.mrf.mxu2 }
 0xf12   : > { %v4137_v2 = vpop.f32.mrf.mxu1  ;;  %v4161_v52 = vadd.f32 %v4160_v47, %v4094_v6 }
 0xf13   : > { %v4138_v0 = vadd.f32 %v4137_v2, %v4115_v1 }
 0xf14   : > { %v4117_v41 = vpop.f32.mrf.mxu0 }
 0xf15   : > { %v4189_v13 = vadd.f32 %v4138_v0, %v9902_v22  ;;  %v4118_v40 = vadd.f32 %v4117_v41, %v4093_v26 }
 0xf17   : > { %vm4193_vm8 = vcmp.ge.f32.partialorder %v4189_v13, 0.0  ;;  %v4197_v19 = vmul.f32 0.01, %v4189_v13 }
 0xf18   : > { %v4183_v33 = vpop.f32.mrf.mxu3 }
 0xf19   : > { %v4201_v58 = vsel %vm4193_vm8, %v4189_v13, %v4197_v19  ;;  %v4184_v50 = vadd.f32 %v4183_v33, %v4161_v52 }
 0xf1a   : > { %4205 = vst [vmem:[%s305_s12] sm:$0xff] %v4201_v58  ;;  %v4140_v38 = vpop.f32.mrf.mxu1  ;;  %v4163_v20 = vpop.f32.mrf.mxu2 }
 0xf1b   : > { %v4190_v49 = vadd.f32 %v4184_v50, %v9905_v35  ;;  %v4141_v37 = vadd.f32 %v4140_v38, %v4118_v40  ;;  %v4164_v56 = vadd.f32 %v4163_v20, %v4094_v6 }
 0xf1d   : > { %vm4194_vm9 = vcmp.ge.f32.partialorder %v4190_v49, 0.0  ;;  %v4198_v42 = vmul.f32 0.01, %v4190_v49  ;;  %v4191_v8 = vadd.f32 %v4141_v37, %v9912_v27 }
 0xf1f   : > { %v4202_v22 = vsel %vm4194_vm9, %v4190_v49, %v4198_v42  ;;  %vm4195_vm10 = vcmp.ge.f32.partialorder %v4191_v8, 0.0  ;;  %v4199_v32 = vmul.f32 0.01, %v4191_v8 }
 0xf20   : > { %4206 = vst [vmem:[%s305_s12 + $0x8] sm:$0xff] %v4202_v22  ;;  %v4186_v36 = vpop.f32.mrf.mxu3 }
 0xf21   : > { %v4203_v51 = vsel %vm4195_vm10, %v4191_v8, %v4199_v32  ;;  %v4187_v60 = vadd.f32 %v4186_v36, %v4164_v56 }
 0xf22   : > { %4207 = vst [vmem:[%s305_s12 + $0x10] sm:$0xff] %v4203_v51 }
 0xf23   : > { %v4192_v9 = vadd.f32 %v4187_v60, %v9915_v4 }
 0xf25   : > { %vm4196_vm11 = vcmp.ge.f32.partialorder %v4192_v9, 0.0  ;;  %v4200_v35 = vmul.f32 0.01, %v4192_v9 }
 0xf27   : > { %v4204_v17 = vsel %vm4196_vm11, %v4192_v9, %v4200_v35 }
 0xf28   : > { %4208 = vst [vmem:[%s305_s12 + $0x18] sm:$0xff] %v4204_v17 }
 0xf29 PF: > { %s18_s27 = sadd.s32 1, %s5529_s27  }
 0xf2a   : > { %p15_p4 = scmp.ge.s32.totalorder %s18_s27, 4  }
 0xf2c   :  { %17 = sbr.rel (!%p15_p4) target bundleno = 1 (0x1), region = 106 }

</bundles_post_ra>
